<compile_context>
chip_gen: v7x
topology: tpu7x:2x2x1
jax: 0.10.0
libtpu: 0.0.40
codegen_flags: <defaults>
</compile_context>

<pallas_src>
import math

import jax
import jax.numpy as jnp
from jax.experimental import pallas as pl
from jax.experimental.pallas import tpu as pltpu

# ----------------------------------------------------------------------------
# Model hyper-parameters (small shapes for the demo)
# ----------------------------------------------------------------------------
BATCH = 2
FEATURE_SIZE = 64      # smiles_encoder.feature_size
EMBED_DIM = 32
HIDDEN_DIM = 32
HALF_DIM = HIDDEN_DIM // 2
OUTPUT_DIM = 1
N_QUBITS = 8
N_LAYERS = 3
DIM = 2 ** N_QUBITS    # 256 statevector amplitudes
DIM2 = 2 * DIM         # [re | im] column-stacked width
LN_EPS = 1e-5          # torch.nn.LayerNorm default

VEC_PAD = 32           # lane width of the small-vector / dense-weight slabs
SUBLANE = 8            # f32 sublane tile; batch is padded to a multiple of this

# pre-quantum dense chain: 6 x (Linear + LayerNorm [+ SiLU])
#   embed L1, embed L2, fe L1, fe L2, input_proj L1, input_proj L2
_PRE_IN = (FEATURE_SIZE, HIDDEN_DIM, EMBED_DIM, HALF_DIM, HIDDEN_DIM, HALF_DIM)
_PRE_OUT = (HIDDEN_DIM, EMBED_DIM, HALF_DIM, HIDDEN_DIM, HALF_DIM, N_QUBITS)
_PRE_SILU = (True, False, True, True, True, False)
_PRE_ROW_OFF = tuple(sum(_PRE_IN[:i]) for i in range(len(_PRE_IN)))  # 0,64,96,128,144,176
PRE_W_ROWS = sum(_PRE_IN)                                            # 192

# post-quantum weight slab rows: [Zsigns@Wq1 (256) | Wq2 (16) | Wr1 (32) | Wr2^T (1)]
_POST_ROW_OFF = (0, DIM, DIM + HALF_DIM, DIM + HALF_DIM + HIDDEN_DIM)  # 0,256,272,304
POST_W_ROWS = 320

# rows of the packed f32 vector slab
_VEC_WCZ_ROW = 18                      # re-upload scale wcz[1, :]
_VEC_QO_B1, _VEC_QO_B2 = 19, 20        # output_proj biases
_VEC_OUT_B1, _VEC_OUT_B2 = 21, 22      # output_layer biases
VEC_ROWS = 24


# ----------------------------------------------------------------------------
# The single fused Pallas kernel
# ----------------------------------------------------------------------------
def _fused_forward_kernel(x_ref, pre_w_ref, vec_ref, bits_ref, qtab_ref,
                          post_w_ref, o_ref):
    f32 = jnp.float32
    bf16 = jnp.bfloat16
    vecs = vec_ref[...]                  # (24, 32) f32 packed small vectors
    bits = bits_ref[...]                 # (8, 512) f32 in {0,1}; bit of (idx % 256), qubit0 = MSB

    # -------- pre-quantum dense chain: 6 x Linear + LayerNorm [+ SiLU] --------
    h = x_ref[...]                       # (Bp, 64) f32
    features = None
    for li in range(6):
        r0 = _PRE_ROW_OFF[li]
        d_in, d_out = _PRE_IN[li], _PRE_OUT[li]
        w = pre_w_ref[r0:r0 + d_in, :d_out]                       # bf16 weight tile
        y = jnp.dot(h.astype(bf16), w, preferred_element_type=f32)
        y = y + vecs[3 * li + 0:3 * li + 1, :d_out]               # bias
        mu = jnp.mean(y, axis=-1, keepdims=True)
        var = jnp.mean((y - mu) ** 2, axis=-1, keepdims=True)
        y = (y - mu) * jax.lax.rsqrt(var + LN_EPS)
        y = y * vecs[3 * li + 1:3 * li + 2, :d_out] + vecs[3 * li + 2:3 * li + 3, :d_out]
        if _PRE_SILU[li]:
            y = y * jax.nn.sigmoid(y)
        h = y
        if li == 3:
            features = h                                          # (Bp, 32) residual tap
    qin = h                                                       # (Bp, 8) qubit angles

    # -------- 8-qubit circuit: exact statevector, all lane-dense --------------
    # product-state encoding RY(qin_i)|0..0>  ->  real (Bp, 256) amplitudes
    c = jnp.cos(0.5 * qin)
    s = jnp.sin(0.5 * qin)
    enc = bits[:, :DIM]                                           # (8, 256)
    state = c[:, 0:1] + enc[0:1, :] * (s[:, 0:1] - c[:, 0:1])
    for i in range(1, N_QUBITS):
        state = state * (c[:, i:i + 1] + enc[i:i + 1, :] * (s[:, i:i + 1] - c[:, i:i + 1]))

    # fixed layers 0,1 (+CZ chains):  psi = state @ [U1^T_re | U1^T_im]  -> (Bp, 512)
    psi = jnp.dot(state.astype(bf16), qtab_ref[0:DIM, :], preferred_element_type=f32)

    # data re-uploading after layer 1: RY(qin_i * wcz[1,i]) on each qubit,
    # applied to the [re|im] stacked planes with mask-select + lane rotations.
    phi = 0.5 * qin * vecs[_VEC_WCZ_ROW:_VEC_WCZ_ROW + 1, :N_QUBITS]
    cc = jnp.cos(phi)
    ss = jnp.sin(phi)
    for i in range(N_QUBITS):
        st = 1 << (N_QUBITS - 1 - i)                              # pair stride of qubit i
        b = bits[i:i + 1, :]                                      # (1, 512) mask
        sg = 2.0 * b - 1.0                                        # -1 on bit=0, +1 on bit=1
        # partner amplitude psi[k XOR st]; the cyclic-wrap lanes are never selected
        partner = (b * pltpu.roll(psi, st, 1)
                   + (1.0 - b) * pltpu.roll(psi, DIM2 - st, 1))
        psi = cc[:, i:i + 1] * psi + ss[:, i:i + 1] * sg * partner

    # fixed layer 2 + final RX: complex matmul via block weight [[A, B], [-B, A]]
    out = jnp.dot(psi.astype(bf16), qtab_ref[DIM:DIM + DIM2, :], preferred_element_type=f32)
    sq = out * out
    probs = sq[:, :DIM] + sq[:, DIM:]                             # |amp|^2, (Bp, 256)

    # -------- post-quantum chain ----------------------------------------------
    # output_proj L1 fused with the PauliZ readout: h = probs @ (Zsigns @ Wq1) + b
    h = jnp.dot(probs.astype(bf16),
                post_w_ref[_POST_ROW_OFF[0]:_POST_ROW_OFF[1], :HALF_DIM],
                preferred_element_type=f32)
    h = h + vecs[_VEC_QO_B1:_VEC_QO_B1 + 1, :HALF_DIM]
    h = h * jax.nn.sigmoid(h)
    qfeat = jnp.dot(h.astype(bf16),
                    post_w_ref[_POST_ROW_OFF[1]:_POST_ROW_OFF[2], :HIDDEN_DIM],
                    preferred_element_type=f32)
    qfeat = qfeat + vecs[_VEC_QO_B2:_VEC_QO_B2 + 1, :HIDDEN_DIM]

    combined = features + qfeat                                   # residual add

    h = jnp.dot(combined.astype(bf16),
                post_w_ref[_POST_ROW_OFF[2]:_POST_ROW_OFF[3], :HALF_DIM],
                preferred_element_type=f32)
    h = h + vecs[_VEC_OUT_B1:_VEC_OUT_B1 + 1, :HALF_DIM]
    h = h * jax.nn.sigmoid(h)

    # final Linear(16 -> 1): VPU multiply + lane reduction instead of an N=1 MXU pass
    w_last = post_w_ref[_POST_ROW_OFF[3]:_POST_ROW_OFF[3] + 1, :HALF_DIM].astype(f32)
    o_ref[...] = (jnp.sum(h * w_last, axis=-1, keepdims=True)
                  + vecs[_VEC_OUT_B2:_VEC_OUT_B2 + 1, :OUTPUT_DIM])


# ----------------------------------------------------------------------------
# Offline circuit prep: fixed-weight blocks collapsed into dense unitaries
# ----------------------------------------------------------------------------
def _rx(t):
    c = jnp.cos(t / 2).astype(jnp.complex64)
    s = jnp.sin(t / 2).astype(jnp.complex64)
    return jnp.stack([jnp.stack([c, -1j * s]), jnp.stack([-1j * s, c])])


def _ry(t):
    c = jnp.cos(t / 2).astype(jnp.complex64)
    s = jnp.sin(t / 2).astype(jnp.complex64)
    return jnp.stack([jnp.stack([c, -s]), jnp.stack([s, c])])


def _rz(t):
    tc = t.astype(jnp.complex64)
    zero = jnp.zeros((), jnp.complex64)
    return jnp.stack([jnp.stack([jnp.exp(-0.5j * tc), zero]),
                      jnp.stack([zero, jnp.exp(0.5j * tc)])])


def _kron_chain(mats):
    u = mats[0]
    for m in mats[1:]:
        u = jnp.kron(u, m)
    return u


def _build_fixed_unitaries(qp):
    """Collapse all fixed-weight gates into U1 (layers 0,1) and U2 (layer 2 + final RX)."""
    n = N_QUBITS
    # bits[idx, i] = value of qubit i for basis state idx (qubit 0 = most significant)
    bits = (jnp.arange(DIM)[:, None] >> jnp.arange(n - 1, -1, -1)[None, :]) & 1
    # CZ chain i -> i+1 for i in 0..n-2 (matches reference: range(n_qubits-1))
    cz_parity = jnp.sum(bits[:, :-1] * bits[:, 1:], axis=1)
    d_cz = jnp.where(cz_parity % 2 == 1, -1.0, 1.0).astype(jnp.complex64)

    def layer_unitary(l):
        # circuit applies RX then RY then RZ -> matrix RZ @ RY @ RX, then the CZ chain
        mats = [_rz(qp["wrz"][l, i]) @ _ry(qp["wry"][l, i]) @ _rx(qp["wrx"][l, i])
                for i in range(n)]
        return d_cz[:, None] * _kron_chain(mats)

    U1 = layer_unitary(1) @ layer_unitary(0)            # fixed block before re-upload
    Kf = _kron_chain([_rx(qp["final"][i]) for i in range(n)])
    U2 = Kf @ layer_unitary(2)                          # fixed block after re-upload

    zsigns = (1.0 - 2.0 * bits).astype(jnp.float32)     # (256, 8): <PauliZ(i)> readout
    return U1, U2, zsigns


# ----------------------------------------------------------------------------
# Parameter initialization (deterministic, in-script)
# ----------------------------------------------------------------------------
def _init_linear(key, d_in, d_out):
    k1, k2 = jax.random.split(key)
    lim = 1.0 / math.sqrt(d_in)
    w = jax.random.uniform(k1, (d_in, d_out), jnp.float32, -lim, lim)
    b = jax.random.uniform(k2, (d_out,), jnp.float32, -lim, lim)
    return w, b


def init_params(key):
    keys = iter(jax.random.split(key, 32))

    def lin(d_in, d_out):
        return _init_linear(next(keys), d_in, d_out)

    def ln(d):
        return jnp.ones((d,), jnp.float32), jnp.zeros((d,), jnp.float32)

    params = {}

    # TODO(synk): SMILESEmbeddingModel definition is not provided in the source;
    # approximated as Linear->LayerNorm->SiLU->Linear->LayerNorm MLP.
    w1, b1 = lin(FEATURE_SIZE, HIDDEN_DIM)
    w2, b2 = lin(HIDDEN_DIM, EMBED_DIM)
    g1, be1 = ln(HIDDEN_DIM)
    g2, be2 = ln(EMBED_DIM)
    params["embed"] = dict(w1=w1, b1=b1, g1=g1, be1=be1, w2=w2, b2=b2, g2=g2, be2=be2)

    # QuantumRegressionNet.feature_extractor
    w1, b1 = lin(EMBED_DIM, HALF_DIM)
    w2, b2 = lin(HALF_DIM, HIDDEN_DIM)
    g1, be1 = ln(HALF_DIM)
    g2, be2 = ln(HIDDEN_DIM)
    params["fe"] = dict(w1=w1, b1=b1, g1=g1, be1=be1, w2=w2, b2=b2, g2=g2, be2=be2)

    # EnhancedQuantumLayer.input_proj
    w1, b1 = lin(HIDDEN_DIM, HALF_DIM)
    w2, b2 = lin(HALF_DIM, N_QUBITS)
    g1, be1 = ln(HALF_DIM)
    g2, be2 = ln(N_QUBITS)
    params["qin"] = dict(w1=w1, b1=b1, g1=g1, be1=be1, w2=w2, b2=b2, g2=g2, be2=be2)

    # quantum circuit weights (TorchLayer default init: uniform(0, 2*pi))
    params["qcircuit"] = dict(
        wrx=jax.random.uniform(next(keys), (N_LAYERS, N_QUBITS), jnp.float32, 0.0, 2 * math.pi),
        wry=jax.random.uniform(next(keys), (N_LAYERS, N_QUBITS), jnp.float32, 0.0, 2 * math.pi),
        wrz=jax.random.uniform(next(keys), (N_LAYERS, N_QUBITS), jnp.float32, 0.0, 2 * math.pi),
        wcz=jax.random.uniform(next(keys), (N_LAYERS, N_QUBITS), jnp.float32, 0.0, 2 * math.pi),
        final=jax.random.uniform(next(keys), (N_QUBITS,), jnp.float32, 0.0, 2 * math.pi),
    )

    # EnhancedQuantumLayer.output_proj
    w1, b1 = lin(N_QUBITS, HALF_DIM)
    w2, b2 = lin(HALF_DIM, HIDDEN_DIM)
    params["qout"] = dict(w1=w1, b1=b1, w2=w2, b2=b2)

    # QuantumRegressionNet.output_layer
    w1, b1 = lin(HIDDEN_DIM, HALF_DIM)
    w2, b2 = lin(HALF_DIM, OUTPUT_DIM)
    params["out"] = dict(w1=w1, b1=b1, w2=w2, b2=b2)
    return params


def pack_params(params):
    """Offline weight prep: DMA slabs + precomputed circuit unitaries / bit tables."""
    def padlane(v):
        return jnp.pad(v.astype(jnp.float32), (0, VEC_PAD - v.shape[0]))

    def padw(w):
        return jnp.pad(w.astype(jnp.float32), ((0, 0), (0, VEC_PAD - w.shape[1])))

    e, f, q = params["embed"], params["fe"], params["qin"]
    qo, ou = params["qout"], params["out"]

    # packed f32 vector slab (bias / gamma / beta per pre layer, wcz row, post biases)
    vec_rows = [
        padlane(e["b1"]), padlane(e["g1"]), padlane(e["be1"]),
        padlane(e["b2"]), padlane(e["g2"]), padlane(e["be2"]),
        padlane(f["b1"]), padlane(f["g1"]), padlane(f["be1"]),
        padlane(f["b2"]), padlane(f["g2"]), padlane(f["be2"]),
        padlane(q["b1"]), padlane(q["g1"]), padlane(q["be1"]),
        padlane(q["b2"]), padlane(q["g2"]), padlane(q["be2"]),
        padlane(params["qcircuit"]["wcz"][1]),                # row 18: re-upload scale
        padlane(qo["b1"]), padlane(qo["b2"]),                 # rows 19, 20
        padlane(ou["b1"]), padlane(ou["b2"]),                 # rows 21, 22
        jnp.zeros((VEC_PAD,), jnp.float32),                   # pad -> 24 rows
    ]
    vecs = jnp.stack(vec_rows)                                # (24, 32) f32

    # pre-chain weight slab (192, 32) bf16
    pre_w = jnp.concatenate(
        [padw(e["w1"]), padw(e["w2"]), padw(f["w1"]), padw(f["w2"]),
         padw(q["w1"]), padw(q["w2"])], axis=0).astype(jnp.bfloat16)

    # quantum tables
    U1, U2, zsigns = _build_fixed_unitaries(params["qcircuit"])
    W1 = jnp.concatenate([jnp.real(U1.T), jnp.imag(U1.T)], axis=1)           # (256, 512)
    A, Bm = jnp.real(U2.T), jnp.imag(U2.T)
    W2 = jnp.concatenate([jnp.concatenate([A, Bm], axis=1),
                          jnp.concatenate([-Bm, A], axis=1)], axis=0)        # (512, 512)
    qtab = jnp.concatenate([W1, W2], axis=0).astype(jnp.bfloat16)            # (768, 512)

    # bit table (8, 512) f32: bit of (state idx % 256) per qubit, qubit 0 = MSB
    j = jnp.arange(DIM)
    bit_rows = ((j[None, :] >> jnp.arange(N_QUBITS - 1, -1, -1)[:, None]) & 1).astype(jnp.float32)
    bits = jnp.concatenate([bit_rows, bit_rows], axis=1)                     # (8, 512)

    # post-chain weight slab (320, 32) bf16; PauliZ readout folded into Wq1
    wq1_eff = zsigns @ qo["w1"]                                              # (256, 16)
    post_w = jnp.concatenate(
        [padw(wq1_eff), padw(qo["w2"]), padw(ou["w1"]), padw(ou["w2"].T)], axis=0)
    post_w = jnp.pad(post_w, ((0, POST_W_ROWS - post_w.shape[0]), (0, 0))).astype(jnp.bfloat16)

    return dict(pre_w=pre_w, vecs=vecs, bits=bits, qtab=qtab, post_w=post_w)


# ----------------------------------------------------------------------------
# Full forward pass: one fused pallas_call
# ----------------------------------------------------------------------------
def forward(packed, encoded_features):
    # TODO(synk): smiles_encoder.encode_to_tensor (string featurization) has no Pallas
    # equivalent; the kernel takes the already-encoded feature tensor as input.
    bsz = encoded_features.shape[0]
    bp = max(SUBLANE, ((bsz + SUBLANE - 1) // SUBLANE) * SUBLANE)
    x = jnp.pad(encoded_features.astype(jnp.float32), ((0, bp - bsz), (0, 0)))

    out = pl.pallas_call(
        _fused_forward_kernel,
        out_shape=jax.ShapeDtypeStruct((bp, OUTPUT_DIM), jnp.float32),
        in_specs=[pl.BlockSpec(memory_space=pltpu.MemorySpace.VMEM)] * 6,
        out_specs=pl.BlockSpec(memory_space=pltpu.MemorySpace.VMEM),
    )(x, packed["pre_w"], packed["vecs"], packed["bits"],
      packed["qtab"], packed["post_w"])
    return out[:bsz]


# ----------------------------------------------------------------------------
if __name__ == "__main__":
    root = jax.random.PRNGKey(0)
    k_params, k_input = jax.random.split(root)

    params = init_params(k_params)
    packed = pack_params(params)   # one-time offline prep (unitaries + packed slabs)

    # "encoded_features" = smiles_encoder.encode_to_tensor(smiles, concentrations)
    encoded_features = jax.random.normal(k_input, (BATCH, FEATURE_SIZE), jnp.float32)

    out = jax.jit(forward)(packed, encoded_features)
    out = jax.block_until_ready(out)
    assert out.shape == (BATCH, OUTPUT_DIM) and out.dtype == jnp.float32
    print("KERNEL_OK")
</pallas_src>

<mosaic_0001>
module attributes {stable_mosaic.version = 11 : i64} {
  func.func @_fused_forward_kernel(%arg0: memref<8x64xf32, #tpu.memory_space<vmem>>, %arg1: memref<192x32xbf16, #tpu.memory_space<vmem>>, %arg2: memref<24x32xf32, #tpu.memory_space<vmem>>, %arg3: memref<8x512xf32, #tpu.memory_space<vmem>>, %arg4: memref<768x512xbf16, #tpu.memory_space<vmem>>, %arg5: memref<320x32xbf16, #tpu.memory_space<vmem>>, %arg6: memref<8x1xf32, #tpu.memory_space<vmem>>) attributes {dimension_semantics = [], scalar_prefetch = 0 : i64, scratch_operands = 0 : i64, tpu.core_type = #tpu.core_type<tc>} {
    %c0 = arith.constant 0 : index
    %c0_0 = arith.constant 0 : index
    %0 = vector.load %arg2[%c0, %c0_0] : memref<24x32xf32, #tpu.memory_space<vmem>>, vector<24x32xf32>
    %c0_1 = arith.constant 0 : index
    %c0_2 = arith.constant 0 : index
    %1 = vector.load %arg3[%c0_1, %c0_2] : memref<8x512xf32, #tpu.memory_space<vmem>>, vector<8x512xf32>
    %c0_3 = arith.constant 0 : index
    %c0_4 = arith.constant 0 : index
    %2 = vector.load %arg0[%c0_3, %c0_4] : memref<8x64xf32, #tpu.memory_space<vmem>>, vector<8x64xf32>
    %c0_5 = arith.constant 0 : index
    %c0_6 = arith.constant 0 : index
    %3 = vector.load %arg1[%c0_5, %c0_6] : memref<192x32xbf16, #tpu.memory_space<vmem>>, vector<64x32xbf16>
    %4 = arith.truncf %2 : vector<8x64xf32> to vector<8x64xbf16>
    %cst = arith.constant dense<0.000000e+00> : vector<8x32xf32>
    %5 = tpu.matmul %4, %3, %cst {dimension_numbers = #tpu.dot_dimension_numbers<[1], [0], [0], [1], [0, 0, 1, 1], [], []>} : vector<8x64xbf16>, vector<64x32xbf16>, vector<8x32xf32> -> vector<8x32xf32>
    %6 = vector.extract_strided_slice %0 {offsets = [0, 0], sizes = [1, 32], strides = [1, 1]} : vector<24x32xf32> to vector<1x32xf32>
    %7 = vector.broadcast %6 : vector<1x32xf32> to vector<8x32xf32>
    %8 = arith.addf %5, %7 : vector<8x32xf32>
    %cst_7 = arith.constant dense<0.000000e+00> : vector<8xf32>
    %9 = vector.multi_reduction <add>, %8, %cst_7 [1] : vector<8x32xf32> to vector<8xf32>
    %10 = vector.shape_cast %9 : vector<8xf32> to vector<8x1xf32>
    %cst_8 = arith.constant 3.200000e+01 : f32
    %11 = vector.broadcast %cst_8 : f32 to vector<8x1xf32>
    %12 = arith.divf %10, %11 : vector<8x1xf32>
    %13 = vector.broadcast %12 : vector<8x1xf32> to vector<8x32xf32>
    %14 = arith.subf %8, %13 : vector<8x32xf32>
    %15 = arith.mulf %14, %14 : vector<8x32xf32>
    %cst_9 = arith.constant dense<0.000000e+00> : vector<8xf32>
    %16 = vector.multi_reduction <add>, %15, %cst_9 [1] : vector<8x32xf32> to vector<8xf32>
    %17 = vector.shape_cast %16 : vector<8xf32> to vector<8x1xf32>
    %cst_10 = arith.constant 3.200000e+01 : f32
    %18 = vector.broadcast %cst_10 : f32 to vector<8x1xf32>
    %19 = arith.divf %17, %18 : vector<8x1xf32>
    %20 = vector.broadcast %12 : vector<8x1xf32> to vector<8x32xf32>
    %21 = arith.subf %8, %20 : vector<8x32xf32>
    %cst_11 = arith.constant 9.99999974E-6 : f32
    %22 = vector.broadcast %cst_11 : f32 to vector<8x1xf32>
    %23 = arith.addf %19, %22 : vector<8x1xf32>
    %24 = math.rsqrt %23 : vector<8x1xf32>
    %25 = vector.broadcast %24 : vector<8x1xf32> to vector<8x32xf32>
    %26 = arith.mulf %21, %25 : vector<8x32xf32>
    %27 = vector.extract_strided_slice %0 {offsets = [1, 0], sizes = [1, 32], strides = [1, 1]} : vector<24x32xf32> to vector<1x32xf32>
    %28 = vector.broadcast %27 : vector<1x32xf32> to vector<8x32xf32>
    %29 = arith.mulf %26, %28 : vector<8x32xf32>
    %30 = vector.extract_strided_slice %0 {offsets = [2, 0], sizes = [1, 32], strides = [1, 1]} : vector<24x32xf32> to vector<1x32xf32>
    %31 = vector.broadcast %30 : vector<1x32xf32> to vector<8x32xf32>
    %32 = arith.addf %29, %31 : vector<8x32xf32>
    %33 = arith.negf %32 : vector<8x32xf32>
    %34 = math.exp %33 : vector<8x32xf32>
    %cst_12 = arith.constant 1.000000e+00 : f32
    %35 = vector.broadcast %cst_12 : f32 to vector<8x32xf32>
    %36 = arith.addf %35, %34 : vector<8x32xf32>
    %37 = arith.divf %35, %36 : vector<8x32xf32>
    %38 = arith.mulf %32, %37 : vector<8x32xf32>
    %c64 = arith.constant 64 : index
    %c0_13 = arith.constant 0 : index
    %39 = vector.load %arg1[%c64, %c0_13] : memref<192x32xbf16, #tpu.memory_space<vmem>>, vector<32x32xbf16>
    %40 = arith.truncf %38 : vector<8x32xf32> to vector<8x32xbf16>
    %cst_14 = arith.constant dense<0.000000e+00> : vector<8x32xf32>
    %41 = tpu.matmul %40, %39, %cst_14 {dimension_numbers = #tpu.dot_dimension_numbers<[1], [0], [0], [1], [0, 0, 1, 1], [], []>} : vector<8x32xbf16>, vector<32x32xbf16>, vector<8x32xf32> -> vector<8x32xf32>
    %42 = vector.extract_strided_slice %0 {offsets = [3, 0], sizes = [1, 32], strides = [1, 1]} : vector<24x32xf32> to vector<1x32xf32>
    %43 = vector.broadcast %42 : vector<1x32xf32> to vector<8x32xf32>
    %44 = arith.addf %41, %43 : vector<8x32xf32>
    %cst_15 = arith.constant dense<0.000000e+00> : vector<8xf32>
    %45 = vector.multi_reduction <add>, %44, %cst_15 [1] : vector<8x32xf32> to vector<8xf32>
    %46 = vector.shape_cast %45 : vector<8xf32> to vector<8x1xf32>
    %cst_16 = arith.constant 3.200000e+01 : f32
    %47 = vector.broadcast %cst_16 : f32 to vector<8x1xf32>
    %48 = arith.divf %46, %47 : vector<8x1xf32>
    %49 = vector.broadcast %48 : vector<8x1xf32> to vector<8x32xf32>
    %50 = arith.subf %44, %49 : vector<8x32xf32>
    %51 = arith.mulf %50, %50 : vector<8x32xf32>
    %cst_17 = arith.constant dense<0.000000e+00> : vector<8xf32>
    %52 = vector.multi_reduction <add>, %51, %cst_17 [1] : vector<8x32xf32> to vector<8xf32>
    %53 = vector.shape_cast %52 : vector<8xf32> to vector<8x1xf32>
    %cst_18 = arith.constant 3.200000e+01 : f32
    %54 = vector.broadcast %cst_18 : f32 to vector<8x1xf32>
    %55 = arith.divf %53, %54 : vector<8x1xf32>
    %56 = vector.broadcast %48 : vector<8x1xf32> to vector<8x32xf32>
    %57 = arith.subf %44, %56 : vector<8x32xf32>
    %cst_19 = arith.constant 9.99999974E-6 : f32
    %58 = vector.broadcast %cst_19 : f32 to vector<8x1xf32>
    %59 = arith.addf %55, %58 : vector<8x1xf32>
    %60 = math.rsqrt %59 : vector<8x1xf32>
    %61 = vector.broadcast %60 : vector<8x1xf32> to vector<8x32xf32>
    %62 = arith.mulf %57, %61 : vector<8x32xf32>
    %63 = vector.extract_strided_slice %0 {offsets = [4, 0], sizes = [1, 32], strides = [1, 1]} : vector<24x32xf32> to vector<1x32xf32>
    %64 = vector.broadcast %63 : vector<1x32xf32> to vector<8x32xf32>
    %65 = arith.mulf %62, %64 : vector<8x32xf32>
    %66 = vector.extract_strided_slice %0 {offsets = [5, 0], sizes = [1, 32], strides = [1, 1]} : vector<24x32xf32> to vector<1x32xf32>
    %67 = vector.broadcast %66 : vector<1x32xf32> to vector<8x32xf32>
    %68 = arith.addf %65, %67 : vector<8x32xf32>
    %c96 = arith.constant 96 : index
    %c0_20 = arith.constant 0 : index
    %69 = vector.load %arg1[%c96, %c0_20] : memref<192x32xbf16, #tpu.memory_space<vmem>>, vector<32x16xbf16>
    %70 = arith.truncf %68 : vector<8x32xf32> to vector<8x32xbf16>
    %cst_21 = arith.constant dense<0.000000e+00> : vector<8x16xf32>
    %71 = tpu.matmul %70, %69, %cst_21 {dimension_numbers = #tpu.dot_dimension_numbers<[1], [0], [0], [1], [0, 0, 1, 1], [], []>} : vector<8x32xbf16>, vector<32x16xbf16>, vector<8x16xf32> -> vector<8x16xf32>
    %72 = vector.extract_strided_slice %0 {offsets = [6, 0], sizes = [1, 16], strides = [1, 1]} : vector<24x32xf32> to vector<1x16xf32>
    %73 = vector.broadcast %72 : vector<1x16xf32> to vector<8x16xf32>
    %74 = arith.addf %71, %73 : vector<8x16xf32>
    %cst_22 = arith.constant dense<0.000000e+00> : vector<8xf32>
    %75 = vector.multi_reduction <add>, %74, %cst_22 [1] : vector<8x16xf32> to vector<8xf32>
    %76 = vector.shape_cast %75 : vector<8xf32> to vector<8x1xf32>
    %cst_23 = arith.constant 1.600000e+01 : f32
    %77 = vector.broadcast %cst_23 : f32 to vector<8x1xf32>
    %78 = arith.divf %76, %77 : vector<8x1xf32>
    %79 = vector.broadcast %78 : vector<8x1xf32> to vector<8x16xf32>
    %80 = arith.subf %74, %79 : vector<8x16xf32>
    %81 = arith.mulf %80, %80 : vector<8x16xf32>
    %cst_24 = arith.constant dense<0.000000e+00> : vector<8xf32>
    %82 = vector.multi_reduction <add>, %81, %cst_24 [1] : vector<8x16xf32> to vector<8xf32>
    %83 = vector.shape_cast %82 : vector<8xf32> to vector<8x1xf32>
    %cst_25 = arith.constant 1.600000e+01 : f32
    %84 = vector.broadcast %cst_25 : f32 to vector<8x1xf32>
    %85 = arith.divf %83, %84 : vector<8x1xf32>
    %86 = vector.broadcast %78 : vector<8x1xf32> to vector<8x16xf32>
    %87 = arith.subf %74, %86 : vector<8x16xf32>
    %cst_26 = arith.constant 9.99999974E-6 : f32
    %88 = vector.broadcast %cst_26 : f32 to vector<8x1xf32>
    %89 = arith.addf %85, %88 : vector<8x1xf32>
    %90 = math.rsqrt %89 : vector<8x1xf32>
    %91 = vector.broadcast %90 : vector<8x1xf32> to vector<8x16xf32>
    %92 = arith.mulf %87, %91 : vector<8x16xf32>
    %93 = vector.extract_strided_slice %0 {offsets = [7, 0], sizes = [1, 16], strides = [1, 1]} : vector<24x32xf32> to vector<1x16xf32>
    %94 = vector.broadcast %93 : vector<1x16xf32> to vector<8x16xf32>
    %95 = arith.mulf %92, %94 : vector<8x16xf32>
    %96 = vector.extract_strided_slice %0 {offsets = [8, 0], sizes = [1, 16], strides = [1, 1]} : vector<24x32xf32> to vector<1x16xf32>
    %97 = vector.broadcast %96 : vector<1x16xf32> to vector<8x16xf32>
    %98 = arith.addf %95, %97 : vector<8x16xf32>
    %99 = arith.negf %98 : vector<8x16xf32>
    %100 = math.exp %99 : vector<8x16xf32>
    %cst_27 = arith.constant 1.000000e+00 : f32
    %101 = vector.broadcast %cst_27 : f32 to vector<8x16xf32>
    %102 = arith.addf %101, %100 : vector<8x16xf32>
    %103 = arith.divf %101, %102 : vector<8x16xf32>
    %104 = arith.mulf %98, %103 : vector<8x16xf32>
    %c128 = arith.constant 128 : index
    %c0_28 = arith.constant 0 : index
    %105 = vector.load %arg1[%c128, %c0_28] : memref<192x32xbf16, #tpu.memory_space<vmem>>, vector<16x32xbf16>
    %106 = arith.truncf %104 : vector<8x16xf32> to vector<8x16xbf16>
    %cst_29 = arith.constant dense<0.000000e+00> : vector<8x32xf32>
    %107 = tpu.matmul %106, %105, %cst_29 {dimension_numbers = #tpu.dot_dimension_numbers<[1], [0], [0], [1], [0, 0, 1, 1], [], []>} : vector<8x16xbf16>, vector<16x32xbf16>, vector<8x32xf32> -> vector<8x32xf32>
    %108 = vector.extract_strided_slice %0 {offsets = [9, 0], sizes = [1, 32], strides = [1, 1]} : vector<24x32xf32> to vector<1x32xf32>
    %109 = vector.broadcast %108 : vector<1x32xf32> to vector<8x32xf32>
    %110 = arith.addf %107, %109 : vector<8x32xf32>
    %cst_30 = arith.constant dense<0.000000e+00> : vector<8xf32>
    %111 = vector.multi_reduction <add>, %110, %cst_30 [1] : vector<8x32xf32> to vector<8xf32>
    %112 = vector.shape_cast %111 : vector<8xf32> to vector<8x1xf32>
    %cst_31 = arith.constant 3.200000e+01 : f32
    %113 = vector.broadcast %cst_31 : f32 to vector<8x1xf32>
    %114 = arith.divf %112, %113 : vector<8x1xf32>
    %115 = vector.broadcast %114 : vector<8x1xf32> to vector<8x32xf32>
    %116 = arith.subf %110, %115 : vector<8x32xf32>
    %117 = arith.mulf %116, %116 : vector<8x32xf32>
    %cst_32 = arith.constant dense<0.000000e+00> : vector<8xf32>
    %118 = vector.multi_reduction <add>, %117, %cst_32 [1] : vector<8x32xf32> to vector<8xf32>
    %119 = vector.shape_cast %118 : vector<8xf32> to vector<8x1xf32>
    %cst_33 = arith.constant 3.200000e+01 : f32
    %120 = vector.broadcast %cst_33 : f32 to vector<8x1xf32>
    %121 = arith.divf %119, %120 : vector<8x1xf32>
    %122 = vector.broadcast %114 : vector<8x1xf32> to vector<8x32xf32>
    %123 = arith.subf %110, %122 : vector<8x32xf32>
    %cst_34 = arith.constant 9.99999974E-6 : f32
    %124 = vector.broadcast %cst_34 : f32 to vector<8x1xf32>
    %125 = arith.addf %121, %124 : vector<8x1xf32>
    %126 = math.rsqrt %125 : vector<8x1xf32>
    %127 = vector.broadcast %126 : vector<8x1xf32> to vector<8x32xf32>
    %128 = arith.mulf %123, %127 : vector<8x32xf32>
    %129 = vector.extract_strided_slice %0 {offsets = [10, 0], sizes = [1, 32], strides = [1, 1]} : vector<24x32xf32> to vector<1x32xf32>
    %130 = vector.broadcast %129 : vector<1x32xf32> to vector<8x32xf32>
    %131 = arith.mulf %128, %130 : vector<8x32xf32>
    %132 = vector.extract_strided_slice %0 {offsets = [11, 0], sizes = [1, 32], strides = [1, 1]} : vector<24x32xf32> to vector<1x32xf32>
    %133 = vector.broadcast %132 : vector<1x32xf32> to vector<8x32xf32>
    %134 = arith.addf %131, %133 : vector<8x32xf32>
    %135 = arith.negf %134 : vector<8x32xf32>
    %136 = math.exp %135 : vector<8x32xf32>
    %cst_35 = arith.constant 1.000000e+00 : f32
    %137 = vector.broadcast %cst_35 : f32 to vector<8x32xf32>
    %138 = arith.addf %137, %136 : vector<8x32xf32>
    %139 = arith.divf %137, %138 : vector<8x32xf32>
    %140 = arith.mulf %134, %139 : vector<8x32xf32>
    %c144 = arith.constant 144 : index
    %c0_36 = arith.constant 0 : index
    %141 = vector.load %arg1[%c144, %c0_36] : memref<192x32xbf16, #tpu.memory_space<vmem>>, vector<32x16xbf16>
    %142 = arith.truncf %140 : vector<8x32xf32> to vector<8x32xbf16>
    %cst_37 = arith.constant dense<0.000000e+00> : vector<8x16xf32>
    %143 = tpu.matmul %142, %141, %cst_37 {dimension_numbers = #tpu.dot_dimension_numbers<[1], [0], [0], [1], [0, 0, 1, 1], [], []>} : vector<8x32xbf16>, vector<32x16xbf16>, vector<8x16xf32> -> vector<8x16xf32>
    %144 = vector.extract_strided_slice %0 {offsets = [12, 0], sizes = [1, 16], strides = [1, 1]} : vector<24x32xf32> to vector<1x16xf32>
    %145 = vector.broadcast %144 : vector<1x16xf32> to vector<8x16xf32>
    %146 = arith.addf %143, %145 : vector<8x16xf32>
    %cst_38 = arith.constant dense<0.000000e+00> : vector<8xf32>
    %147 = vector.multi_reduction <add>, %146, %cst_38 [1] : vector<8x16xf32> to vector<8xf32>
    %148 = vector.shape_cast %147 : vector<8xf32> to vector<8x1xf32>
    %cst_39 = arith.constant 1.600000e+01 : f32
    %149 = vector.broadcast %cst_39 : f32 to vector<8x1xf32>
    %150 = arith.divf %148, %149 : vector<8x1xf32>
    %151 = vector.broadcast %150 : vector<8x1xf32> to vector<8x16xf32>
    %152 = arith.subf %146, %151 : vector<8x16xf32>
    %153 = arith.mulf %152, %152 : vector<8x16xf32>
    %cst_40 = arith.constant dense<0.000000e+00> : vector<8xf32>
    %154 = vector.multi_reduction <add>, %153, %cst_40 [1] : vector<8x16xf32> to vector<8xf32>
    %155 = vector.shape_cast %154 : vector<8xf32> to vector<8x1xf32>
    %cst_41 = arith.constant 1.600000e+01 : f32
    %156 = vector.broadcast %cst_41 : f32 to vector<8x1xf32>
    %157 = arith.divf %155, %156 : vector<8x1xf32>
    %158 = vector.broadcast %150 : vector<8x1xf32> to vector<8x16xf32>
    %159 = arith.subf %146, %158 : vector<8x16xf32>
    %cst_42 = arith.constant 9.99999974E-6 : f32
    %160 = vector.broadcast %cst_42 : f32 to vector<8x1xf32>
    %161 = arith.addf %157, %160 : vector<8x1xf32>
    %162 = math.rsqrt %161 : vector<8x1xf32>
    %163 = vector.broadcast %162 : vector<8x1xf32> to vector<8x16xf32>
    %164 = arith.mulf %159, %163 : vector<8x16xf32>
    %165 = vector.extract_strided_slice %0 {offsets = [13, 0], sizes = [1, 16], strides = [1, 1]} : vector<24x32xf32> to vector<1x16xf32>
    %166 = vector.broadcast %165 : vector<1x16xf32> to vector<8x16xf32>
    %167 = arith.mulf %164, %166 : vector<8x16xf32>
    %168 = vector.extract_strided_slice %0 {offsets = [14, 0], sizes = [1, 16], strides = [1, 1]} : vector<24x32xf32> to vector<1x16xf32>
    %169 = vector.broadcast %168 : vector<1x16xf32> to vector<8x16xf32>
    %170 = arith.addf %167, %169 : vector<8x16xf32>
    %171 = arith.negf %170 : vector<8x16xf32>
    %172 = math.exp %171 : vector<8x16xf32>
    %cst_43 = arith.constant 1.000000e+00 : f32
    %173 = vector.broadcast %cst_43 : f32 to vector<8x16xf32>
    %174 = arith.addf %173, %172 : vector<8x16xf32>
    %175 = arith.divf %173, %174 : vector<8x16xf32>
    %176 = arith.mulf %170, %175 : vector<8x16xf32>
    %c176 = arith.constant 176 : index
    %c0_44 = arith.constant 0 : index
    %177 = vector.load %arg1[%c176, %c0_44] : memref<192x32xbf16, #tpu.memory_space<vmem>>, vector<16x8xbf16>
    %178 = arith.truncf %176 : vector<8x16xf32> to vector<8x16xbf16>
    %cst_45 = arith.constant dense<0.000000e+00> : vector<8x8xf32>
    %179 = tpu.matmul %178, %177, %cst_45 {dimension_numbers = #tpu.dot_dimension_numbers<[1], [0], [0], [1], [0, 0, 1, 1], [], []>} : vector<8x16xbf16>, vector<16x8xbf16>, vector<8x8xf32> -> vector<8x8xf32>
    %180 = vector.extract_strided_slice %0 {offsets = [15, 0], sizes = [1, 8], strides = [1, 1]} : vector<24x32xf32> to vector<1x8xf32>
    %181 = vector.broadcast %180 : vector<1x8xf32> to vector<8x8xf32>
    %182 = arith.addf %179, %181 : vector<8x8xf32>
    %cst_46 = arith.constant dense<0.000000e+00> : vector<8xf32>
    %183 = vector.multi_reduction <add>, %182, %cst_46 [1] : vector<8x8xf32> to vector<8xf32>
    %184 = vector.shape_cast %183 : vector<8xf32> to vector<8x1xf32>
    %cst_47 = arith.constant 8.000000e+00 : f32
    %185 = vector.broadcast %cst_47 : f32 to vector<8x1xf32>
    %186 = arith.divf %184, %185 : vector<8x1xf32>
    %187 = vector.broadcast %186 : vector<8x1xf32> to vector<8x8xf32>
    %188 = arith.subf %182, %187 : vector<8x8xf32>
    %189 = arith.mulf %188, %188 : vector<8x8xf32>
    %cst_48 = arith.constant dense<0.000000e+00> : vector<8xf32>
    %190 = vector.multi_reduction <add>, %189, %cst_48 [1] : vector<8x8xf32> to vector<8xf32>
    %191 = vector.shape_cast %190 : vector<8xf32> to vector<8x1xf32>
    %cst_49 = arith.constant 8.000000e+00 : f32
    %192 = vector.broadcast %cst_49 : f32 to vector<8x1xf32>
    %193 = arith.divf %191, %192 : vector<8x1xf32>
    %194 = vector.broadcast %186 : vector<8x1xf32> to vector<8x8xf32>
    %195 = arith.subf %182, %194 : vector<8x8xf32>
    %cst_50 = arith.constant 9.99999974E-6 : f32
    %196 = vector.broadcast %cst_50 : f32 to vector<8x1xf32>
    %197 = arith.addf %193, %196 : vector<8x1xf32>
    %198 = math.rsqrt %197 : vector<8x1xf32>
    %199 = vector.broadcast %198 : vector<8x1xf32> to vector<8x8xf32>
    %200 = arith.mulf %195, %199 : vector<8x8xf32>
    %201 = vector.extract_strided_slice %0 {offsets = [16, 0], sizes = [1, 8], strides = [1, 1]} : vector<24x32xf32> to vector<1x8xf32>
    %202 = vector.broadcast %201 : vector<1x8xf32> to vector<8x8xf32>
    %203 = arith.mulf %200, %202 : vector<8x8xf32>
    %204 = vector.extract_strided_slice %0 {offsets = [17, 0], sizes = [1, 8], strides = [1, 1]} : vector<24x32xf32> to vector<1x8xf32>
    %205 = vector.broadcast %204 : vector<1x8xf32> to vector<8x8xf32>
    %206 = arith.addf %203, %205 : vector<8x8xf32>
    %cst_51 = arith.constant 5.000000e-01 : f32
    %207 = vector.broadcast %cst_51 : f32 to vector<8x8xf32>
    %208 = arith.mulf %207, %206 : vector<8x8xf32>
    %209 = math.cos %208 : vector<8x8xf32>
    %cst_52 = arith.constant 5.000000e-01 : f32
    %210 = vector.broadcast %cst_52 : f32 to vector<8x8xf32>
    %211 = arith.mulf %210, %206 : vector<8x8xf32>
    %212 = math.sin %211 : vector<8x8xf32>
    %213 = vector.extract_strided_slice %1 {offsets = [0, 0], sizes = [8, 256], strides = [1, 1]} : vector<8x512xf32> to vector<8x256xf32>
    %214 = vector.extract_strided_slice %209 {offsets = [0, 0], sizes = [8, 1], strides = [1, 1]} : vector<8x8xf32> to vector<8x1xf32>
    %215 = vector.extract_strided_slice %213 {offsets = [0, 0], sizes = [1, 256], strides = [1, 1]} : vector<8x256xf32> to vector<1x256xf32>
    %216 = vector.extract_strided_slice %212 {offsets = [0, 0], sizes = [8, 1], strides = [1, 1]} : vector<8x8xf32> to vector<8x1xf32>
    %217 = vector.extract_strided_slice %209 {offsets = [0, 0], sizes = [8, 1], strides = [1, 1]} : vector<8x8xf32> to vector<8x1xf32>
    %218 = arith.subf %216, %217 : vector<8x1xf32>
    %219 = vector.broadcast %215 : vector<1x256xf32> to vector<8x256xf32>
    %220 = vector.broadcast %218 : vector<8x1xf32> to vector<8x256xf32>
    %221 = arith.mulf %219, %220 : vector<8x256xf32>
    %222 = vector.broadcast %214 : vector<8x1xf32> to vector<8x256xf32>
    %223 = arith.addf %222, %221 : vector<8x256xf32>
    %224 = vector.extract_strided_slice %209 {offsets = [0, 1], sizes = [8, 1], strides = [1, 1]} : vector<8x8xf32> to vector<8x1xf32>
    %225 = vector.extract_strided_slice %213 {offsets = [1, 0], sizes = [1, 256], strides = [1, 1]} : vector<8x256xf32> to vector<1x256xf32>
    %226 = vector.extract_strided_slice %212 {offsets = [0, 1], sizes = [8, 1], strides = [1, 1]} : vector<8x8xf32> to vector<8x1xf32>
    %227 = vector.extract_strided_slice %209 {offsets = [0, 1], sizes = [8, 1], strides = [1, 1]} : vector<8x8xf32> to vector<8x1xf32>
    %228 = arith.subf %226, %227 : vector<8x1xf32>
    %229 = vector.broadcast %225 : vector<1x256xf32> to vector<8x256xf32>
    %230 = vector.broadcast %228 : vector<8x1xf32> to vector<8x256xf32>
    %231 = arith.mulf %229, %230 : vector<8x256xf32>
    %232 = vector.broadcast %224 : vector<8x1xf32> to vector<8x256xf32>
    %233 = arith.addf %232, %231 : vector<8x256xf32>
    %234 = arith.mulf %223, %233 : vector<8x256xf32>
    %235 = vector.extract_strided_slice %209 {offsets = [0, 2], sizes = [8, 1], strides = [1, 1]} : vector<8x8xf32> to vector<8x1xf32>
    %236 = vector.extract_strided_slice %213 {offsets = [2, 0], sizes = [1, 256], strides = [1, 1]} : vector<8x256xf32> to vector<1x256xf32>
    %237 = vector.extract_strided_slice %212 {offsets = [0, 2], sizes = [8, 1], strides = [1, 1]} : vector<8x8xf32> to vector<8x1xf32>
    %238 = vector.extract_strided_slice %209 {offsets = [0, 2], sizes = [8, 1], strides = [1, 1]} : vector<8x8xf32> to vector<8x1xf32>
    %239 = arith.subf %237, %238 : vector<8x1xf32>
    %240 = vector.broadcast %236 : vector<1x256xf32> to vector<8x256xf32>
    %241 = vector.broadcast %239 : vector<8x1xf32> to vector<8x256xf32>
    %242 = arith.mulf %240, %241 : vector<8x256xf32>
    %243 = vector.broadcast %235 : vector<8x1xf32> to vector<8x256xf32>
    %244 = arith.addf %243, %242 : vector<8x256xf32>
    %245 = arith.mulf %234, %244 : vector<8x256xf32>
    %246 = vector.extract_strided_slice %209 {offsets = [0, 3], sizes = [8, 1], strides = [1, 1]} : vector<8x8xf32> to vector<8x1xf32>
    %247 = vector.extract_strided_slice %213 {offsets = [3, 0], sizes = [1, 256], strides = [1, 1]} : vector<8x256xf32> to vector<1x256xf32>
    %248 = vector.extract_strided_slice %212 {offsets = [0, 3], sizes = [8, 1], strides = [1, 1]} : vector<8x8xf32> to vector<8x1xf32>
    %249 = vector.extract_strided_slice %209 {offsets = [0, 3], sizes = [8, 1], strides = [1, 1]} : vector<8x8xf32> to vector<8x1xf32>
    %250 = arith.subf %248, %249 : vector<8x1xf32>
    %251 = vector.broadcast %247 : vector<1x256xf32> to vector<8x256xf32>
    %252 = vector.broadcast %250 : vector<8x1xf32> to vector<8x256xf32>
    %253 = arith.mulf %251, %252 : vector<8x256xf32>
    %254 = vector.broadcast %246 : vector<8x1xf32> to vector<8x256xf32>
    %255 = arith.addf %254, %253 : vector<8x256xf32>
    %256 = arith.mulf %245, %255 : vector<8x256xf32>
    %257 = vector.extract_strided_slice %209 {offsets = [0, 4], sizes = [8, 1], strides = [1, 1]} : vector<8x8xf32> to vector<8x1xf32>
    %258 = vector.extract_strided_slice %213 {offsets = [4, 0], sizes = [1, 256], strides = [1, 1]} : vector<8x256xf32> to vector<1x256xf32>
    %259 = vector.extract_strided_slice %212 {offsets = [0, 4], sizes = [8, 1], strides = [1, 1]} : vector<8x8xf32> to vector<8x1xf32>
    %260 = vector.extract_strided_slice %209 {offsets = [0, 4], sizes = [8, 1], strides = [1, 1]} : vector<8x8xf32> to vector<8x1xf32>
    %261 = arith.subf %259, %260 : vector<8x1xf32>
    %262 = vector.broadcast %258 : vector<1x256xf32> to vector<8x256xf32>
    %263 = vector.broadcast %261 : vector<8x1xf32> to vector<8x256xf32>
    %264 = arith.mulf %262, %263 : vector<8x256xf32>
    %265 = vector.broadcast %257 : vector<8x1xf32> to vector<8x256xf32>
    %266 = arith.addf %265, %264 : vector<8x256xf32>
    %267 = arith.mulf %256, %266 : vector<8x256xf32>
    %268 = vector.extract_strided_slice %209 {offsets = [0, 5], sizes = [8, 1], strides = [1, 1]} : vector<8x8xf32> to vector<8x1xf32>
    %269 = vector.extract_strided_slice %213 {offsets = [5, 0], sizes = [1, 256], strides = [1, 1]} : vector<8x256xf32> to vector<1x256xf32>
    %270 = vector.extract_strided_slice %212 {offsets = [0, 5], sizes = [8, 1], strides = [1, 1]} : vector<8x8xf32> to vector<8x1xf32>
    %271 = vector.extract_strided_slice %209 {offsets = [0, 5], sizes = [8, 1], strides = [1, 1]} : vector<8x8xf32> to vector<8x1xf32>
    %272 = arith.subf %270, %271 : vector<8x1xf32>
    %273 = vector.broadcast %269 : vector<1x256xf32> to vector<8x256xf32>
    %274 = vector.broadcast %272 : vector<8x1xf32> to vector<8x256xf32>
    %275 = arith.mulf %273, %274 : vector<8x256xf32>
    %276 = vector.broadcast %268 : vector<8x1xf32> to vector<8x256xf32>
    %277 = arith.addf %276, %275 : vector<8x256xf32>
    %278 = arith.mulf %267, %277 : vector<8x256xf32>
    %279 = vector.extract_strided_slice %209 {offsets = [0, 6], sizes = [8, 1], strides = [1, 1]} : vector<8x8xf32> to vector<8x1xf32>
    %280 = vector.extract_strided_slice %213 {offsets = [6, 0], sizes = [1, 256], strides = [1, 1]} : vector<8x256xf32> to vector<1x256xf32>
    %281 = vector.extract_strided_slice %212 {offsets = [0, 6], sizes = [8, 1], strides = [1, 1]} : vector<8x8xf32> to vector<8x1xf32>
    %282 = vector.extract_strided_slice %209 {offsets = [0, 6], sizes = [8, 1], strides = [1, 1]} : vector<8x8xf32> to vector<8x1xf32>
    %283 = arith.subf %281, %282 : vector<8x1xf32>
    %284 = vector.broadcast %280 : vector<1x256xf32> to vector<8x256xf32>
    %285 = vector.broadcast %283 : vector<8x1xf32> to vector<8x256xf32>
    %286 = arith.mulf %284, %285 : vector<8x256xf32>
    %287 = vector.broadcast %279 : vector<8x1xf32> to vector<8x256xf32>
    %288 = arith.addf %287, %286 : vector<8x256xf32>
    %289 = arith.mulf %278, %288 : vector<8x256xf32>
    %290 = vector.extract_strided_slice %209 {offsets = [0, 7], sizes = [8, 1], strides = [1, 1]} : vector<8x8xf32> to vector<8x1xf32>
    %291 = vector.extract_strided_slice %213 {offsets = [7, 0], sizes = [1, 256], strides = [1, 1]} : vector<8x256xf32> to vector<1x256xf32>
    %292 = vector.extract_strided_slice %212 {offsets = [0, 7], sizes = [8, 1], strides = [1, 1]} : vector<8x8xf32> to vector<8x1xf32>
    %293 = vector.extract_strided_slice %209 {offsets = [0, 7], sizes = [8, 1], strides = [1, 1]} : vector<8x8xf32> to vector<8x1xf32>
    %294 = arith.subf %292, %293 : vector<8x1xf32>
    %295 = vector.broadcast %291 : vector<1x256xf32> to vector<8x256xf32>
    %296 = vector.broadcast %294 : vector<8x1xf32> to vector<8x256xf32>
    %297 = arith.mulf %295, %296 : vector<8x256xf32>
    %298 = vector.broadcast %290 : vector<8x1xf32> to vector<8x256xf32>
    %299 = arith.addf %298, %297 : vector<8x256xf32>
    %300 = arith.mulf %289, %299 : vector<8x256xf32>
    %301 = arith.truncf %300 : vector<8x256xf32> to vector<8x256xbf16>
    %c0_53 = arith.constant 0 : index
    %c0_54 = arith.constant 0 : index
    %302 = vector.load %arg4[%c0_53, %c0_54] : memref<768x512xbf16, #tpu.memory_space<vmem>>, vector<256x512xbf16>
    %cst_55 = arith.constant dense<0.000000e+00> : vector<8x512xf32>
    %303 = tpu.matmul %301, %302, %cst_55 {dimension_numbers = #tpu.dot_dimension_numbers<[1], [0], [0], [1], [0, 0, 1, 1], [], []>} : vector<8x256xbf16>, vector<256x512xbf16>, vector<8x512xf32> -> vector<8x512xf32>
    %cst_56 = arith.constant 5.000000e-01 : f32
    %304 = vector.broadcast %cst_56 : f32 to vector<8x8xf32>
    %305 = arith.mulf %304, %206 : vector<8x8xf32>
    %306 = vector.extract_strided_slice %0 {offsets = [18, 0], sizes = [1, 8], strides = [1, 1]} : vector<24x32xf32> to vector<1x8xf32>
    %307 = vector.broadcast %306 : vector<1x8xf32> to vector<8x8xf32>
    %308 = arith.mulf %305, %307 : vector<8x8xf32>
    %309 = math.cos %308 : vector<8x8xf32>
    %310 = math.sin %308 : vector<8x8xf32>
    %311 = vector.extract_strided_slice %1 {offsets = [0, 0], sizes = [1, 512], strides = [1, 1]} : vector<8x512xf32> to vector<1x512xf32>
    %cst_57 = arith.constant 2.000000e+00 : f32
    %312 = vector.broadcast %cst_57 : f32 to vector<1x512xf32>
    %313 = arith.mulf %312, %311 : vector<1x512xf32>
    %cst_58 = arith.constant 1.000000e+00 : f32
    %314 = vector.broadcast %cst_58 : f32 to vector<1x512xf32>
    %315 = arith.subf %313, %314 : vector<1x512xf32>
    %c128_i32 = arith.constant 128 : i32
    %316 = tpu.dynamic_rotate %303 by %c128_i32 dim 1 : vector<8x512xf32>, i32 -> vector<8x512xf32>
    %317 = vector.broadcast %311 : vector<1x512xf32> to vector<8x512xf32>
    %318 = arith.mulf %317, %316 : vector<8x512xf32>
    %cst_59 = arith.constant 1.000000e+00 : f32
    %319 = vector.broadcast %cst_59 : f32 to vector<1x512xf32>
    %320 = arith.subf %319, %311 : vector<1x512xf32>
    %c384_i32 = arith.constant 384 : i32
    %321 = tpu.dynamic_rotate %303 by %c384_i32 dim 1 : vector<8x512xf32>, i32 -> vector<8x512xf32>
    %322 = vector.broadcast %320 : vector<1x512xf32> to vector<8x512xf32>
    %323 = arith.mulf %322, %321 : vector<8x512xf32>
    %324 = arith.addf %318, %323 : vector<8x512xf32>
    %325 = vector.extract_strided_slice %309 {offsets = [0, 0], sizes = [8, 1], strides = [1, 1]} : vector<8x8xf32> to vector<8x1xf32>
    %326 = vector.broadcast %325 : vector<8x1xf32> to vector<8x512xf32>
    %327 = arith.mulf %326, %303 : vector<8x512xf32>
    %328 = vector.extract_strided_slice %310 {offsets = [0, 0], sizes = [8, 1], strides = [1, 1]} : vector<8x8xf32> to vector<8x1xf32>
    %329 = vector.broadcast %328 : vector<8x1xf32> to vector<8x512xf32>
    %330 = vector.broadcast %315 : vector<1x512xf32> to vector<8x512xf32>
    %331 = arith.mulf %329, %330 : vector<8x512xf32>
    %332 = arith.mulf %331, %324 : vector<8x512xf32>
    %333 = arith.addf %327, %332 : vector<8x512xf32>
    %334 = vector.extract_strided_slice %1 {offsets = [1, 0], sizes = [1, 512], strides = [1, 1]} : vector<8x512xf32> to vector<1x512xf32>
    %cst_60 = arith.constant 2.000000e+00 : f32
    %335 = vector.broadcast %cst_60 : f32 to vector<1x512xf32>
    %336 = arith.mulf %335, %334 : vector<1x512xf32>
    %cst_61 = arith.constant 1.000000e+00 : f32
    %337 = vector.broadcast %cst_61 : f32 to vector<1x512xf32>
    %338 = arith.subf %336, %337 : vector<1x512xf32>
    %c64_i32 = arith.constant 64 : i32
    %339 = tpu.dynamic_rotate %333 by %c64_i32 dim 1 : vector<8x512xf32>, i32 -> vector<8x512xf32>
    %340 = vector.broadcast %334 : vector<1x512xf32> to vector<8x512xf32>
    %341 = arith.mulf %340, %339 : vector<8x512xf32>
    %cst_62 = arith.constant 1.000000e+00 : f32
    %342 = vector.broadcast %cst_62 : f32 to vector<1x512xf32>
    %343 = arith.subf %342, %334 : vector<1x512xf32>
    %c448_i32 = arith.constant 448 : i32
    %344 = tpu.dynamic_rotate %333 by %c448_i32 dim 1 : vector<8x512xf32>, i32 -> vector<8x512xf32>
    %345 = vector.broadcast %343 : vector<1x512xf32> to vector<8x512xf32>
    %346 = arith.mulf %345, %344 : vector<8x512xf32>
    %347 = arith.addf %341, %346 : vector<8x512xf32>
    %348 = vector.extract_strided_slice %309 {offsets = [0, 1], sizes = [8, 1], strides = [1, 1]} : vector<8x8xf32> to vector<8x1xf32>
    %349 = vector.broadcast %348 : vector<8x1xf32> to vector<8x512xf32>
    %350 = arith.mulf %349, %333 : vector<8x512xf32>
    %351 = vector.extract_strided_slice %310 {offsets = [0, 1], sizes = [8, 1], strides = [1, 1]} : vector<8x8xf32> to vector<8x1xf32>
    %352 = vector.broadcast %351 : vector<8x1xf32> to vector<8x512xf32>
    %353 = vector.broadcast %338 : vector<1x512xf32> to vector<8x512xf32>
    %354 = arith.mulf %352, %353 : vector<8x512xf32>
    %355 = arith.mulf %354, %347 : vector<8x512xf32>
    %356 = arith.addf %350, %355 : vector<8x512xf32>
    %357 = vector.extract_strided_slice %1 {offsets = [2, 0], sizes = [1, 512], strides = [1, 1]} : vector<8x512xf32> to vector<1x512xf32>
    %cst_63 = arith.constant 2.000000e+00 : f32
    %358 = vector.broadcast %cst_63 : f32 to vector<1x512xf32>
    %359 = arith.mulf %358, %357 : vector<1x512xf32>
    %cst_64 = arith.constant 1.000000e+00 : f32
    %360 = vector.broadcast %cst_64 : f32 to vector<1x512xf32>
    %361 = arith.subf %359, %360 : vector<1x512xf32>
    %c32_i32 = arith.constant 32 : i32
    %362 = tpu.dynamic_rotate %356 by %c32_i32 dim 1 : vector<8x512xf32>, i32 -> vector<8x512xf32>
    %363 = vector.broadcast %357 : vector<1x512xf32> to vector<8x512xf32>
    %364 = arith.mulf %363, %362 : vector<8x512xf32>
    %cst_65 = arith.constant 1.000000e+00 : f32
    %365 = vector.broadcast %cst_65 : f32 to vector<1x512xf32>
    %366 = arith.subf %365, %357 : vector<1x512xf32>
    %c480_i32 = arith.constant 480 : i32
    %367 = tpu.dynamic_rotate %356 by %c480_i32 dim 1 : vector<8x512xf32>, i32 -> vector<8x512xf32>
    %368 = vector.broadcast %366 : vector<1x512xf32> to vector<8x512xf32>
    %369 = arith.mulf %368, %367 : vector<8x512xf32>
    %370 = arith.addf %364, %369 : vector<8x512xf32>
    %371 = vector.extract_strided_slice %309 {offsets = [0, 2], sizes = [8, 1], strides = [1, 1]} : vector<8x8xf32> to vector<8x1xf32>
    %372 = vector.broadcast %371 : vector<8x1xf32> to vector<8x512xf32>
    %373 = arith.mulf %372, %356 : vector<8x512xf32>
    %374 = vector.extract_strided_slice %310 {offsets = [0, 2], sizes = [8, 1], strides = [1, 1]} : vector<8x8xf32> to vector<8x1xf32>
    %375 = vector.broadcast %374 : vector<8x1xf32> to vector<8x512xf32>
    %376 = vector.broadcast %361 : vector<1x512xf32> to vector<8x512xf32>
    %377 = arith.mulf %375, %376 : vector<8x512xf32>
    %378 = arith.mulf %377, %370 : vector<8x512xf32>
    %379 = arith.addf %373, %378 : vector<8x512xf32>
    %380 = vector.extract_strided_slice %1 {offsets = [3, 0], sizes = [1, 512], strides = [1, 1]} : vector<8x512xf32> to vector<1x512xf32>
    %cst_66 = arith.constant 2.000000e+00 : f32
    %381 = vector.broadcast %cst_66 : f32 to vector<1x512xf32>
    %382 = arith.mulf %381, %380 : vector<1x512xf32>
    %cst_67 = arith.constant 1.000000e+00 : f32
    %383 = vector.broadcast %cst_67 : f32 to vector<1x512xf32>
    %384 = arith.subf %382, %383 : vector<1x512xf32>
    %c16_i32 = arith.constant 16 : i32
    %385 = tpu.dynamic_rotate %379 by %c16_i32 dim 1 : vector<8x512xf32>, i32 -> vector<8x512xf32>
    %386 = vector.broadcast %380 : vector<1x512xf32> to vector<8x512xf32>
    %387 = arith.mulf %386, %385 : vector<8x512xf32>
    %cst_68 = arith.constant 1.000000e+00 : f32
    %388 = vector.broadcast %cst_68 : f32 to vector<1x512xf32>
    %389 = arith.subf %388, %380 : vector<1x512xf32>
    %c496_i32 = arith.constant 496 : i32
    %390 = tpu.dynamic_rotate %379 by %c496_i32 dim 1 : vector<8x512xf32>, i32 -> vector<8x512xf32>
    %391 = vector.broadcast %389 : vector<1x512xf32> to vector<8x512xf32>
    %392 = arith.mulf %391, %390 : vector<8x512xf32>
    %393 = arith.addf %387, %392 : vector<8x512xf32>
    %394 = vector.extract_strided_slice %309 {offsets = [0, 3], sizes = [8, 1], strides = [1, 1]} : vector<8x8xf32> to vector<8x1xf32>
    %395 = vector.broadcast %394 : vector<8x1xf32> to vector<8x512xf32>
    %396 = arith.mulf %395, %379 : vector<8x512xf32>
    %397 = vector.extract_strided_slice %310 {offsets = [0, 3], sizes = [8, 1], strides = [1, 1]} : vector<8x8xf32> to vector<8x1xf32>
    %398 = vector.broadcast %397 : vector<8x1xf32> to vector<8x512xf32>
    %399 = vector.broadcast %384 : vector<1x512xf32> to vector<8x512xf32>
    %400 = arith.mulf %398, %399 : vector<8x512xf32>
    %401 = arith.mulf %400, %393 : vector<8x512xf32>
    %402 = arith.addf %396, %401 : vector<8x512xf32>
    %403 = vector.extract_strided_slice %1 {offsets = [4, 0], sizes = [1, 512], strides = [1, 1]} : vector<8x512xf32> to vector<1x512xf32>
    %cst_69 = arith.constant 2.000000e+00 : f32
    %404 = vector.broadcast %cst_69 : f32 to vector<1x512xf32>
    %405 = arith.mulf %404, %403 : vector<1x512xf32>
    %cst_70 = arith.constant 1.000000e+00 : f32
    %406 = vector.broadcast %cst_70 : f32 to vector<1x512xf32>
    %407 = arith.subf %405, %406 : vector<1x512xf32>
    %c8_i32 = arith.constant 8 : i32
    %408 = tpu.dynamic_rotate %402 by %c8_i32 dim 1 : vector<8x512xf32>, i32 -> vector<8x512xf32>
    %409 = vector.broadcast %403 : vector<1x512xf32> to vector<8x512xf32>
    %410 = arith.mulf %409, %408 : vector<8x512xf32>
    %cst_71 = arith.constant 1.000000e+00 : f32
    %411 = vector.broadcast %cst_71 : f32 to vector<1x512xf32>
    %412 = arith.subf %411, %403 : vector<1x512xf32>
    %c504_i32 = arith.constant 504 : i32
    %413 = tpu.dynamic_rotate %402 by %c504_i32 dim 1 : vector<8x512xf32>, i32 -> vector<8x512xf32>
    %414 = vector.broadcast %412 : vector<1x512xf32> to vector<8x512xf32>
    %415 = arith.mulf %414, %413 : vector<8x512xf32>
    %416 = arith.addf %410, %415 : vector<8x512xf32>
    %417 = vector.extract_strided_slice %309 {offsets = [0, 4], sizes = [8, 1], strides = [1, 1]} : vector<8x8xf32> to vector<8x1xf32>
    %418 = vector.broadcast %417 : vector<8x1xf32> to vector<8x512xf32>
    %419 = arith.mulf %418, %402 : vector<8x512xf32>
    %420 = vector.extract_strided_slice %310 {offsets = [0, 4], sizes = [8, 1], strides = [1, 1]} : vector<8x8xf32> to vector<8x1xf32>
    %421 = vector.broadcast %420 : vector<8x1xf32> to vector<8x512xf32>
    %422 = vector.broadcast %407 : vector<1x512xf32> to vector<8x512xf32>
    %423 = arith.mulf %421, %422 : vector<8x512xf32>
    %424 = arith.mulf %423, %416 : vector<8x512xf32>
    %425 = arith.addf %419, %424 : vector<8x512xf32>
    %426 = vector.extract_strided_slice %1 {offsets = [5, 0], sizes = [1, 512], strides = [1, 1]} : vector<8x512xf32> to vector<1x512xf32>
    %cst_72 = arith.constant 2.000000e+00 : f32
    %427 = vector.broadcast %cst_72 : f32 to vector<1x512xf32>
    %428 = arith.mulf %427, %426 : vector<1x512xf32>
    %cst_73 = arith.constant 1.000000e+00 : f32
    %429 = vector.broadcast %cst_73 : f32 to vector<1x512xf32>
    %430 = arith.subf %428, %429 : vector<1x512xf32>
    %c4_i32 = arith.constant 4 : i32
    %431 = tpu.dynamic_rotate %425 by %c4_i32 dim 1 : vector<8x512xf32>, i32 -> vector<8x512xf32>
    %432 = vector.broadcast %426 : vector<1x512xf32> to vector<8x512xf32>
    %433 = arith.mulf %432, %431 : vector<8x512xf32>
    %cst_74 = arith.constant 1.000000e+00 : f32
    %434 = vector.broadcast %cst_74 : f32 to vector<1x512xf32>
    %435 = arith.subf %434, %426 : vector<1x512xf32>
    %c508_i32 = arith.constant 508 : i32
    %436 = tpu.dynamic_rotate %425 by %c508_i32 dim 1 : vector<8x512xf32>, i32 -> vector<8x512xf32>
    %437 = vector.broadcast %435 : vector<1x512xf32> to vector<8x512xf32>
    %438 = arith.mulf %437, %436 : vector<8x512xf32>
    %439 = arith.addf %433, %438 : vector<8x512xf32>
    %440 = vector.extract_strided_slice %309 {offsets = [0, 5], sizes = [8, 1], strides = [1, 1]} : vector<8x8xf32> to vector<8x1xf32>
    %441 = vector.broadcast %440 : vector<8x1xf32> to vector<8x512xf32>
    %442 = arith.mulf %441, %425 : vector<8x512xf32>
    %443 = vector.extract_strided_slice %310 {offsets = [0, 5], sizes = [8, 1], strides = [1, 1]} : vector<8x8xf32> to vector<8x1xf32>
    %444 = vector.broadcast %443 : vector<8x1xf32> to vector<8x512xf32>
    %445 = vector.broadcast %430 : vector<1x512xf32> to vector<8x512xf32>
    %446 = arith.mulf %444, %445 : vector<8x512xf32>
    %447 = arith.mulf %446, %439 : vector<8x512xf32>
    %448 = arith.addf %442, %447 : vector<8x512xf32>
    %449 = vector.extract_strided_slice %1 {offsets = [6, 0], sizes = [1, 512], strides = [1, 1]} : vector<8x512xf32> to vector<1x512xf32>
    %cst_75 = arith.constant 2.000000e+00 : f32
    %450 = vector.broadcast %cst_75 : f32 to vector<1x512xf32>
    %451 = arith.mulf %450, %449 : vector<1x512xf32>
    %cst_76 = arith.constant 1.000000e+00 : f32
    %452 = vector.broadcast %cst_76 : f32 to vector<1x512xf32>
    %453 = arith.subf %451, %452 : vector<1x512xf32>
    %c2_i32 = arith.constant 2 : i32
    %454 = tpu.dynamic_rotate %448 by %c2_i32 dim 1 : vector<8x512xf32>, i32 -> vector<8x512xf32>
    %455 = vector.broadcast %449 : vector<1x512xf32> to vector<8x512xf32>
    %456 = arith.mulf %455, %454 : vector<8x512xf32>
    %cst_77 = arith.constant 1.000000e+00 : f32
    %457 = vector.broadcast %cst_77 : f32 to vector<1x512xf32>
    %458 = arith.subf %457, %449 : vector<1x512xf32>
    %c510_i32 = arith.constant 510 : i32
    %459 = tpu.dynamic_rotate %448 by %c510_i32 dim 1 : vector<8x512xf32>, i32 -> vector<8x512xf32>
    %460 = vector.broadcast %458 : vector<1x512xf32> to vector<8x512xf32>
    %461 = arith.mulf %460, %459 : vector<8x512xf32>
    %462 = arith.addf %456, %461 : vector<8x512xf32>
    %463 = vector.extract_strided_slice %309 {offsets = [0, 6], sizes = [8, 1], strides = [1, 1]} : vector<8x8xf32> to vector<8x1xf32>
    %464 = vector.broadcast %463 : vector<8x1xf32> to vector<8x512xf32>
    %465 = arith.mulf %464, %448 : vector<8x512xf32>
    %466 = vector.extract_strided_slice %310 {offsets = [0, 6], sizes = [8, 1], strides = [1, 1]} : vector<8x8xf32> to vector<8x1xf32>
    %467 = vector.broadcast %466 : vector<8x1xf32> to vector<8x512xf32>
    %468 = vector.broadcast %453 : vector<1x512xf32> to vector<8x512xf32>
    %469 = arith.mulf %467, %468 : vector<8x512xf32>
    %470 = arith.mulf %469, %462 : vector<8x512xf32>
    %471 = arith.addf %465, %470 : vector<8x512xf32>
    %472 = vector.extract_strided_slice %1 {offsets = [7, 0], sizes = [1, 512], strides = [1, 1]} : vector<8x512xf32> to vector<1x512xf32>
    %cst_78 = arith.constant 2.000000e+00 : f32
    %473 = vector.broadcast %cst_78 : f32 to vector<1x512xf32>
    %474 = arith.mulf %473, %472 : vector<1x512xf32>
    %cst_79 = arith.constant 1.000000e+00 : f32
    %475 = vector.broadcast %cst_79 : f32 to vector<1x512xf32>
    %476 = arith.subf %474, %475 : vector<1x512xf32>
    %c1_i32 = arith.constant 1 : i32
    %477 = tpu.dynamic_rotate %471 by %c1_i32 dim 1 : vector<8x512xf32>, i32 -> vector<8x512xf32>
    %478 = vector.broadcast %472 : vector<1x512xf32> to vector<8x512xf32>
    %479 = arith.mulf %478, %477 : vector<8x512xf32>
    %cst_80 = arith.constant 1.000000e+00 : f32
    %480 = vector.broadcast %cst_80 : f32 to vector<1x512xf32>
    %481 = arith.subf %480, %472 : vector<1x512xf32>
    %c511_i32 = arith.constant 511 : i32
    %482 = tpu.dynamic_rotate %471 by %c511_i32 dim 1 : vector<8x512xf32>, i32 -> vector<8x512xf32>
    %483 = vector.broadcast %481 : vector<1x512xf32> to vector<8x512xf32>
    %484 = arith.mulf %483, %482 : vector<8x512xf32>
    %485 = arith.addf %479, %484 : vector<8x512xf32>
    %486 = vector.extract_strided_slice %309 {offsets = [0, 7], sizes = [8, 1], strides = [1, 1]} : vector<8x8xf32> to vector<8x1xf32>
    %487 = vector.broadcast %486 : vector<8x1xf32> to vector<8x512xf32>
    %488 = arith.mulf %487, %471 : vector<8x512xf32>
    %489 = vector.extract_strided_slice %310 {offsets = [0, 7], sizes = [8, 1], strides = [1, 1]} : vector<8x8xf32> to vector<8x1xf32>
    %490 = vector.broadcast %489 : vector<8x1xf32> to vector<8x512xf32>
    %491 = vector.broadcast %476 : vector<1x512xf32> to vector<8x512xf32>
    %492 = arith.mulf %490, %491 : vector<8x512xf32>
    %493 = arith.mulf %492, %485 : vector<8x512xf32>
    %494 = arith.addf %488, %493 : vector<8x512xf32>
    %495 = arith.truncf %494 : vector<8x512xf32> to vector<8x512xbf16>
    %c256 = arith.constant 256 : index
    %c0_81 = arith.constant 0 : index
    %496 = vector.load %arg4[%c256, %c0_81] : memref<768x512xbf16, #tpu.memory_space<vmem>>, vector<512x512xbf16>
    %cst_82 = arith.constant dense<0.000000e+00> : vector<8x512xf32>
    %497 = tpu.matmul %495, %496, %cst_82 {dimension_numbers = #tpu.dot_dimension_numbers<[1], [0], [0], [1], [0, 0, 1, 1], [], []>} : vector<8x512xbf16>, vector<512x512xbf16>, vector<8x512xf32> -> vector<8x512xf32>
    %498 = arith.mulf %497, %497 : vector<8x512xf32>
    %499 = vector.extract_strided_slice %498 {offsets = [0, 0], sizes = [8, 256], strides = [1, 1]} : vector<8x512xf32> to vector<8x256xf32>
    %500 = vector.extract_strided_slice %498 {offsets = [0, 256], sizes = [8, 256], strides = [1, 1]} : vector<8x512xf32> to vector<8x256xf32>
    %501 = arith.addf %499, %500 : vector<8x256xf32>
    %502 = arith.truncf %501 : vector<8x256xf32> to vector<8x256xbf16>
    %c0_83 = arith.constant 0 : index
    %c0_84 = arith.constant 0 : index
    %503 = vector.load %arg5[%c0_83, %c0_84] : memref<320x32xbf16, #tpu.memory_space<vmem>>, vector<256x16xbf16>
    %cst_85 = arith.constant dense<0.000000e+00> : vector<8x16xf32>
    %504 = tpu.matmul %502, %503, %cst_85 {dimension_numbers = #tpu.dot_dimension_numbers<[1], [0], [0], [1], [0, 0, 1, 1], [], []>} : vector<8x256xbf16>, vector<256x16xbf16>, vector<8x16xf32> -> vector<8x16xf32>
    %505 = vector.extract_strided_slice %0 {offsets = [19, 0], sizes = [1, 16], strides = [1, 1]} : vector<24x32xf32> to vector<1x16xf32>
    %506 = vector.broadcast %505 : vector<1x16xf32> to vector<8x16xf32>
    %507 = arith.addf %504, %506 : vector<8x16xf32>
    %508 = arith.negf %507 : vector<8x16xf32>
    %509 = math.exp %508 : vector<8x16xf32>
    %cst_86 = arith.constant 1.000000e+00 : f32
    %510 = vector.broadcast %cst_86 : f32 to vector<8x16xf32>
    %511 = arith.addf %510, %509 : vector<8x16xf32>
    %512 = arith.divf %510, %511 : vector<8x16xf32>
    %513 = arith.mulf %507, %512 : vector<8x16xf32>
    %514 = arith.truncf %513 : vector<8x16xf32> to vector<8x16xbf16>
    %c256_87 = arith.constant 256 : index
    %c0_88 = arith.constant 0 : index
    %515 = vector.load %arg5[%c256_87, %c0_88] : memref<320x32xbf16, #tpu.memory_space<vmem>>, vector<16x32xbf16>
    %cst_89 = arith.constant dense<0.000000e+00> : vector<8x32xf32>
    %516 = tpu.matmul %514, %515, %cst_89 {dimension_numbers = #tpu.dot_dimension_numbers<[1], [0], [0], [1], [0, 0, 1, 1], [], []>} : vector<8x16xbf16>, vector<16x32xbf16>, vector<8x32xf32> -> vector<8x32xf32>
    %517 = vector.extract_strided_slice %0 {offsets = [20, 0], sizes = [1, 32], strides = [1, 1]} : vector<24x32xf32> to vector<1x32xf32>
    %518 = vector.broadcast %517 : vector<1x32xf32> to vector<8x32xf32>
    %519 = arith.addf %516, %518 : vector<8x32xf32>
    %520 = arith.addf %140, %519 : vector<8x32xf32>
    %521 = arith.truncf %520 : vector<8x32xf32> to vector<8x32xbf16>
    %c272 = arith.constant 272 : index
    %c0_90 = arith.constant 0 : index
    %522 = vector.load %arg5[%c272, %c0_90] : memref<320x32xbf16, #tpu.memory_space<vmem>>, vector<32x16xbf16>
    %cst_91 = arith.constant dense<0.000000e+00> : vector<8x16xf32>
    %523 = tpu.matmul %521, %522, %cst_91 {dimension_numbers = #tpu.dot_dimension_numbers<[1], [0], [0], [1], [0, 0, 1, 1], [], []>} : vector<8x32xbf16>, vector<32x16xbf16>, vector<8x16xf32> -> vector<8x16xf32>
    %524 = vector.extract_strided_slice %0 {offsets = [21, 0], sizes = [1, 16], strides = [1, 1]} : vector<24x32xf32> to vector<1x16xf32>
    %525 = vector.broadcast %524 : vector<1x16xf32> to vector<8x16xf32>
    %526 = arith.addf %523, %525 : vector<8x16xf32>
    %527 = arith.negf %526 : vector<8x16xf32>
    %528 = math.exp %527 : vector<8x16xf32>
    %cst_92 = arith.constant 1.000000e+00 : f32
    %529 = vector.broadcast %cst_92 : f32 to vector<8x16xf32>
    %530 = arith.addf %529, %528 : vector<8x16xf32>
    %531 = arith.divf %529, %530 : vector<8x16xf32>
    %532 = arith.mulf %526, %531 : vector<8x16xf32>
    %c304 = arith.constant 304 : index
    %c0_93 = arith.constant 0 : index
    %533 = vector.load %arg5[%c304, %c0_93] : memref<320x32xbf16, #tpu.memory_space<vmem>>, vector<1x16xbf16>
    %534 = arith.extf %533 : vector<1x16xbf16> to vector<1x16xf32>
    %535 = vector.broadcast %534 : vector<1x16xf32> to vector<8x16xf32>
    %536 = arith.mulf %532, %535 : vector<8x16xf32>
    %cst_94 = arith.constant dense<0.000000e+00> : vector<8xf32>
    %537 = vector.multi_reduction <add>, %536, %cst_94 [1] : vector<8x16xf32> to vector<8xf32>
    %538 = vector.shape_cast %537 : vector<8xf32> to vector<8x1xf32>
    %539 = vector.extract_strided_slice %0 {offsets = [22, 0], sizes = [1, 1], strides = [1, 1]} : vector<24x32xf32> to vector<1x1xf32>
    %540 = vector.broadcast %539 : vector<1x1xf32> to vector<8x1xf32>
    %541 = arith.addf %538, %540 : vector<8x1xf32>
    %c0_95 = arith.constant 0 : index
    %c0_96 = arith.constant 0 : index
    %542 = vector.load %arg6[%c0_95, %c0_96] : memref<8x1xf32, #tpu.memory_space<vmem>>, vector<8x1xf32>
    tpu.vector_store %arg6[%c0_95, %c0_96], %541 {strides = array<i32>} : memref<8x1xf32, #tpu.memory_space<vmem>>, vector<8x1xf32>,
    return
  }
}

</mosaic_0001>

<bundles_post_ra>
// kernel: forward.1
= control target key start
LH: loop header
LB: loop body
LE: loop exit
PB: predicated region body
PF: predicated region fallthrough
CT: control target
= control target key end

     0   :  { %11 = vsyncpa [#allocation3], 0  ;;  %s4566_s21 = smov [#allocation2]   ;;  %s5610_s0 = inlined_call_operand.vmem [shape: f32[8,64], index: 0, kind: input, shape index: {}]   ;;  %s5611_s1 = inlined_call_operand.vmem [shape: bf16[192,32], index: 1, kind: input, shape index: {}]   ;;  %s5612_s2 = inlined_call_operand.vmem [shape: f32[24,32], index: 2, kind: input, shape index: {}]   ;;  %s5613_s3 = inlined_call_operand.vmem [shape: f32[8,512], index: 3, kind: input, shape index: {}]   ;;  %s5614_s4 = inlined_call_operand.hbm [shape: bf16[768,512], index: 4, kind: input, shape index: {}]   ;;  %s5615_s5 = inlined_call_operand.vmem [shape: bf16[320,32], index: 5, kind: input, shape index: {}]   ;;  %s5616_s6 = inlined_call_operand.vmem [shape: f32[8,1], index: 6, kind: output, shape index: {}]  }
   0x1   :  { %s25_s22 = sshll.u32 %s4566_s21, 4  ;;  %s4542_s25 = scalar_lea.hbm %s5614_s4, 24576  ;;  %s26_s22 = int_to_ptr.vmem [resolvable:$true] %s25_s22 }
   0x2   :  { %p4543_p0 = scmp.ne.s32.totalorder %s5614_s4, %s4542_s25  ;;  %p4546_p1 = scmp.lt.u32.totalorder %s4542_s25, %s5614_s4 }
   0x4   :  { %p4548_p2 = pnand %p4546_p1, %p4543_p0 }
   0x6   :  { %4551 = shalt.err (!%p4548_p2)
}
   0x7   :  { %s4552_s30 = scalar_lea.vmem %s26_s22, 24576  ;;  %p4557_p4 = scmp.lt.s32.totalorder %s26_s22, %s26_s22 }
   0x8   :  { %p4553_p3 = scmp.ne.s32.totalorder %s26_s22, %s4552_s30  ;;  %p4558_p5 = scmp.lt.s32.totalorder %s4552_s30, %s4552_s30 }
   0xa   :  { %p4559_p6 = por %p4558_p5, %p4557_p4 }
   0xc   :  { %p4560_p7 = pnand %p4559_p6, %p4553_p3 }
   0xe   :  { %4563 = shalt.err (!%p4560_p7)
}
   0xf   :  { %s4567_s7 = smov 256   ;;  %s4568_s8 = smov 16  }
  0x10   :  { %31 = dma.hbm_to_vmem [thread:$0]  %s5614_s4, 24576, %s26_s22, [#allocation3], %s4567_s7, %s4567_s7, %s4568_s8  }
  0x11   :  { %4564 = dma.done.wait [#allocation3], 24576  }
  0x12   :  { %4565 = vsyncadd [#allocation3], 4294942720  ;;  %v5617_v0 = vmov 0.0   ;;  %vm4570_vm0 = vmmov 0   ;;  %v4176_v1 = vld [vmem:[%s5611_s1] sm:$0xff]   ;;  %v4177_v2 = vld [vmem:[%s5611_s1 + $0x8] sm:$0xff]   ;;  %v5627_v7 = vlaneseq }
  0x13   :  { %4036 = vmatprep.subr.bf16.mxu0 %v5617_v0  ;;  %4044 = vmatprep.mubr.msk.bf16.mxu0 %vm4570_vm0, %v5617_v0  ;;  %v4178_v3 = vld [vmem:[%s5611_s1 + $0x10] sm:$0xff]   ;;  %v4179_v4 = vld [vmem:[%s5611_s1 + $0x18] sm:$0xff]   ;;  %v45_v5 = vld [vmem:[%s5610_s0] sm:$0xff]  ;;  %vm83_vm1 = vcmask 523264   ;;  %vm127_vm2 = vcmask 261120   ;;  %vm310_vm3 = vcmask 130048  }
  0x14   :  { %4048 = vmatprep.subr.bf16.mxu1 %v5617_v0  ;;  %4052 = vmatprep.mubr.msk.bf16.mxu1 %vm4570_vm0, %v5617_v0  ;;  %v54_v6 = vpack.c.bf16 %v45_v5, %v45_v5  ;;  %v4673_v8 = vshrl.u32 %v5627_v7, 7  ;;  %v4681_v10 = vld [vmem:[%s5612_s2] sm:$0xff]  ;;  %v4181_v24 = vld [vmem:[%s5611_s1 + $0x28] sm:$0xff]   ;;  %v4182_v55 = vld [vmem:[%s5611_s1 + $0x30] sm:$0xff]   ;;  %vm578_vm4 = vcmask 64512   ;;  %s4585_s23 = smov 64  }
  0x15   :  { %4037 = vmatpush3.bf16.msra.mxu0 %v4176_v1  ;;  %v4180_v23 = vld [vmem:[%s5611_s1 + $0x20] sm:$0xff]   ;;  %v4183_v56 = vld [vmem:[%s5611_s1 + $0x38] sm:$0xff]   ;;  %s4586_s24 = smov 32   ;;  %s4587_s25 = smov 96  }
  0x16   :  { %4038 = vmatprep.subr.bf16.mxu0 %v5617_v0  ;;  %v4676_v9 = vsub.s32 0, %v4673_v8  ;;  %4049 = vmatpush3.bf16.msra.mxu1 %v4180_v23  ;;  %v4696_v28 = vsub.s32 1, %v4673_v8  ;;  %v4699_v29 = vsub.s32 2, %v4673_v8  ;;  %v4709_v42 = vsub.s32 3, %v4673_v8  ;;  %v4184_v23 = vld [vmem:[%s5611_s1 + $0x40] sm:$0xff]   ;;  %s4588_s26 = smov 112  }
  0x17   :  { %4050 = vmatprep.subr.bf16.mxu1 %v5617_v0  ;;  %v4724_v60 = vsub.s32 4, %v4673_v8  ;;  %v4727_v61 = vsub.s32 5, %v4673_v8  ;;  %s4590_s27 = smov 120   ;;  %s4591_s28 = smov 4  }
  0x18   :  { %5641 = vst [vmem:[#allocation5_spill] sm:$0xff] %v4676_v9  ;;  %v58_v11 = vrot.slane %v4681_v10, %v4676_v9  ;;  %v145_v30 = vrot.slane %v4681_v10, %v4696_v28  ;;  %v150_v33 = vrot.slane %v4681_v10, %v4699_v29  ;;  %v167_v43 = vrot.slane %v4681_v10, %v4709_v42  ;;  %s4592_s29 = smov 124   ;;  %s4593_s30 = smov 2  }
  0x19   :  { %4039 = vmatpush3.bf16.msra.mxu0 %v4177_v2  ;;  %v239_v62 = vrot.slane %v4681_v10, %v4724_v60  ;;  %v244_v2 = vrot.slane %v4681_v10, %v4727_v61  ;;  %s4594_s7 = smov 126   ;;  %s4596_s4 = smov 127  }
  0x1a   :  { %4040 = vmatprep.subr.bf16.mxu0 %v5617_v0  ;;  %4051 = vmatpush3.bf16.msra.mxu1 %v4181_v24 }
  0x1b   :  { %4056 = vmatprep.subr.bf16.mxu1 %v5617_v0 }
  0x1d   :  { %4041 = vmatpush3.bf16.msra.mxu0 %v4178_v3 }
  0x1e   :  { %4042 = vmatprep.subr.bf16.mxu0 %v5617_v0 }
  0x21   :  { %4043 = vmatpush3.bf16.msra.mxu0 %v4179_v4 }
  0x22   :  { %4064 = vmatprep.subr.bf16.mxu0 %v5617_v0 }
  0x24   :  { %4045 = vmatmul.mubr.msk.bf16.vlgmr.msra.gmra.mrb[0].mxu0 %vm83_vm1, %v54_v6  ;;  %v4737_v6 = vsub.s32 6, %v4673_v8 }
  0x25   :  { %4066 = vmatprep.mubr.msk.bf16.mxu0 %vm4570_vm0, %v5617_v0  ;;  %4065 = vmatpush3.bf16.msra.mxu0 %v4184_v23 }
  0x26   :  { %5642 = vst [vmem:[#allocation6_spill] sm:$0xff] %v4737_v6  ;;  %4078 = vmatprep.subr.bf16.mxu0 %v5617_v0 }
  0xf7   :  { %v121_v12 = vpop.f32.mrb[0].mxu0 }
  0xf8   :  { %v122_v13 = vadd.f32 %v121_v12, %v58_v11  ;;  %v4046_v14 = vpop.f32.mrb[1].mxu0  ;;  %v254_v11 = vrot.slane %v4681_v10, %v4737_v6 }
  0xf9   :  { %v124_v15 = vpop.f32.mrb[2].mxu0 }
  0xfa   :  { %v4047_v16 = vpop.f32.mrb[3].mxu0  ;;  %v128_v17 = vsel %vm127_vm2, %v122_v13, 0.0 }
  0xfb   :  { %129 = vadd.xlane.f32.xlu0 %v128_v17 }
 0x188   :  { %v130_v18 = vpop.xlane.xlu0 %129 }
 0x189   :  { %v132_v19 = vmul.f32 0.03125, %v130_v18 }
 0x18b   :  { %v133_v20 = vsub.f32 %v122_v13, %v132_v19 }
 0x18d   :  { %v134_v21 = vmul.f32 %v133_v20, %v133_v20 }
 0x18f   :  { %v135_v22 = vsel %vm127_vm2, %v134_v21, 0.0 }
 0x190   :  { %136 = vadd.xlane.f32.xlu0 %v135_v22 }
 0x21d   :  { %v137_v25 = vpop.xlane.xlu0 %136 }
 0x21e   :  { %v138_v26 = vmul.f32 0.03125, %v137_v25 }
 0x220   :  { %v139_v27 = vadd.f32 1e-05, %v138_v26 }
 0x222   :  { %4495 = vrsqrt.f32 %v139_v27  ;;  %v4748_v27 = vsub.s32 7, %v4673_v8 }
 0x224   :  { %5643 = vst [vmem:[#allocation7_spill] sm:$0xff] %v4748_v27 }
 0x22c   :  { %v4496_v31 = vpop.eup %4495 }
 0x22d   :  { %v141_v32 = vmul.f32 %v4496_v31, %v133_v20  ;;  %v328_v31 = vrot.slane %v4681_v10, %v4748_v27 }
 0x22f   :  { %v146_v34 = vmul.f32 %v145_v30, %v141_v32  ;;  %v4753_v30 = vld [vmem:[%s5612_s2 + $0x8] sm:$0xff] }
 0x230   :  { %v348_v10 = vrot.slane %v4753_v30, %v4696_v28 }
 0x231   :  { %v151_v35 = vadd.f32 %v150_v33, %v146_v34  ;;  %v333_v34 = vrot.slane %v4753_v30, %v4676_v9 }
 0x233   :  { %v3739_v36 = vmul.f32 -1.442695, %v151_v35 }
 0x235   :  { %4497 = vpow2.f32 %v3739_v36 }
 0x23f   :  { %v4498_v37 = vpop.eup %4497 }
 0x240   :  { %v155_v38 = vadd.f32 1.0, %v4498_v37 }
 0x242   :  { %4499 = vrcp.f32 %v155_v38 }
 0x24c   :  { %v4500_v39 = vpop.eup %4499 }
 0x24d   :  { %v158_v40 = vmul.f32 %v4500_v39, %v151_v35 }
 0x24f   :  { %v163_v41 = vpack.c.bf16 %v158_v40, %v158_v40 }
 0x251   :  { %4053 = vmatmul.mubr.msk.bf16.vlgmr.msra.gmra.mrb[0].mxu1 %vm127_vm2, %v163_v41 }
 0x252   :  { %4060 = vmatprep.mubr.msk.bf16.mxu1 %vm4570_vm0, %v5617_v0  ;;  %4057 = vmatpush3.bf16.msra.mxu1 %v4182_v55  ;;  %v4186_v55 = vld [vmem:[%s5611_s1 + $0x50] sm:$0xff]  }
 0x253   :  { %4058 = vmatprep.subr.bf16.mxu1 %v5617_v0 }
 0x256   :  { %4059 = vmatpush3.bf16.msra.mxu1 %v4183_v56 }
 0x257   :  { %4070 = vmatprep.subr.bf16.mxu1 %v5617_v0 }
 0x324   :  { %v217_v44 = vpop.f32.mrb[0].mxu1 }
 0x325   :  { %v218_v45 = vadd.f32 %v217_v44, %v167_v43  ;;  %v4054_v46 = vpop.f32.mrb[1].mxu1 }
 0x326   :  { %v220_v47 = vpop.f32.mrb[2].mxu1 }
 0x327   :  { %v4055_v48 = vpop.f32.mrb[3].mxu1  ;;  %v223_v49 = vsel %vm127_vm2, %v218_v45, 0.0 }
 0x328   :  { %224 = vadd.xlane.f32.xlu1 %v223_v49 }
 0x3b5   :  { %v225_v50 = vpop.xlane.xlu1 %224 }
 0x3b6   :  { %v226_v51 = vmul.f32 0.03125, %v225_v50 }
 0x3b8   :  { %v227_v52 = vsub.f32 %v218_v45, %v226_v51 }
 0x3ba   :  { %v228_v53 = vmul.f32 %v227_v52, %v227_v52 }
 0x3bc   :  { %v229_v54 = vsel %vm127_vm2, %v228_v53, 0.0 }
 0x3bd   :  { %230 = vadd.xlane.f32.xlu1 %v229_v54  ;;  %v4185_v54 = vld [vmem:[%s5611_s1 + $0x48] sm:$0xff]  }
 0x44a   :  { %v231_v57 = vpop.xlane.xlu1 %230 }
 0x44b   :  { %v232_v58 = vmul.f32 0.03125, %v231_v57 }
 0x44d   :  { %v233_v59 = vadd.f32 1e-05, %v232_v58 }
 0x44f   :  { %4501 = vrsqrt.f32 %v233_v59  ;;  %v414_v59 = vrot.slane %v4753_v30, %v4699_v29 }
 0x459   :  { %v4502_v63 = vpop.eup %4501 }
 0x45a   :  { %v235_v1 = vmul.f32 %v4502_v63, %v227_v52 }
 0x45c   :  { %v240_v3 = vmul.f32 %v239_v62, %v235_v1  ;;  %v419_v1 = vrot.slane %v4753_v30, %v4709_v42 }
 0x45e   :  { %v245_v4 = vadd.f32 %v244_v2, %v240_v3 }
 0x460   :  { %v250_v5 = vpack.c.bf16 %v245_v4, %v245_v4 }
 0x462   :  { %4061 = vmatmul.mubr.msk.bf16.vlgmr.msra.gmra.mrb[4].mxu1 %vm127_vm2, %v250_v5 }
 0x463   :  { %4074 = vmatprep.mubr.msk.bf16.mxu1 %vm4570_vm0, %v5617_v0  ;;  %4071 = vmatpush3.bf16.msra.mxu1 %v4185_v54 }
 0x464   :  { %4072 = vmatprep.subr.bf16.mxu1 %v5617_v0 }
 0x467   :  { %4073 = vmatpush3.bf16.msra.mxu1 %v4186_v55 }
 0x535   :  { %v304_v12 = vpop.f32.mrb[4].mxu1 }
 0x536   :  { %v305_v13 = vadd.f32 %v304_v12, %v254_v11  ;;  %v4062_v14 = vpop.f32.mrb[5].mxu1 }
 0x537   :  { %v307_v15 = vpop.f32.mrb[6].mxu1 }
 0x538   :  { %v4063_v16 = vpop.f32.mrb[7].mxu1  ;;  %v311_v17 = vsel %vm310_vm3, %v305_v13, 0.0  ;;  %v436_v15 = vrot.slane %v4753_v30, %v4724_v60 }
 0x539   :  { %312 = vadd.xlane.f32.xlu0 %v311_v17 }
 0x5c6   :  { %v313_v18 = vpop.xlane.xlu0 %312 }
 0x5c7   :  { %v315_v19 = vmul.f32 0.0625, %v313_v18 }
 0x5c9   :  { %v316_v20 = vsub.f32 %v305_v13, %v315_v19 }
 0x5cb   :  { %v317_v21 = vmul.f32 %v316_v20, %v316_v20 }
 0x5cd   :  { %v318_v22 = vsel %vm310_vm3, %v317_v21, 0.0 }
 0x5ce   :  { %319 = vadd.xlane.f32.xlu1 %v318_v22 }
 0x65b   :  { %v320_v24 = vpop.xlane.xlu1 %319 }
 0x65c   :  { %v321_v25 = vmul.f32 0.0625, %v320_v24 }
 0x65e   :  { %v322_v26 = vadd.f32 1e-05, %v321_v25 }
 0x660   :  { %4503 = vrsqrt.f32 %v322_v26 }
 0x66a   :  { %v4504_v32 = vpop.eup %4503 }
 0x66b   :  { %v324_v33 = vmul.f32 %v4504_v32, %v316_v20 }
 0x66d   :  { %v329_v35 = vmul.f32 %v328_v31, %v324_v33  ;;  %v4187_v31 = vld [vmem:[%s5611_s1 + $0x58] sm:$0xff]  }
 0x66f   :  { %v334_v36 = vadd.f32 %v333_v34, %v329_v35  ;;  %v508_v35 = vrot.slane %v4753_v30, %v4727_v61 }
 0x671   :  { %v3746_v37 = vmul.f32 -1.442695, %v334_v36 }
 0x673   :  { %4505 = vpow2.f32 %v3746_v37 }
 0x67d   :  { %v4506_v38 = vpop.eup %4505 }
 0x67e   :  { %v338_v8 = vadd.f32 1.0, %v4506_v38  ;;  %v513_v38 = vrot.slane %v4753_v30, %v4737_v6 }
 0x680   :  { %4507 = vrcp.f32 %v338_v8 }
 0x68a   :  { %v4508_v39 = vpop.eup %4507 }
 0x68b   :  { %v341_v40 = vmul.f32 %v4508_v39, %v334_v36 }
 0x68d   :  { %v344_v41 = vpack.c.bf16 %v341_v40, %v341_v40 }
 0x68f   :  { %4067 = vmatmul.mubr.msk.bf16.vlgmr.msra.gmra.mrb[4].mxu0 %vm310_vm3, %v344_v41 }
 0x690   :  { %4080 = vmatprep.mubr.msk.bf16.mxu0 %vm4570_vm0, %v5617_v0  ;;  %4079 = vmatpush3.bf16.msra.mxu0 %v4187_v31 }
 0x762   :  { %v392_v43 = vpop.f32.mrb[4].mxu0 }
 0x763   :  { %v393_v44 = vadd.f32 %v392_v43, %v348_v10  ;;  %v4068_v45 = vpop.f32.mrb[5].mxu0 }
 0x764   :  { %v395_v46 = vpop.f32.mrb[6].mxu0 }
 0x765   :  { %v4069_v47 = vpop.f32.mrb[7].mxu0  ;;  %v398_v48 = vsel %vm127_vm2, %v393_v44, 0.0  ;;  %v528_v46 = vrot.slane %v4753_v30, %v4748_v27 }
 0x766   :  { %399 = vadd.xlane.f32.xlu0 %v398_v48 }
 0x7f3   :  { %v400_v49 = vpop.xlane.xlu0 %399 }
 0x7f4   :  { %v401_v50 = vmul.f32 0.03125, %v400_v49 }
 0x7f6   :  { %v402_v51 = vsub.f32 %v393_v44, %v401_v50 }
 0x7f8   :  { %v403_v52 = vmul.f32 %v402_v51, %v402_v51 }
 0x7fa   :  { %v404_v53 = vsel %vm127_vm2, %v403_v52, 0.0 }
 0x7fb   :  { %405 = vadd.xlane.f32.xlu1 %v404_v53 }
 0x888   :  { %v406_v56 = vpop.xlane.xlu1 %405 }
 0x889   :  { %v407_v57 = vmul.f32 0.03125, %v406_v56 }
 0x88b   :  { %v408_v58 = vadd.f32 1e-05, %v407_v57 }
 0x88d   :  { %4509 = vrsqrt.f32 %v408_v58  ;;  %v5625_v58 = vmov 4  }
 0x88e   :  { %4149 = vset.pattern.permute.xlu0 %v5625_v58 }
 0x897   :  { %v4510_v62 = vpop.eup %4509 }
 0x898   :  { %v410_v63 = vmul.f32 %v4510_v62, %v402_v51 }
 0x89a   :  { %v415_v2 = vmul.f32 %v414_v59, %v410_v63  ;;  %v4572_v59 = vmov 0  }
 0x89b   :  { %4145 = vset.pattern.permute.xlu1 %v4572_v59 }
 0x89c   :  { %v420_v3 = vadd.f32 %v419_v1, %v415_v2  ;;  %v40_v1 = vld [vmem:[%s5612_s2 + $0x10] sm:$0xff] }
 0x89d   :  { %v596_v2 = vrot.slane %v40_v1, %v4676_v9 }
 0x89e   :  { %v3749_v4 = vmul.f32 -1.442695, %v420_v3 }
 0x8a0   :  { %4511 = vpow2.f32 %v3749_v4  ;;  %v601_v4 = vrot.slane %v40_v1, %v4696_v28 }
 0x8aa   :  { %v4512_v5 = vpop.eup %4511 }
 0x8ab   :  { %v424_v11 = vadd.f32 1.0, %v4512_v5 }
 0x8ad   :  { %4513 = vrcp.f32 %v424_v11 }
 0x8b7   :  { %v4514_v12 = vpop.eup %4513 }
 0x8b8   :  { %v4777_v13 = vmul.f32 %v4514_v12, %v420_v3 }
 0x8ba   :  { %5644 = vst [vmem:[#allocation8_spill] sm:$0xff] %v4777_v13  ;;  %v432_v14 = vpack.c.bf16 %v4777_v13, %v4777_v13 }
 0x8bc   :  { %4075 = vmatmul.mubr.msk.bf16.vlgmr.msra.gmra.mrb[8].mxu1 %vm127_vm2, %v432_v14  ;;  %v1459_v14 = vrot.slane %v40_v1, %v4699_v29 }
 0x98f   :  { %v486_v16 = vpop.f32.mrb[8].mxu1 }
 0x990   :  { %v487_v17 = vadd.f32 %v486_v16, %v436_v15  ;;  %v4076_v18 = vpop.f32.mrb[9].mxu1 }
 0x991   :  { %v489_v19 = vpop.f32.mrb[10].mxu1 }
 0x992   :  { %v4077_v20 = vpop.f32.mrb[11].mxu1  ;;  %v492_v21 = vsel %vm310_vm3, %v487_v17, 0.0 }
 0x993   :  { %493 = vadd.xlane.f32.xlu0 %v492_v21 }
 0xa20   :  { %v494_v22 = vpop.xlane.xlu0 %493 }
 0xa21   :  { %v495_v23 = vmul.f32 0.0625, %v494_v22 }
 0xa23   :  { %v496_v24 = vsub.f32 %v487_v17, %v495_v23 }
 0xa25   :  { %v497_v25 = vmul.f32 %v496_v24, %v496_v24 }
 0xa27   :  { %v498_v26 = vsel %vm310_vm3, %v497_v25, 0.0 }
 0xa28   :  { %499 = vadd.xlane.f32.xlu1 %v498_v26 }
 0xab5   :  { %v500_v32 = vpop.xlane.xlu1 %499 }
 0xab6   :  { %v501_v33 = vmul.f32 0.0625, %v500_v32 }
 0xab8   :  { %v502_v34 = vadd.f32 1e-05, %v501_v33 }
 0xaba   :  { %4515 = vrsqrt.f32 %v502_v34 }
 0xac4   :  { %v4516_v36 = vpop.eup %4515 }
 0xac5   :  { %v504_v37 = vmul.f32 %v4516_v36, %v496_v24 }
 0xac7   :  { %v509_v8 = vmul.f32 %v508_v35, %v504_v37 }
 0xac9   :  { %v514_v39 = vadd.f32 %v513_v38, %v509_v8  ;;  %v4573_v8 = vmov 683565275  }
 0xacb   :  { %v3753_v40 = vmul.f32 -1.442695, %v514_v39 }
 0xacd   :  { %4517 = vpow2.f32 %v3753_v40 }
 0xad7   :  { %v4518_v41 = vpop.eup %4517 }
 0xad8   :  { %v518_v10 = vadd.f32 1.0, %v4518_v41  ;;  %v4574_v41 = vmov 2475754826  }
 0xada   :  { %4519 = vrcp.f32 %v518_v10 }
 0xae4   :  { %v4520_v43 = vpop.eup %4519 }
 0xae5   :  { %v521_v44 = vmul.f32 %v4520_v43, %v514_v39  ;;  %v4575_v43 = vmov 2131351028  }
 0xae7   :  { %v524_v45 = vpack.c.bf16 %v521_v44, %v521_v44 }
 0xae9   :  { %4081 = vmatmul.mubr.msk.bf16.vlgmr.msra.gmra.mrb[8].mxu0 %vm310_vm3, %v524_v45  ;;  %v4576_v45 = vmov 2102212464  }
 0xbbc   :  { %v572_v47 = vpop.f32.mrb[8].mxu0 }
 0xbbd   :  { %v573_v48 = vadd.f32 %v572_v47, %v528_v46  ;;  %v4082_v49 = vpop.f32.mrb[9].mxu0  ;;  %v4577_v47 = vmov 920167782  }
 0xbbe   :  { %v575_v50 = vpop.f32.mrb[10].mxu0 }
 0xbbf   :  { %v4083_v51 = vpop.f32.mrb[11].mxu0  ;;  %v579_v52 = vsel %vm578_vm4, %v573_v48, 0.0 }
 0xbc0   :  { %580 = vadd.xlane.f32.xlu0 %v579_v52 }
 0xc4d   :  { %v581_v53 = vpop.xlane.xlu0 %580 }
 0xc4e   :  { %v583_v54 = vmul.f32 0.125, %v581_v53 }
 0xc50   :  { %v584_v55 = vsub.f32 %v573_v48, %v583_v54  ;;  %v4578_v54 = vmov 1326507024  }
 0xc52   :  { %v585_v56 = vmul.f32 %v584_v55, %v584_v55 }
 0xc54   :  { %v586_v57 = vsel %vm578_vm4, %v585_v56, 0.0 }
 0xc55   :  { %587 = vadd.xlane.f32.xlu1 %v586_v57 }
 0xce2   :  { %v588_v30 = vpop.xlane.xlu1 %587 }
 0xce3   :  { %v589_v62 = vmul.f32 0.125, %v588_v30 }
 0xce5   :  { %v590_v63 = vadd.f32 1e-05, %v589_v62 }
 0xce7   :  { %4521 = vrsqrt.f32 %v590_v63 }
 0xcf1   :  { %v4522_v3 = vpop.eup %4521 }
 0xcf2   :  { %v592_v5 = vmul.f32 %v4522_v3, %v584_v55 }
 0xcf4   :  { %v597_v11 = vmul.f32 %v596_v2, %v592_v5 }
 0xcf6   :  { %v602_v12 = vadd.f32 %v601_v4, %v597_v11 }
 0xcf8   :  { %v4804_v15 = vmul.f32 0.5, %v602_v12 }
 0xcfa   :  { %v607_v16 = vand.u32 2139095040, %v4804_v15  ;;  %v604_v17 = vand.u32 2147483647, %v4804_v15  ;;  %v4809_v18 = vmul.f32 %v1459_v14, %v4804_v15 }
 0xcfc   :  { %v608_v19 = vshrl.u32 %v607_v16, 23  ;;  %v611_v20 = vand.u32 8388607, %v604_v17  ;;  %v1464_v21 = vand.u32 2139095040, %v4809_v18  ;;  %v1461_v23 = vand.u32 2147483647, %v4809_v18 }
 0xcfe   :  { %v3756_v22 = vadd.s32 4294967169, %v608_v19  ;;  %v1465_v24 = vshrl.u32 %v1464_v21, 23  ;;  %v612_v26 = vor.u32 8388608, %v611_v20  ;;  %v1468_v32 = vand.u32 8388607, %v1461_v23 }
 0xd00   :  { %v614_v25 = vadd.s32 1, %v3756_v22  ;;  %v3828_v31 = vadd.s32 4294967169, %v1465_v24  ;;  %v4817_v37 = vshll.u32 %v612_v26, 8  ;;  %v1469_v40 = vor.u32 8388608, %v1468_v32 }
 0xd02   :  { %vm615_vm5 = vcmp.gt.s32.totalorder %v614_v25, 0  ;;  %v1471_v34 = vadd.s32 1, %v3828_v31  ;;  %v1509_v22 = vshll.u32 %v1469_v40, 8 }
 0xd03   :  { %v616_v33 = vsel %vm615_vm5, %v614_v25, 0 }
 0xd04   :  { %v617_v35 = vshrl.u32 %v616_v33, 5  ;;  %v618_v36 = vand.u32 31, %v616_v33  ;;  %vm1472_vm6 = vcmp.gt.s32.totalorder %v1471_v34, 0 }
 0xd05   :  { %v1473_v62 = vsel %vm1472_vm6, %v1471_v34, 0  ;;  %vm606_vm6 = vcmp.lt.s32.totalorder %v4804_v15, 0 }
 0xd06   :  { %v619_v38 = vsub.s32 32, %v618_v36  ;;  %v621_v39 = vshll.u32 %v4573_v8, %v618_v36  ;;  %v624_v10 = vshll.u32 %v4574_v41, %v618_v36  ;;  %v627_v44 = vshll.u32 %v4575_v43, %v618_v36 }
 0xd07   :  { %v630_v46 = vshll.u32 %v4576_v45, %v618_v36  ;;  %v633_v48 = vshll.u32 %v4577_v47, %v618_v36  ;;  %vm636_vm7 = vcmp.lt.s32.totalorder %v617_v35, 1  ;;  %vm638_vm8 = vcmp.lt.s32.totalorder %v617_v35, 3 }
 0xd08   :  { %v622_v49 = vshrl.u32 %v4574_v41, %v619_v38  ;;  %v625_v50 = vshrl.u32 %v4575_v43, %v619_v38  ;;  %v628_v51 = vshrl.u32 %v4576_v45, %v619_v38  ;;  %v620_v52 = vshrl.u32 %v4573_v8, %v619_v38 }
 0xd09   :  { %v631_v53 = vshrl.u32 %v4577_v47, %v619_v38  ;;  %v634_v55 = vshrl.u32 %v4578_v54, %v619_v38  ;;  %vm639_vm9 = vcmp.lt.s32.totalorder %v617_v35, 4  ;;  %v1475_v2 = vand.u32 31, %v1473_v62 }
 0xd0a   :  { %v623_v56 = vor.u32 %v622_v49, %v621_v39  ;;  %v626_v57 = vor.u32 %v625_v50, %v624_v10  ;;  %v629_v30 = vor.u32 %v628_v51, %v627_v44  ;;  %vm637_vm10 = vcmp.lt.s32.totalorder %v617_v35, 2 }
 0xd0b   :  { %v632_v63 = vor.u32 %v631_v53, %v630_v46  ;;  %v635_v1 = vor.u32 %v634_v55, %v633_v48  ;;  %v1476_v19 = vsub.s32 32, %v1475_v2  ;;  %v1474_v31 = vshrl.u32 %v1473_v62, 5 }
 0xd0c   :  { %v640_v3 = vsel %vm636_vm7, %v620_v52, %v623_v56  ;;  %v641_v4 = vsel %vm639_vm9, %v629_v30, 2102212464  ;;  %v644_v5 = vsel %vm636_vm7, %v623_v56, %v626_v57  ;;  %v648_v11 = vsel %vm636_vm7, %v626_v57, %v629_v30 }
 0xd0d   :  { %v642_v12 = vsel %vm638_vm8, %v626_v57, %v641_v4  ;;  %v645_v14 = vsel %vm639_vm9, %v632_v63, 920167782  ;;  %v649_v16 = vsel %vm639_vm9, %v635_v1, 1326507024  ;;  %v1478_v38 = vshll.u32 %v4573_v8, %v1475_v2 }
 0xd0e   :  { %v646_v20 = vsel %vm638_vm8, %v629_v30, %v645_v14  ;;  %v650_v21 = vsel %vm638_vm8, %v632_v63, %v649_v16  ;;  %v643_v24 = vsel %vm637_vm10, %v640_v3, %v642_v12  ;;  %v1479_v39 = vshrl.u32 %v4574_v41, %v1476_v19 }
 0xd0f   :  { %v647_v25 = vsel %vm637_vm10, %v644_v5, %v646_v20  ;;  %v651_v26 = vsel %vm637_vm10, %v648_v11, %v650_v21  ;;  %v1481_v10 = vshll.u32 %v4574_v41, %v1475_v2  ;;  %v1482_v35 = vshrl.u32 %v4575_v43, %v1476_v19 }
 0xd10   :  { %v4829_v32 = vmul.u32.u64.low %v4817_v37, %v651_v26  ;;  %v4830_v33 = vmul.u32.u64.high %v4817_v37, %v651_v26, %v4829_v32  ;;  %v4833_v34 = vmul.u32.u64.low %v4817_v37, %v647_v25  ;;  %v4834_v36 = vmul.u32.u64.high %v4817_v37, %v647_v25, %v4833_v34 }
 0xd11   :  { %v1484_v44 = vshll.u32 %v4575_v43, %v1475_v2  ;;  %v1485_v40 = vshrl.u32 %v4576_v45, %v1476_v19  ;;  %v1487_v46 = vshll.u32 %v4576_v45, %v1475_v2  ;;  %v1488_v48 = vshrl.u32 %v4577_v47, %v1476_v19 }
 0xd12   :  { %v1480_v49 = vor.u32 %v1479_v39, %v1478_v38  ;;  %v1483_v50 = vor.u32 %v1482_v35, %v1481_v10  ;;  %v1490_v51 = vshll.u32 %v4577_v47, %v1475_v2  ;;  %v1491_v52 = vshrl.u32 %v4578_v54, %v1476_v19 }
 0xd13   :  { %v659_v53 = vmul.u32 %v4817_v37, %v643_v24  ;;  %vm661_vm11 = vc.u32 %v4830_v33, %v4833_v34  ;;  %v662_v55 = vadd.s32 1, %v4834_v36  ;;  %v1486_v56 = vor.u32 %v1485_v40, %v1484_v44 }
 0xd14   :  { %v1477_v57 = vshrl.u32 %v4573_v8, %v1476_v19  ;;  %v1489_v41 = vor.u32 %v1488_v48, %v1487_v46  ;;  %v1492_v30 = vor.u32 %v1491_v52, %v1490_v51  ;;  %vm1493_vm12 = vcmp.lt.s32.totalorder %v1474_v31, 1 }
 0xd15   :  { %v663_v43 = vsel %vm661_vm11, %v662_v55, %v4834_v36  ;;  %vm1495_vm13 = vcmp.lt.s32.totalorder %v1474_v31, 3  ;;  %vm1496_vm14 = vcmp.lt.s32.totalorder %v1474_v31, 4  ;;  %v1501_v45 = vsel %vm1493_vm12, %v1480_v49, %v1483_v50 }
 0xd16   :  { %v664_v47 = vadd.s32 %v663_v43, %v659_v53  ;;  %v1498_v54 = vsel %vm1496_vm14, %v1486_v56, 2102212464  ;;  %v1502_v62 = vsel %vm1496_vm14, %v1489_v41, 920167782  ;;  %v1505_v37 = vsel %vm1493_vm12, %v1483_v50, %v1486_v56 }
 0xd17   :  { %vm1494_vm15 = vcmp.lt.s32.totalorder %v1474_v31, 2  ;;  %v1497_v63 = vsel %vm1493_vm12, %v1477_v57, %v1480_v49  ;;  %v1503_v1 = vsel %vm1495_vm13, %v1486_v56, %v1502_v62  ;;  %v1506_v2 = vsel %vm1496_vm14, %v1492_v30, 1326507024 }
 0xd18   :  { %v665_v3 = vadd.s32 536870912, %v664_v47  ;;  %v1499_v4 = vsel %vm1495_vm13, %v1483_v50, %v1498_v54  ;;  %v1504_v5 = vsel %vm1494_vm15, %v1501_v45, %v1503_v1  ;;  %v1507_v8 = vsel %vm1495_vm13, %v1489_v41, %v1506_v2 }
 0xd19   :  { %v1508_v11 = vsel %vm1494_vm15, %v1505_v37, %v1507_v8  ;;  %v4844_v12 = vmul.u32.u64.low %v1509_v22, %v1504_v5  ;;  %v4845_v14 = vmul.u32.u64.high %v1509_v22, %v1504_v5, %v4844_v12  ;;  %v1500_v21 = vsel %vm1494_vm15, %v1497_v63, %v1499_v4 }
 0xd1a   :  { %v666_v16 = vshrl.u32 %v665_v3, 30  ;;  %v4847_v19 = vmul.u32.u64.low %v1509_v22, %v1508_v11  ;;  %v4848_v20 = vmul.u32.u64.high %v1509_v22, %v1508_v11, %v4847_v19  ;;  %v1516_v31 = vmul.u32 %v1509_v22, %v1500_v21 }
 0xd1b   :  { %v1519_v25 = vadd.s32 1, %v4845_v14  ;;  %v660_v22 = vadd.s32 %v4833_v34, %v4830_v33  ;;  %vm605_vm7 = vcmp.le.f32.partialorder %v604_v17, 0.7853982  ;;  %vm1463_vm8 = vcmp.lt.s32.totalorder %v4809_v18, 0 }
 0xd1c   :  { %v667_v24 = vshll.u32 %v666_v16, 30  ;;  %vm1518_vm1 = vc.u32 %v4848_v20, %v4844_v12  ;;  %v690_v63 = vsub.s32 4, %v666_v16  ;;  %v1517_v33 = vadd.s32 %v4844_v12, %v4848_v20 }
 0xd1d   :  { %v1520_v32 = vsel %vm1518_vm1, %v1519_v25, %v4845_v14  ;;  %vm4866_vm9 = vcmp.le.f32.partialorder %v1461_v23, 0.7853982  ;;  %vm696_vm1 = vweird.f32 %v4804_v15 }
 0xd1e   :  { %v668_v26 = vsub.s32 %v664_v47, %v667_v24  ;;  %v1521_v38 = vadd.s32 %v1520_v32, %v1516_v31  ;;  %v691_v14 = vsel %vm606_vm6, %v690_v63, %v666_v16  ;;  %v4197_v63 = vld [vmem:[#allocation2 + $0x28] ss:$16 sps:$4 sm:$0xff]  }
 0xd1f   :  { %v693_v25 = vsel %vm605_vm7, 0, %v691_v14  ;;  %v5621_v14 = vmov 6  }
 0xd20   :  { %v670_v36 = vsub.s32 0, %v668_v26  ;;  %v1522_v10 = vadd.s32 536870912, %v1521_v38  ;;  %v800_v31 = vadd.s32 3, %v693_v25 }
 0xd22   :  { %v3757_v39 = vmin.u32 %v670_v36, %v668_v26  ;;  %v4853_v44 = vshrl.u32 %v1522_v10, 30  ;;  %v697_v36 = vand.u32 3, %v693_v25  ;;  %v4211_v25 = vld [vmem:[#allocation2 + $0x6c] ss:$16 sps:$4 sm:$0xff]  }
 0xd24   :  { %v672_v35 = vclz %v3757_v39  ;;  %v1524_v46 = vshll.u32 %v4853_v44, 30  ;;  %v801_v39 = vand.u32 3, %v800_v31  ;;  %vm698_vm10 = vcmp.lt.s32.totalorder %v697_v36, 2 }
 0xd25   :  { %vm699_vm11 = vcmp.eq.s32.totalorder %v697_v36, 0  ;;  %vm702_vm12 = vcmp.eq.s32.totalorder %v697_v36, 2  ;;  %v5619_v36 = vmov 7  }
 0xd26   :  { %v3758_v40 = vadd.s32 4294967294, %v672_v35  ;;  %v1525_v49 = vsub.s32 %v1521_v38, %v1524_v46  ;;  %v1547_v35 = vsub.s32 4, %v4853_v44  ;;  %vm806_vm13 = vcmp.eq.s32.totalorder %v801_v39, 2 }
 0xd27   :  { %vm803_vm14 = vcmp.eq.s32.totalorder %v801_v39, 0  ;;  %vm802_vm15 = vcmp.lt.s32.totalorder %v801_v39, 2  ;;  %v4217_v39 = vld [vmem:[#allocation2 + $0x8c] ss:$16 sps:$4 sm:$0xff]  }
 0xd28   :  { %vm3759_vm4 = vcmp.lt.s32.totalorder %v3758_v40, 0  ;;  %v1527_v52 = vsub.s32 0, %v1525_v49 }
 0xd29   :  { %v675_v48 = vsel %vm3759_vm4, 0, %v3758_v40 }
 0xd2a   :  { %v676_v50 = vsub.s32 32, %v675_v48  ;;  %v680_v51 = vsub.s32 4294967266, %v675_v48  ;;  %v677_v53 = vshll.u32 %v668_v26, %v675_v48  ;;  %v3829_v57 = vmin.u32 %v1527_v52, %v1525_v49 }
 0xd2b   :  { %v1548_v52 = vsel %vm1463_vm8, %v1547_v35, %v4853_v44  ;;  %v4193_v44 = vld [vmem:[#allocation2 + $0xc] ss:$16 sps:$4 sm:$0xff]   ;;  %v5623_v35 = vmov 5  }
 0xd2c   :  { %v678_v55 = vshrl.u32 %v660_v22, %v676_v50  ;;  %v681_v56 = vadd.s32 127, %v680_v51  ;;  %v1529_v43 = vclz %v3829_v57  ;;  %v4188_v57 = vld [vmem:[#allocation2] ss:$16 sps:$4 sm:$0xff]   ;;  %1415 = vmatprep.subr.bf16.mxu0 %v4193_v44  ;;  %v4241_v44 = vld [vmem:[#allocation2 + $0x10c] ss:$16 sps:$4 sm:$0xff]  }
 0xd2e   :  { %v679_v41 = vor.u32 %v678_v55, %v677_v53  ;;  %v682_v30 = vshll.u32 %v681_v56, 23  ;;  %v3830_v47 = vadd.s32 4294967294, %v1529_v43  ;;  %v4887_v43 = vsel %vm4866_vm9, 0, %v1548_v52  ;;  %v4227_v52 = vld [vmem:[#allocation2 + $0xc8] ss:$16 sps:$4 sm:$0xff]  }
 0xd30   :  { %v683_v45 = vor.u32 4788187, %v682_v30  ;;  %v686_v62 = vcvt.s32.f32 %v679_v41  ;;  %vm3831_vm5 = vcmp.lt.s32.totalorder %v3830_v47, 0  ;;  %v4190_v41 = vld [vmem:[#allocation2 + $0x4] ss:$16 sps:$4 sm:$0xff]  }
 0xd31   :  { %v1532_v1 = vsel %vm3831_vm5, 0, %v3830_v47  ;;  %1374 = vmatprep.subr.bf16.mxu1 %v4190_v41  ;;  %v4194_v47 = vld [vmem:[#allocation2 + $0x20] ss:$16 sps:$4 sm:$0xff]   ;;  %v4233_v41 = vld [vmem:[#allocation2 + $0xe8] ss:$16 sps:$4 sm:$0xff]  }
 0xd32   :  { %v684_v54 = vand.u32 2147483647, %v683_v45  ;;  %v1533_v34 = vsub.s32 32, %v1532_v1  ;;  %v1537_v2 = vsub.s32 4294967266, %v1532_v1  ;;  %v1534_v4 = vshll.u32 %v1525_v49, %v1532_v1  ;;  %v4191_v45 = vld [vmem:[#allocation2 + $0x8] ss:$16 sps:$4 sm:$0xff]   ;;  %1375 = vmatpush1.bf16.msra.mxu1 %v4188_v57 }
 0xd33   :  { %1416 = vmatpush1.bf16.msra.mxu0 %v4191_v45  ;;  %v4579_v1 = vmov 1   ;;  %v4230_v57 = vld [vmem:[#allocation2 + $0xe0] ss:$16 sps:$4 sm:$0xff]   ;;  %v4239_v45 = vld [vmem:[#allocation2 + $0x108] ss:$16 sps:$4 sm:$0xff]  }
 0xd34   :  { %v687_v37 = vmul.f32 %v686_v62, %v684_v54  ;;  %v1535_v5 = vshrl.u32 %v1517_v33, %v1533_v34  ;;  %v1538_v8 = vadd.s32 127, %v1537_v2  ;;  %v4199_v54 = vld [vmem:[#allocation2 + $0x2c] ss:$16 sps:$4 sm:$0xff]  }
 0xd35   :  { %1417 = vmatprep.subr.bf16.mxu0 %v4199_v54  ;;  %v4245_v54 = vld [vmem:[#allocation2 + $0x128] ss:$16 sps:$4 sm:$0xff]  }
 0xd36   :  { %v688_v3 = vxor.u32 2147483648, %v687_v37  ;;  %v1536_v21 = vor.u32 %v1535_v5, %v1534_v4  ;;  %v1539_v24 = vshll.u32 %v1538_v8, 23  ;;  %v4200_v4 = vld [vmem:[#allocation2 + $0x40] ss:$16 sps:$4 sm:$0xff]   ;;  %v4203_v5 = vld [vmem:[#allocation2 + $0x48] ss:$16 sps:$4 sm:$0xff]  }
 0xd37   :  { %1418 = vmatpush1.bf16.msra.mxu0 %v4197_v63  ;;  %v4205_v8 = vld [vmem:[#allocation2 + $0x4c] ss:$16 sps:$4 sm:$0xff]   ;;  %v4248_v63 = vld [vmem:[#allocation2 + $0x140] ss:$16 sps:$4 sm:$0xff]  }
 0xd38   :  { %v689_v11 = vsel %vm606_vm6, %v688_v3, %v687_v37  ;;  %v1540_v12 = vor.u32 4788187, %v1539_v24  ;;  %v1543_v26 = vcvt.s32.f32 %v1536_v21  ;;  %v1657_v37 = vadd.s32 3, %v4887_v43  ;;  %v4202_v3 = vld [vmem:[#allocation2 + $0x44] ss:$16 sps:$4 sm:$0xff]   ;;  %1419 = vmatprep.subr.bf16.mxu0 %v4205_v8 }
 0xd39   :  { %v692_v19 = vsel %vm605_vm7, %v4804_v15, %v689_v11  ;;  %v4196_v15 = vld [vmem:[#allocation2 + $0x24] ss:$16 sps:$4 sm:$0xff]   ;;  %v4580_v11 = vmov 2   ;;  %vm1553_vm7 = vweird.f32 %v4809_v18  ;;  %v4259_v8 = vld [vmem:[#allocation2 + $0x16c] ss:$16 sps:$4 sm:$0xff]  }
 0xd3a   :  { %4523 = vcosq.f32 %v692_v19  ;;  %v1541_v20 = vand.u32 2147483647, %v1540_v12  ;;  %1376 = vmatprep.subr.bf16.mxu1 %v4196_v15  ;;  %v1658_v2 = vand.u32 3, %v1657_v37  ;;  %v4208_v24 = vld [vmem:[#allocation2 + $0x64] ss:$16 sps:$4 sm:$0xff]  }
 0xd3b   :  { %4525 = vsinq.f32 %v692_v19  ;;  %1377 = vmatpush1.bf16.msra.mxu1 %v4194_v47  ;;  %1420 = vmatpush1.bf16.msra.mxu0 %v4203_v5  ;;  %v4206_v12 = vld [vmem:[#allocation2 + $0x60] ss:$16 sps:$4 sm:$0xff]   ;;  %v4244_v47 = vld [vmem:[#allocation2 + $0x124] ss:$16 sps:$4 sm:$0xff]   ;;  %v4247_v37 = vld [vmem:[#allocation2 + $0x12c] ss:$16 sps:$4 sm:$0xff]  }
 0xd3c   :  { %v1544_v32 = vmul.f32 %v1543_v26, %v1541_v20  ;;  %1378 = vmatprep.subr.bf16.mxu1 %v4202_v3  ;;  %vm1660_vm4 = vcmp.eq.s32.totalorder %v1658_v2, 0  ;;  %vm1663_vm5 = vcmp.eq.s32.totalorder %v1658_v2, 2  ;;  %v4209_v20 = vld [vmem:[#allocation2 + $0x68] ss:$16 sps:$4 sm:$0xff]   ;;  %1421 = vmatprep.subr.bf16.mxu0 %v4211_v25  ;;  %vm1659_vm6 = vcmp.lt.s32.totalorder %v1658_v2, 2 }
 0xd3d   :  { %v4242_v15 = vld [vmem:[#allocation2 + $0x120] ss:$16 sps:$4 sm:$0xff]   ;;  %v4250_v2 = vld [vmem:[#allocation2 + $0x144] ss:$16 sps:$4 sm:$0xff]   ;;  %v4251_v3 = vld [vmem:[#allocation2 + $0x148] ss:$16 sps:$4 sm:$0xff]  }
 0xd3e   :  { %v1545_v38 = vxor.u32 2147483648, %v1544_v32  ;;  %v4256_v5 = vld [vmem:[#allocation2 + $0x164] ss:$16 sps:$4 sm:$0xff]   ;;  %v4257_v25 = vld [vmem:[#allocation2 + $0x168] ss:$16 sps:$4 sm:$0xff]  }
 0xd3f   :  { %1379 = vmatpush1.bf16.msra.mxu1 %v4200_v4  ;;  %1422 = vmatpush1.bf16.msra.mxu0 %v4209_v20  ;;  %v4253_v4 = vld [vmem:[#allocation2 + $0x14c] ss:$16 sps:$4 sm:$0xff]  }
 0xd40   :  { %v1546_v16 = vsel %vm1463_vm8, %v1545_v38, %v1544_v32  ;;  %1380 = vmatprep.subr.bf16.mxu1 %v4208_v24  ;;  %v5628_v32 = vmov 3   ;;  %v4214_v38 = vld [vmem:[#allocation2 + $0x84] ss:$16 sps:$4 sm:$0xff]   ;;  %1423 = vmatprep.subr.bf16.mxu0 %v4217_v39  ;;  %v4254_v24 = vld [vmem:[#allocation2 + $0x160] ss:$16 sps:$4 sm:$0xff]  }
 0xd41   :  { %v1549_v40 = vsel %vm4866_vm9, %v4809_v18, %v1546_v16  ;;  %v4212_v16 = vld [vmem:[#allocation2 + $0x80] ss:$16 sps:$4 sm:$0xff]   ;;  %v4265_v20 = vld [vmem:[#allocation2 + $0x18c] ss:$16 sps:$4 sm:$0xff]   ;;  %v4268_v39 = vld [vmem:[#allocation2 + $0x1a4] ss:$16 sps:$4 sm:$0xff]  }
 0xd42   :  { %4527 = vcosq.f32 %v1549_v40 }
 0xd43   :  { %4529 = vsinq.f32 %v1549_v40  ;;  %1381 = vmatpush1.bf16.msra.mxu1 %v4206_v12  ;;  %v4262_v12 = vld [vmem:[#allocation2 + $0x184] ss:$16 sps:$4 sm:$0xff]  }
 0xd44   :  { %v4524_v10 = vpop.eup %4523  ;;  %1382 = vmatprep.subr.bf16.mxu1 %v4214_v38  ;;  %v4263_v38 = vld [vmem:[#allocation2 + $0x188] ss:$16 sps:$4 sm:$0xff]  }
 0xd45   :  { %v4526_v46 = vpop.eup %4525  ;;  %v703_v48 = vxor.u32 2147483648, %v4524_v10 }
 0xd46   :  { %v700_v49 = vxor.u32 2147483648, %v4526_v46 }
 0xd47   :  { %v704_v23 = vsel %vm702_vm12, %v703_v48, %v4526_v46  ;;  %v808_v22 = vsel %vm806_vm13, %v703_v48, %v4526_v46  ;;  %v4220_v46 = vld [vmem:[#allocation2 + $0xa4] ss:$16 sps:$4 sm:$0xff]   ;;  %1383 = vmatpush1.bf16.msra.mxu1 %v4212_v16  ;;  %v4218_v48 = vld [vmem:[#allocation2 + $0xa0] ss:$16 sps:$4 sm:$0xff]   ;;  %v4271_v16 = vld [vmem:[#allocation2 + $0x1ac] ss:$16 sps:$4 sm:$0xff]  }
 0xd48   :  { %v701_v50 = vsel %vm699_vm11, %v4524_v10, %v700_v49  ;;  %v805_v51 = vsel %vm803_vm14, %v4524_v10, %v700_v49  ;;  %v4215_v10 = vld [vmem:[#allocation2 + $0x88] ss:$16 sps:$4 sm:$0xff]   ;;  %v4223_v49 = vld [vmem:[#allocation2 + $0xac] ss:$16 sps:$4 sm:$0xff]   ;;  %1384 = vmatprep.subr.bf16.mxu1 %v4220_v46 }
 0xd49   :  { %v705_v53 = vsel %vm698_vm10, %v701_v50, %v704_v23  ;;  %v809_v55 = vsel %vm802_vm15, %v805_v51, %v808_v22  ;;  %1424 = vmatpush1.bf16.msra.mxu0 %v4215_v10  ;;  %v4221_v23 = vld [vmem:[#allocation2 + $0xa8] ss:$16 sps:$4 sm:$0xff]   ;;  %v4226_v22 = vld [vmem:[#allocation2 + $0xc4] ss:$16 sps:$4 sm:$0xff]   ;;  %v4229_v50 = vld [vmem:[#allocation2 + $0xcc] ss:$16 sps:$4 sm:$0xff]  }
 0xd4a   :  { %v4881_v56 = vsel %vm696_vm1, nan, %v705_v53  ;;  %v810_v30 = vsel %vm696_vm1, nan, %v809_v55  ;;  %1425 = vmatprep.subr.bf16.mxu0 %v4223_v49  ;;  %v4224_v51 = vld [vmem:[#allocation2 + $0xc0] ss:$16 sps:$4 sm:$0xff]   ;;  %v4232_v53 = vld [vmem:[#allocation2 + $0xe4] ss:$16 sps:$4 sm:$0xff]  }
 0xd4b   :  { %915 = vperm.xlu0 %4149, %v4881_v56   ;;  %829 = vperm.xlu1 %4145, %v4881_v56   ;;  %v4890_v62 = vsub.f32 %v810_v30, %v4881_v56  ;;  %v4235_v55 = vld [vmem:[#allocation2 + $0xec] ss:$16 sps:$4 sm:$0xff]   ;;  %v4238_v30 = vld [vmem:[#allocation2 + $0x104] ss:$16 sps:$4 sm:$0xff]   ;;  %v4269_v10 = vld [vmem:[#allocation2 + $0x1a8] ss:$16 sps:$4 sm:$0xff]  }
 0xd4c   :  { %v4895_v33 = vpop.eup %4527  ;;  %1385 = vmatpush1.bf16.msra.mxu1 %v4218_v48  ;;  %v4272_v48 = vld [vmem:[#allocation2 + $0x1c0] ss:$16 sps:$4 sm:$0xff]   ;;  %v4274_v49 = vld [vmem:[#allocation2 + $0x1c4] ss:$16 sps:$4 sm:$0xff]  }
 0xd4d   :  { %v4899_v34 = vpop.eup %4529  ;;  %v1560_v21 = vxor.u32 2147483648, %v4895_v33  ;;  %1426 = vmatpush1.bf16.msra.mxu0 %v4221_v23  ;;  %1386 = vmatprep.subr.bf16.mxu1 %v4226_v22  ;;  %v4275_v23 = vld [vmem:[#allocation2 + $0x1c8] ss:$16 sps:$4 sm:$0xff]   ;;  %v4277_v22 = vld [vmem:[#allocation2 + $0x1cc] ss:$16 sps:$4 sm:$0xff]  }
 0xd4e   :  { %v1557_v19 = vxor.u32 2147483648, %v4899_v34  ;;  %1427 = vmatprep.subr.bf16.mxu0 %v4229_v50  ;;  %v4280_v50 = vld [vmem:[#allocation2 + $0x1e4] ss:$16 sps:$4 sm:$0xff]  }
 0xd4f   :  { %4152 = vset.pattern.permute.xlu0 %v4572_v59  ;;  %4146 = vset.pattern.permute.xlu1 %v4579_v1  ;;  %v1665_v31 = vsel %vm1663_vm5, %v1560_v21, %v4899_v34 }
 0xd50   :  { %849 = vperm.xlu1 %4146, %v4881_v56   ;;  %822 = vperm.xlu0 %4152, %v4890_v62   ;;  %v1662_v26 = vsel %vm1660_vm4, %v4895_v33, %v1557_v19 }
 0xd51   :  { %v1666_v17 = vsel %vm1659_vm6, %v1662_v26, %v1665_v31  ;;  %1387 = vmatpush1.bf16.msra.mxu1 %v4224_v51  ;;  %1428 = vmatpush1.bf16.msra.mxu0 %v4227_v52  ;;  %v4260_v26 = vld [vmem:[#allocation2 + $0x180] ss:$16 sps:$4 sm:$0xff]   ;;  %v1554_v31 = vand.u32 3, %v4887_v43 }
 0xd52   :  { %v4922_v40 = vsel %vm1553_vm7, nan, %v1666_v17  ;;  %1388 = vmatprep.subr.bf16.mxu1 %v4232_v53  ;;  %1429 = vmatprep.subr.bf16.mxu0 %v4235_v55  ;;  %v4266_v17 = vld [vmem:[#allocation2 + $0x1a0] ss:$16 sps:$4 sm:$0xff]  }
 0xd53   :  { %vm1556_vm8 = vcmp.eq.s32.totalorder %v1554_v31, 0  ;;  %vm1559_vm9 = vcmp.eq.s32.totalorder %v1554_v31, 2  ;;  %vm1555_vm10 = vcmp.lt.s32.totalorder %v1554_v31, 2 }
 0xd54   :  { %4147 = vset.pattern.permute.xlu1 %v4580_v11  ;;  %4158 = vset.pattern.permute.xlu0 %v5621_v14  ;;  %v1558_v43 = vsel %vm1556_vm8, %v4895_v33, %v1557_v19  ;;  %v1561_v46 = vsel %vm1559_vm9, %v1560_v21, %v4899_v34  ;;  %v4283_v33 = vld [vmem:[#allocation2 + $0x1ec] ss:$16 sps:$4 sm:$0xff]   ;;  %v4281_v34 = vld [vmem:[#allocation2 + $0x1e8] ss:$16 sps:$4 sm:$0xff]  }
 0xd55   :  { %871 = vperm.xlu1 %4147, %v4881_v56   ;;  %953 = vperm.xlu0 %4158, %v4890_v62  }
 0xd56   :  { %1389 = vmatpush1.bf16.msra.mxu1 %v4230_v57  ;;  %1430 = vmatpush1.bf16.msra.mxu0 %v4233_v41 }
 0xd57   :  { %1390 = vmatprep.subr.bf16.mxu1 %v4238_v30  ;;  %1431 = vmatprep.subr.bf16.mxu0 %v4241_v44 }
 0xd59   :  { %4148 = vset.pattern.permute.xlu1 %v5628_v32  ;;  %4160 = vset.pattern.permute.xlu0 %v5619_v36 }
 0xd5a   :  { %893 = vperm.xlu1 %4148, %v4881_v56   ;;  %981 = vperm.xlu0 %4160, %v4881_v56  }
 0xd5b   :  { %1432 = vmatpush1.bf16.msra.mxu0 %v4239_v45 }
 0xd5c   :  { %1433 = vmatprep.subr.bf16.mxu0 %v4247_v37 }
 0xd5e   :  { %4150 = vset.pattern.permute.xlu1 %v5623_v35  ;;  %4162 = vset.pattern.permute.xlu0 %v4579_v1 }
 0xd5f   :  { %937 = vperm.xlu1 %4150, %v4881_v56   ;;  %1818 = vperm.xlu0 %4162, %v4922_v40  }
 0xd60   :  { %1434 = vmatpush1.bf16.msra.mxu0 %v4245_v54 }
 0xd61   :  { %1435 = vmatprep.subr.bf16.mxu0 %v4253_v4 }
 0xd63   :  { %4151 = vset.pattern.permute.xlu1 %v5621_v14  ;;  %4165 = vset.pattern.permute.xlu0 %v4580_v11 }
 0xd64   :  { %959 = vperm.xlu1 %4151, %v4881_v56   ;;  %v4236_v56 = vld [vmem:[#allocation2 + $0x100] ss:$16 sps:$4 sm:$0xff]   ;;  %1436 = vmatpush1.bf16.msra.mxu0 %v4251_v3 }
 0xd65   :  { %1391 = vmatpush1.bf16.msra.mxu1 %v4236_v56  ;;  %1437 = vmatprep.subr.bf16.mxu0 %v4259_v8  ;;  %v4961_v56 = vld [vmem:[%s5613_s3] sm:$0xff] }
 0xd66   :  { %1392 = vmatprep.subr.bf16.mxu1 %v4244_v47  ;;  %v4978_v44 = vrot.slane %v4961_v56, %v4676_v9  ;;  %v4986_v47 = vrot.slane %v4961_v56, %v4699_v29  ;;  %v4996_v3 = vrot.slane %v4961_v56, %v4709_v42 }
 0xd68   :  { %4153 = vset.pattern.permute.xlu1 %v4579_v1  ;;  %1438 = vmatpush1.bf16.msra.mxu0 %v4257_v25 }
 0xd69   :  { %843 = vperm.xlu1 %4153, %v4890_v62   ;;  %1393 = vmatpush1.bf16.msra.mxu1 %v4242_v15 }
 0xd6a   :  { %1394 = vmatprep.subr.bf16.mxu1 %v4250_v2  ;;  %1439 = vmatprep.subr.bf16.mxu0 %v4265_v20  ;;  %v5008_v20 = vrot.slane %v4961_v56, %v4724_v60 }
 0xd6c   :  { %1440 = vmatpush1.bf16.msra.mxu0 %v4263_v38 }
 0xd6d   :  { %4154 = vset.pattern.permute.xlu1 %v4580_v11  ;;  %1395 = vmatpush1.bf16.msra.mxu1 %v4248_v63 }
 0xd6e   :  { %865 = vperm.xlu1 %4154, %v4890_v62   ;;  %1396 = vmatprep.subr.bf16.mxu1 %v4256_v5 }
 0xd6f   :  { %1441 = vmatprep.subr.bf16.mxu0 %v4271_v16 }
 0xd70   :  { %1442 = vmatpush1.bf16.msra.mxu0 %v4269_v10 }
 0xd71   :  { %1397 = vmatpush1.bf16.msra.mxu1 %v4254_v24  ;;  %1443 = vmatprep.subr.bf16.mxu0 %v4277_v22 }
 0xd72   :  { %4155 = vset.pattern.permute.xlu1 %v5628_v32  ;;  %1398 = vmatprep.subr.bf16.mxu1 %v4262_v12 }
 0xd73   :  { %887 = vperm.xlu1 %4155, %v4890_v62  }
 0xd74   :  { %1444 = vmatpush1.bf16.msra.mxu0 %v4275_v23  ;;  %v5020_v23 = vrot.slane %v4961_v56, %v4727_v61 }
 0xd75   :  { %1399 = vmatpush1.bf16.msra.mxu1 %v4260_v26  ;;  %1445 = vmatprep.subr.bf16.mxu0 %v4283_v33 }
 0xd76   :  { %1400 = vmatprep.subr.bf16.mxu1 %v4268_v39 }
 0xd77   :  { %4156 = vset.pattern.permute.xlu1 %v5625_v58 }
 0xd78   :  { %909 = vperm.xlu1 %4156, %v4890_v62   ;;  %1446 = vmatpush1.bf16.msra.mxu0 %v4281_v34 }
 0xd79   :  { %1401 = vmatpush1.bf16.msra.mxu1 %v4266_v17 }
 0xd7a   :  { %1402 = vmatprep.subr.bf16.mxu1 %v4274_v49 }
 0xd7c   :  { %4157 = vset.pattern.permute.xlu1 %v5623_v35 }
 0xd7d   :  { %931 = vperm.xlu1 %4157, %v4890_v62   ;;  %1403 = vmatpush1.bf16.msra.mxu1 %v4272_v48 }
 0xd7e   :  { %1404 = vmatprep.subr.bf16.mxu1 %v4280_v50 }
 0xd81   :  { %4159 = vset.pattern.permute.xlu1 %v5619_v36 }
 0xd82   :  { %975 = vperm.xlu1 %4159, %v4890_v62   ;;  %v1562_v62 = vsel %vm1555_vm10, %v1558_v43, %v1561_v46 }
 0xd83   :  { %v4952_v19 = vsel %vm1553_vm7, nan, %v1562_v62 }
 0xd86   :  { %4161 = vset.pattern.permute.xlu1 %v4572_v59  ;;  %v4278_v59 = vld [vmem:[#allocation2 + $0x1e0] ss:$16 sps:$4 sm:$0xff]  }
 0xd87   :  { %1727 = vperm.xlu1 %4161, %v4922_v40   ;;  %1405 = vmatpush1.bf16.msra.mxu1 %v4278_v59 }
 0xd8b   :  { %1718 = vperm.xlu1 %4161, %v4952_v19  }
 0xd8f   :  { %4163 = vset.pattern.permute.xlu1 %v4579_v1  ;;  %v4966_v1 = vld [vmem:[%s5613_s3 + $0x8] sm:$0xff] }
 0xd90   :  { %1810 = vperm.xlu1 %4163, %v4952_v19   ;;  %v4974_v30 = vrot.slane %v4966_v1, %v4696_v28  ;;  %v4982_v15 = vrot.slane %v4966_v1, %v4676_v9  ;;  %v4990_v54 = vrot.slane %v4966_v1, %v4699_v29  ;;  %v5000_v4 = vrot.slane %v4966_v1, %v4709_v42 }
 0xd91   :  { %v5012_v26 = vrot.slane %v4966_v1, %v4724_v60  ;;  %v5024_v22 = vrot.slane %v4966_v1, %v4727_v61 }
 0xd93   :  { %5647 = vst [vmem:[#allocation9_spill] sm:$0xff] %v5024_v22 }
 0xd94   :  { %4164 = vset.pattern.permute.xlu1 %v4580_v11  ;;  %v4970_v11 = vrot.slane %v4961_v56, %v4696_v28 }
 0xdca   :  { %v830_v18 = vpop.permute.xlu1 %829  ;;  %v916_v41 = vpop.permute.xlu0 %915 }
 0xdcf   :  { %v850_v21 = vpop.permute.xlu1 %849  ;;  %v823_v37 = vpop.permute.xlu0 %822 }
 0xdd0   :  { %v825_v8 = vmul.f32 %v823_v37, %v4978_v44  ;;  %v826_v24 = vmul.f32 %v823_v37, %v4982_v15 }
 0xdd2   :  { %v832_v16 = vadd.f32 %v830_v18, %v825_v8  ;;  %v833_v10 = vadd.f32 %v830_v18, %v826_v24  ;;  %v5028_v18 = vrot.slane %v4961_v56, %v4737_v6 }
 0xdd4   :  { %v872_v51 = vpop.permute.xlu1 %871  ;;  %5648 = vst [vmem:[#allocation10_spill] sm:$0xff] %v5028_v18 }
 0xdd9   :  { %v894_v52 = vpop.permute.xlu1 %893 }
 0xdde   :  { %v938_v53 = vpop.permute.xlu1 %937 }
 0xde3   :  { %v960_v55 = vpop.permute.xlu1 %959 }
 0xde8   :  { %v844_v57 = vpop.permute.xlu1 %843 }
 0xde9   :  { %v846_v63 = vmul.f32 %v844_v57, %v4970_v11  ;;  %v847_v2 = vmul.f32 %v844_v57, %v4974_v30 }
 0xdeb   :  { %v852_v31 = vadd.f32 %v850_v21, %v846_v63  ;;  %v853_v38 = vadd.f32 %v850_v21, %v847_v2  ;;  %v5032_v21 = vrot.slane %v4966_v1, %v4737_v6 }
 0xded   :  { %v866_v45 = vpop.permute.xlu1 %865  ;;  %v854_v50 = vmul.f32 %v852_v31, %v832_v16  ;;  %v855_v33 = vmul.f32 %v853_v38, %v833_v10  ;;  %5649 = vst [vmem:[#allocation11_spill] sm:$0xff] %v5032_v21  ;;  %v5040_v31 = vrot.slane %v4961_v56, %v4748_v27  ;;  %v5044_v38 = vrot.slane %v4966_v1, %v4748_v27 }
 0xdee   :  { %v868_v25 = vmul.f32 %v866_v45, %v4986_v47  ;;  %v869_v12 = vmul.f32 %v866_v45, %v4990_v54 }
 0xdef   :  { %5650 = vst [vmem:[#allocation12_spill] sm:$0xff] %v5040_v31  ;;  %5651 = vst [vmem:[#allocation13_spill] sm:$0xff] %v5044_v38 }
 0xdf0   :  { %v874_v43 = vadd.f32 %v872_v51, %v868_v25  ;;  %v875_v46 = vadd.f32 %v872_v51, %v869_v12  ;;  %v954_v51 = vpop.permute.xlu0 %953 }
 0xdf1   :  { %v956_v25 = vmul.f32 %v954_v51, %v5028_v18  ;;  %v957_v12 = vmul.f32 %v954_v51, %v5032_v21 }
 0xdf2   :  { %v888_v5 = vpop.permute.xlu1 %887  ;;  %v876_v57 = vmul.f32 %v874_v43, %v854_v50  ;;  %v877_v45 = vmul.f32 %v875_v46, %v855_v33 }
 0xdf3   :  { %v890_v39 = vmul.f32 %v888_v5, %v4996_v3  ;;  %v891_v17 = vmul.f32 %v888_v5, %v5000_v4  ;;  %v962_v10 = vadd.f32 %v960_v55, %v956_v25  ;;  %v963_v43 = vadd.f32 %v960_v55, %v957_v12  ;;  %v5056_v55 = vld [vmem:[%s5613_s3 + $0x10] sm:$0xff] }
 0xdf4   :  { %v982_v33 = vpop.permute.xlu0 %981  ;;  %v1670_v25 = vmul.f32 2.0, %v5056_v55  ;;  %v5066_v12 = vsub.f32 1.0, %v4966_v1 }
 0xdf5   :  { %v896_v59 = vadd.f32 %v894_v52, %v890_v39  ;;  %v897_v34 = vadd.f32 %v894_v52, %v891_v17 }
 0xdf7   :  { %v910_v62 = vpop.permute.xlu1 %909  ;;  %v898_v5 = vmul.f32 %v896_v59, %v876_v57  ;;  %v899_v8 = vmul.f32 %v897_v34, %v877_v45 }
 0xdf8   :  { %v912_v48 = vmul.f32 %v910_v62, %v5008_v20  ;;  %v913_v49 = vmul.f32 %v910_v62, %v5012_v26 }
 0xdfa   :  { %v918_v37 = vadd.f32 %v916_v41, %v912_v48  ;;  %v919_v63 = vadd.f32 %v916_v41, %v913_v49 }
 0xdfc   :  { %v932_v2 = vpop.permute.xlu1 %931  ;;  %v920_v41 = vmul.f32 %v918_v37, %v898_v5  ;;  %v921_v39 = vmul.f32 %v919_v63, %v899_v8  ;;  %v1668_v5 = vmul.f32 2.0, %v4961_v56  ;;  %v1669_v8 = vmul.f32 2.0, %v4966_v1 }
 0xdfd   :  { %v934_v24 = vmul.f32 %v932_v2, %v5020_v23  ;;  %v935_v52 = vmul.f32 %v932_v2, %v5024_v22  ;;  %v5084_v1 = vadd.f32 -1.0, %v1670_v25 }
 0xdff   :  { %v940_v17 = vadd.f32 %v938_v53, %v934_v24  ;;  %v941_v16 = vadd.f32 %v938_v53, %v935_v52  ;;  %v5051_v53 = vld [vmem:[%s5613_s3 + $0x18] sm:$0xff] }
 0xe00   :  { %v1671_v24 = vmul.f32 2.0, %v5051_v53  ;;  %v5062_v52 = vsub.f32 1.0, %v5051_v53 }
 0xe01   :  { %v942_v46 = vmul.f32 %v940_v17, %v920_v41  ;;  %v943_v62 = vmul.f32 %v941_v16, %v921_v39  ;;  %v976_v48 = vpop.permute.xlu1 %975  ;;  %v5069_v41 = vsub.f32 1.0, %v4961_v56  ;;  %v5072_v39 = vsub.f32 1.0, %v5056_v55 }
 0xe02   :  { %v978_v49 = vmul.f32 %v976_v48, %v5040_v31  ;;  %v979_v50 = vmul.f32 %v976_v48, %v5044_v38  ;;  %v5074_v17 = vadd.f32 -1.0, %v1668_v5  ;;  %v5076_v16 = vadd.f32 -1.0, %v1669_v8 }
 0xe03   :  { %v964_v59 = vmul.f32 %v962_v10, %v942_v46  ;;  %v965_v34 = vmul.f32 %v963_v43, %v943_v62  ;;  %v5078_v10 = vadd.f32 -1.0, %v1671_v24  ;;  %v1707_v43 = vrot.slane %v5062_v52, %v4676_v9 }
 0xe04   :  { %v984_v51 = vadd.f32 %v982_v33, %v978_v49  ;;  %v985_v57 = vadd.f32 %v982_v33, %v979_v50  ;;  %v1683_v46 = vrot.slane %v5051_v53, %v4676_v9  ;;  %v1699_v56 = vrot.slane %v5066_v12, %v4676_v9 }
 0xe05   :  { %v1679_v48 = vrot.slane %v5056_v55, %v4676_v9  ;;  %v1695_v49 = vrot.slane %v5069_v41, %v4676_v9  ;;  %v1745_v50 = vrot.slane %v5078_v10, %v4676_v9  ;;  %v1703_v33 = vrot.slane %v5072_v39, %v4676_v9 }
 0xe06   :  { %v986_v45 = vmul.f32 %v984_v51, %v964_v59  ;;  %v987_v2 = vmul.f32 %v985_v57, %v965_v34  ;;  %v1728_v62 = vpop.permute.xlu1 %1727  ;;  %v1733_v59 = vrot.slane %v5074_v17, %v4676_v9  ;;  %v1737_v34 = vrot.slane %v5076_v16, %v4676_v9 }
 0xe07   :  { %v1741_v51 = vrot.slane %v5084_v1, %v4676_v9  ;;  %v1749_v35 = vmul.f32 %v1745_v50, %v1728_v62 }
 0xe08   :  { %v988_v37 = vpack.c.bf16 %v986_v45, %v986_v45  ;;  %v989_v63 = vpack.c.bf16 %v987_v2, %v987_v2  ;;  %v1746_v31 = vmul.f32 %v1733_v59, %v1728_v62  ;;  %v1747_v38 = vmul.f32 %v1737_v34, %v1728_v62 }
 0xe09   :  { %v1748_v27 = vmul.f32 %v1741_v51, %v1728_v62  ;;  %v1792_v62 = vrot.slane %v5066_v12, %v4696_v28  ;;  %v1796_v59 = vrot.slane %v5072_v39, %v4696_v28  ;;  %v1824_v34 = vrot.slane %v5074_v17, %v4696_v28 }
 0xe0a   :  { %1406 = vmatprep.mubr.bf16.mxu1 %v989_v63  ;;  %1447 = vmatprep.mubr.bf16.mxu0 %v989_v63  ;;  %v1800_v51 = vrot.slane %v5062_v52, %v4696_v28 }
 0xe0b   :  { %1407 = vmatmul.mubr.bf16.vlgmr.msra.gmra.mrb[12].mxu1 %v988_v37  ;;  %1448 = vmatmul.mubr.bf16.vlgmr.msra.gmra.mrb[12].mxu0 %v988_v37 }
 0xede   :  { %v1408_v57 = vpop.f32.mrb[12].mxu1  ;;  %v1449_v45 = vpop.f32.mrb[12].mxu0 }
 0xedf   :  { %v1685_v2 = vmul.f32 %v1408_v57, %v4982_v15  ;;  %v1711_v37 = vmul.f32 %v1707_v43, %v1408_v57  ;;  %v1687_v63 = vmul.f32 %v1683_v46, %v1449_v45  ;;  %v1410_v5 = vpop.f32.mrb[13].mxu1  ;;  %v1451_v8 = vpop.f32.mrb[13].mxu0  ;;  %v1709_v24 = vmul.f32 %v1699_v56, %v1449_v45 }
 0xee0   :  { %v1686_v25 = vmul.f32 %v1679_v48, %v1410_v5  ;;  %v1708_v0 = vmul.f32 %v1695_v49, %v1410_v5  ;;  %v1412_v36 = vpop.f32.mrb[14].mxu1  ;;  %v1453_v14 = vpop.f32.mrb[14].mxu0  ;;  %v1684_v7 = vmul.f32 %v1451_v8, %v4978_v44  ;;  %v1710_v32 = vmul.f32 %v1703_v33, %v1451_v8 }
 0xee1   :  { %v1715_v58 = vadd.f32 %v1711_v37, %v1687_v63  ;;  %v1413_v13 = vpop.f32.mrb[15].mxu1  ;;  %v1454_v9 = vpop.f32.mrb[15].mxu0  ;;  %v1713_v43 = vadd.f32 %v1709_v24, %v1685_v2  ;;  %v1828_v2 = vrot.slane %v5076_v16, %v4696_v28  ;;  %v1832_v63 = vrot.slane %v5084_v1, %v4696_v28 }
 0xee2   :  { %v1719_v15 = vpop.permute.xlu1 %1718  ;;  %v1712_v46 = vadd.f32 %v1708_v0, %v1684_v7  ;;  %v1714_v21 = vadd.f32 %v1710_v32, %v1686_v25  ;;  %v5652_v0 = vmov 3   ;;  %v1819_v7 = vpop.permute.xlu0 %1818 }
 0xee3   :  { %v1724_v18 = vmul.f32 %v1719_v15, %v1451_v8  ;;  %v1753_v56 = vmul.f32 %v1749_v35, %v1715_v58  ;;  %v1721_v48 = vmul.f32 %v1719_v15, %v1408_v57  ;;  %v1722_v49 = vmul.f32 %v1719_v15, %v1410_v5 }
 0xee4   :  { %v1751_v36 = vmul.f32 %v1747_v38, %v1713_v43  ;;  %v1723_v14 = vmul.f32 %v1719_v15, %v1449_v45  ;;  %v1750_v50 = vmul.f32 %v1746_v31, %v1712_v46  ;;  %v1752_v44 = vmul.f32 %v1748_v27, %v1714_v21 }
 0xee5   :  { %v5104_v37 = vadd.f32 %v1753_v56, %v1724_v18  ;;  %v5653_v58 = vlaneseq  ;;  %v1788_v21 = vrot.slane %v5069_v41, %v4696_v28  ;;  %v1776_v38 = vrot.slane %v5056_v55, %v4696_v28 }
 0xee6   :  { %v1755_v33 = vadd.f32 %v1751_v36, %v1722_v49  ;;  %v1754_v13 = vadd.f32 %v1750_v50, %v1721_v48  ;;  %v1756_v9 = vadd.f32 %v1752_v44, %v1723_v14  ;;  %v1811_v32 = vpop.permute.xlu1 %1810  ;;  %v1780_v45 = vrot.slane %v5051_v53, %v4696_v28 }
 0xee7   :  { %v5112_v27 = vand.u32 127, %v5653_v58  ;;  %v1837_v36 = vmul.f32 %v1824_v34, %v1819_v7 }
 0xee8   :  { %1760 = vrot.lane.b32.xlu0 %v1755_v33, %s4585_s23  ;;  %1758 = vrot.lane.b32.xlu1 %v1754_v13, %s4585_s23  ;;  %v1815_v22 = vmul.f32 %v1811_v32, %v1756_v9 }
 0xee9   :  { %vm1768_vm11 = vcmp.lt.s32.totalorder %v5112_v27, 64  ;;  %vm1857_vm12 = vcmp.lt.s32.totalorder %v5112_v27, 32  ;;  %vm1882_vm13 = vcmp.lt.s32.totalorder %v5112_v27, 96  ;;  %vm1959_vm14 = vcmp.lt.s32.totalorder %v5112_v27, 16 }
 0xeea   :  { %vm1984_vm15 = vcmp.lt.s32.totalorder %v5112_v27, 112  ;;  %vm2061_vm1 = vcmp.lt.s32.totalorder %v5112_v27, 8  ;;  %vm2086_vm4 = vcmp.lt.s32.totalorder %v5112_v27, 120  ;;  %vm2163_vm5 = vcmp.lt.s32.totalorder %v5112_v27, 4 }
 0xeeb   :  { %vm2188_vm6 = vcmp.lt.s32.totalorder %v5112_v27, 124  ;;  %vm2265_vm7 = vcmp.lt.s32.totalorder %v5112_v27, 2  ;;  %vm2290_vm8 = vcmp.lt.s32.totalorder %v5112_v27, 126  ;;  %vm2367_vm9 = vcmp.lt.s32.totalorder %v5112_v27, 1 }
 0xeec   :  { %1764 = vrot.lane.b32.xlu0 %v5104_v37, %s4585_s23  ;;  %1762 = vrot.lane.b32.xlu1 %v1756_v9, %s4585_s23  ;;  %vm2392_vm10 = vcmp.lt.s32.totalorder %v5112_v27, 127 }
 0xef0   :  { %1912 = vperm.xlu0 %4165, %v4952_v19   ;;  %1920 = vperm.xlu1 %4164, %v4922_v40  }
 0xef4   :  { %4166 = vset.pattern.permute.xlu0 %v5652_v0  ;;  %4167 = vset.pattern.permute.xlu1 %v5652_v0  ;;  %v1839_v0 = vmul.f32 %v1832_v63, %v1819_v7  ;;  %v1890_v63 = vrot.slane %v5069_v41, %v4699_v29 }
 0xf5a   :  { %v1761_v35 = vpop.permute.xlu0 %1760  ;;  %v1759_v18 = vpop.permute.xlu1 %1758 }
 0xf5b   :  { %v1771_v31 = vsel %vm1768_vm11, %v1759_v18, %v1761_v35 }
 0xf5c   :  { %v1801_v24 = vmul.f32 %v1788_v21, %v1771_v31  ;;  %v1782_v46 = vmul.f32 %v1771_v31, %v4974_v30  ;;  %v1838_v21 = vmul.f32 %v1828_v2, %v1819_v7 }
 0xf5e   :  { %v1765_v57 = vpop.permute.xlu0 %1764  ;;  %v1763_v8 = vpop.permute.xlu1 %1762 }
 0xf5f   :  { %v1772_v5 = vsel %vm1768_vm11, %v1765_v57, %v1759_v18  ;;  %v1769_v15 = vsel %vm1768_vm11, %v1763_v8, %v1765_v57  ;;  %v1770_v43 = vsel %vm1768_vm11, %v1761_v35, %v1763_v8  ;;  %v1813_v57 = vmul.f32 %v1811_v32, %v1754_v13 }
 0xf60   :  { %v1781_v25 = vmul.f32 %v1772_v5, %v4970_v11  ;;  %v1783_v56 = vmul.f32 %v1776_v38, %v1770_v43  ;;  %v1802_v48 = vmul.f32 %v1792_v62, %v1770_v43  ;;  %v1803_v49 = vmul.f32 %v1796_v59, %v1769_v15 }
 0xf61   :  { %v1804_v14 = vmul.f32 %v1800_v51, %v1772_v5  ;;  %v1784_v44 = vmul.f32 %v1780_v45, %v1769_v15  ;;  %v1836_v11 = vrot.slane %v5078_v10, %v4696_v28  ;;  %v1814_v59 = vmul.f32 %v1811_v32, %v1755_v33 }
 0xf62   :  { %v1805_v50 = vadd.f32 %v1801_v24, %v1781_v25  ;;  %v1806_v58 = vadd.f32 %v1802_v48, %v1782_v46  ;;  %v1807_v18 = vadd.f32 %v1803_v49, %v1783_v56  ;;  %v1816_v28 = vmul.f32 %v1811_v32, %v5104_v37 }
 0xf63   :  { %v1808_v8 = vadd.f32 %v1804_v14, %v1784_v44  ;;  %v1840_v62 = vmul.f32 %v1836_v11, %v1819_v7  ;;  %v1894_v5 = vrot.slane %v5066_v12, %v4699_v29  ;;  %v1926_v24 = vrot.slane %v5074_v17, %v4699_v29 }
 0xf64   :  { %v1841_v6 = vmul.f32 %v1837_v36, %v1805_v50  ;;  %v1843_v35 = vmul.f32 %v1839_v0, %v1807_v18  ;;  %v1842_v31 = vmul.f32 %v1838_v21, %v1806_v58  ;;  %v1930_v25 = vrot.slane %v5076_v16, %v4699_v29 }
 0xf65   :  { %v1844_v51 = vmul.f32 %v1840_v62, %v1808_v8  ;;  %v1865_v43 = vrot.slane %v5056_v55, %v4699_v29  ;;  %v1869_v46 = vrot.slane %v5051_v53, %v4699_v29  ;;  %v1898_v49 = vrot.slane %v5072_v39, %v4699_v29 }
 0xf66   :  { %v1845_v30 = vadd.f32 %v1841_v6, %v1813_v57  ;;  %v5145_v38 = vadd.f32 %v1843_v35, %v1815_v22  ;;  %v1846_v34 = vadd.f32 %v1842_v31, %v1814_v59  ;;  %v5654_v6 = vmov 4  }
 0xf67   :  { %v5149_v13 = vadd.f32 %v1844_v51, %v1816_v28  ;;  %v1902_v36 = vrot.slane %v5062_v52, %v4699_v29  ;;  %v1934_v8 = vrot.slane %v5084_v1, %v4699_v29 }
 0xf68   :  { %1849 = vrot.lane.b32.xlu1 %v1845_v30, %s4586_s24  ;;  %1853 = vrot.lane.b32.xlu0 %v5145_v38, %s4586_s24 }
 0xf6c   :  { %1851 = vrot.lane.b32.xlu1 %v1846_v34, %s4586_s24  ;;  %1874 = vrot.lane.b32.xlu0 %v1845_v30, %s4587_s25 }
 0xf6f   :  { %v1921_v22 = vpop.permute.xlu1 %1920  ;;  %v1913_v37 = vpop.permute.xlu0 %1912 }
 0xf70   :  { %1855 = vrot.lane.b32.xlu1 %v5149_v13, %s4586_s24  ;;  %1878 = vrot.lane.b32.xlu0 %v5145_v38, %s4587_s25  ;;  %v1915_v57 = vmul.f32 %v1913_v37, %v1845_v30  ;;  %v1916_v35 = vmul.f32 %v1913_v37, %v1846_v34  ;;  %v1939_v31 = vmul.f32 %v1926_v24, %v1921_v22 }
 0xf71   :  { %v1940_v62 = vmul.f32 %v1930_v25, %v1921_v22 }
 0xf74   :  { %1876 = vrot.lane.b32.xlu1 %v1846_v34, %s4587_s25  ;;  %2022 = vperm.xlu0 %4166, %v4922_v40  }
 0xf78   :  { %1880 = vrot.lane.b32.xlu1 %v5149_v13, %s4587_s25  ;;  %4169 = vset.pattern.permute.xlu0 %v5654_v6 }
 0xf7c   :  { %2014 = vperm.xlu1 %4167, %v4952_v19  }
 0xf80   :  { %4168 = vset.pattern.permute.xlu1 %v5654_v6 }
 0xfda   :  { %v1850_v33 = vpop.permute.xlu1 %1849  ;;  %v1854_v9 = vpop.permute.xlu0 %1853 }
 0xfde   :  { %v1852_v7 = vpop.permute.xlu1 %1851  ;;  %v1875_v32 = vpop.permute.xlu0 %1874 }
 0xfdf   :  { %v1860_v2 = vsel %vm1857_vm12, %v1850_v33, %v1852_v7  ;;  %v1859_v14 = vsel %vm1857_vm12, %v1852_v7, %v1854_v9 }
 0xfe0   :  { %v1871_v50 = vmul.f32 %v1860_v2, %v4990_v54  ;;  %v1938_v54 = vrot.slane %v5078_v10, %v4699_v29  ;;  %v1872_v6 = vmul.f32 %v1865_v43, %v1859_v14  ;;  %v1941_v2 = vmul.f32 %v1934_v8, %v1921_v22 }
 0xfe2   :  { %v1856_v45 = vpop.permute.xlu1 %1855  ;;  %v1879_v56 = vpop.permute.xlu0 %1878 }
 0xfe3   :  { %v1861_v15 = vsel %vm1857_vm12, %v1856_v45, %v1850_v33  ;;  %v1858_v58 = vsel %vm1857_vm12, %v1854_v9, %v1856_v45 }
 0xfe4   :  { %v1870_v18 = vmul.f32 %v1861_v15, %v4986_v47  ;;  %v1873_v33 = vmul.f32 %v1869_v46, %v1858_v58  ;;  %v1917_v15 = vmul.f32 %v1913_v37, %v5145_v38  ;;  %v5655_v38 = vmov 5  }
 0xfe6   :  { %v1877_v48 = vpop.permute.xlu1 %1876 }
 0xfe7   :  { %v1884_v44 = vsel %vm1882_vm13, %v1877_v48, %v1879_v56  ;;  %v1885_v0 = vsel %vm1882_vm13, %v1875_v32, %v1877_v48 }
 0xfe8   :  { %v1903_v11 = vmul.f32 %v1890_v63, %v1885_v0  ;;  %v1904_v21 = vmul.f32 %v1894_v5, %v1884_v44  ;;  %v1942_v63 = vmul.f32 %v1938_v54, %v1921_v22  ;;  %v2028_v0 = vrot.slane %v5074_v17, %v4709_v42 }
 0xfea   :  { %v1907_v59 = vadd.f32 %v1903_v11, %v1870_v18  ;;  %v1908_v51 = vadd.f32 %v1904_v21, %v1871_v50  ;;  %v1881_v28 = vpop.permute.xlu1 %1880  ;;  %v1992_v50 = vrot.slane %v5069_v41, %v4709_v42  ;;  %v2032_v11 = vrot.slane %v5076_v16, %v4709_v42 }
 0xfeb   :  { %v1883_v47 = vsel %vm1882_vm13, %v1879_v56, %v1881_v28  ;;  %v1886_v30 = vsel %vm1882_vm13, %v1881_v28, %v1875_v32  ;;  %v1918_v32 = vmul.f32 %v1913_v37, %v5149_v13  ;;  %v2036_v21 = vrot.slane %v5084_v1, %v4709_v42 }
 0xfec   :  { %v1905_v34 = vmul.f32 %v1898_v49, %v1883_v47  ;;  %v1906_v9 = vmul.f32 %v1902_v36, %v1886_v30  ;;  %v1943_v7 = vmul.f32 %v1939_v31, %v1907_v59  ;;  %v1944_v45 = vmul.f32 %v1940_v62, %v1908_v51 }
 0xfed   :  { %v2004_v31 = vrot.slane %v5062_v52, %v4709_v42  ;;  %v1967_v62 = vrot.slane %v5056_v55, %v4709_v42  ;;  %v1971_v59 = vrot.slane %v5051_v53, %v4709_v42  ;;  %v1996_v51 = vrot.slane %v5066_v12, %v4709_v42 }
 0xfee   :  { %v1909_v29 = vadd.f32 %v1905_v34, %v1872_v6  ;;  %v1910_v5 = vadd.f32 %v1906_v9, %v1873_v33  ;;  %v1947_v24 = vadd.f32 %v1943_v7, %v1915_v57  ;;  %v5198_v25 = vadd.f32 %v1944_v45, %v1916_v35 }
 0xfef   :  { %v2000_v28 = vrot.slane %v5072_v39, %v4709_v42  ;;  %v2040_v34 = vrot.slane %v5078_v10, %v4709_v42 }
 0xff0   :  { %1951 = vrot.lane.b32.xlu1 %v1947_v24, %s4568_s8  ;;  %1953 = vrot.lane.b32.xlu0 %v5198_v25, %s4568_s8  ;;  %v1946_v43 = vmul.f32 %v1942_v63, %v1910_v5  ;;  %v1945_v46 = vmul.f32 %v1941_v2, %v1909_v29 }
 0xff2   :  { %v5205_v56 = vadd.f32 %v1946_v43, %v1918_v32  ;;  %v5207_v48 = vadd.f32 %v1945_v46, %v1917_v15 }
 0xff3   :  { %v2023_v13 = vpop.permute.xlu0 %2022 }
 0xff4   :  { %1957 = vrot.lane.b32.xlu0 %v5205_v56, %s4568_s8  ;;  %1955 = vrot.lane.b32.xlu1 %v5207_v48, %s4568_s8  ;;  %v2041_v6 = vmul.f32 %v2028_v0, %v2023_v13  ;;  %s4589_s8 = smov 8  }
 0xff8   :  { %1978 = vrot.lane.b32.xlu0 %v5198_v25, %s4588_s26  ;;  %1976 = vrot.lane.b32.xlu1 %v1947_v24, %s4588_s26 }
 0xffb   :  { %v2015_v22 = vpop.permute.xlu1 %2014 }
 0xffc   :  { %1982 = vrot.lane.b32.xlu0 %v5205_v56, %s4588_s26  ;;  %1980 = vrot.lane.b32.xlu1 %v5207_v48, %s4588_s26  ;;  %v2017_v9 = vmul.f32 %v2015_v22, %v1947_v24  ;;  %v2019_v0 = vmul.f32 %v2015_v22, %v5207_v48 }
0x1000   :  { %2116 = vperm.xlu0 %4169, %v4952_v19   ;;  %2124 = vperm.xlu1 %4168, %v4922_v40  }
0x1004   :  { %4170 = vset.pattern.permute.xlu0 %v5655_v38  ;;  %4171 = vset.pattern.permute.xlu1 %v5655_v38 }
0x1062   :  { %v1952_v37 = vpop.permute.xlu1 %1951  ;;  %v1954_v49 = vpop.permute.xlu0 %1953 }
0x1063   :  { %v1962_v35 = vsel %vm1959_vm14, %v1952_v37, %v1954_v49 }
0x1064   :  { %v1973_v7 = vmul.f32 %v1962_v35, %v5000_v4 }
0x1066   :  { %v1958_v36 = vpop.permute.xlu0 %1957  ;;  %v1956_v14 = vpop.permute.xlu1 %1955 }
0x1067   :  { %v1963_v44 = vsel %vm1959_vm14, %v1958_v36, %v1952_v37  ;;  %v1961_v33 = vsel %vm1959_vm14, %v1954_v49, %v1956_v14  ;;  %v2042_v37 = vmul.f32 %v2032_v11, %v2023_v13  ;;  %v2043_v49 = vmul.f32 %v2036_v21, %v2023_v13 }
0x1068   :  { %v1972_v8 = vmul.f32 %v1963_v44, %v4996_v3  ;;  %v1960_v3 = vsel %vm1959_vm14, %v1956_v14, %v1958_v36  ;;  %v1974_v32 = vmul.f32 %v1967_v62, %v1961_v33  ;;  %v2018_v44 = vmul.f32 %v2015_v22, %v5198_v25 }
0x1069   :  { %v1975_v43 = vmul.f32 %v1971_v59, %v1960_v3  ;;  %v2020_v11 = vmul.f32 %v2015_v22, %v5205_v56  ;;  %v5656_v25 = vmov 6   ;;  %v2094_v59 = vrot.slane %v5069_v41, %v4724_v60 }
0x106a   :  { %v1979_v58 = vpop.permute.xlu0 %1978  ;;  %v1977_v18 = vpop.permute.xlu1 %1976  ;;  %v2134_v3 = vrot.slane %v5076_v16, %v4724_v60  ;;  %v2138_v33 = vrot.slane %v5084_v1, %v4724_v60 }
0x106b   :  { %v1987_v57 = vsel %vm1984_vm15, %v1977_v18, %v1979_v58 }
0x106c   :  { %v2005_v54 = vmul.f32 %v1992_v50, %v1987_v57  ;;  %v2044_v50 = vmul.f32 %v2040_v34, %v2023_v13 }
0x106e   :  { %v2009_v47 = vadd.f32 %v2005_v54, %v1972_v8  ;;  %v1983_v30 = vpop.permute.xlu0 %1982  ;;  %v1981_v2 = vpop.permute.xlu1 %1980 }
0x106f   :  { %v1988_v45 = vsel %vm1984_vm15, %v1983_v30, %v1977_v18  ;;  %v1985_v29 = vsel %vm1984_vm15, %v1981_v2, %v1983_v30  ;;  %v1986_v5 = vsel %vm1984_vm15, %v1979_v58, %v1981_v2  ;;  %v2069_v30 = vrot.slane %v5056_v55, %v4724_v60 }
0x1070   :  { %v2008_v63 = vmul.f32 %v2004_v31, %v1988_v45  ;;  %v2045_v15 = vmul.f32 %v2041_v6, %v2009_v47  ;;  %v2006_v46 = vmul.f32 %v1996_v51, %v1986_v5  ;;  %v2007_v38 = vmul.f32 %v2000_v28, %v1985_v29 }
0x1071   :  { %v2130_v51 = vrot.slane %v5074_v17, %v4724_v60  ;;  %v2098_v6 = vrot.slane %v5066_v12, %v4724_v60  ;;  %v2102_v2 = vrot.slane %v5072_v39, %v4724_v60 }
0x1072   :  { %v2049_v24 = vadd.f32 %v2045_v15, %v2017_v9  ;;  %v2012_v4 = vadd.f32 %v2008_v63, %v1975_v43  ;;  %v2010_v36 = vadd.f32 %v2006_v46, %v1973_v7  ;;  %v2011_v14 = vadd.f32 %v2007_v38, %v1974_v32 }
0x1073   :  { %v2073_v9 = vrot.slane %v5051_v53, %v4724_v60  ;;  %v2106_v63 = vrot.slane %v5062_v52, %v4724_v60  ;;  %v2142_v43 = vrot.slane %v5078_v10, %v4724_v60 }
0x1074   :  { %2053 = vrot.lane.b32.xlu1 %v2049_v24, %s4589_s8  ;;  %v2046_v18 = vmul.f32 %v2042_v37, %v2010_v36  ;;  %v2047_v58 = vmul.f32 %v2043_v49, %v2011_v14  ;;  %v2048_v8 = vmul.f32 %v2044_v50, %v2012_v4 }
0x1076   :  { %v2050_v57 = vadd.f32 %v2046_v18, %v2018_v44  ;;  %v5262_v35 = vadd.f32 %v2047_v58, %v2019_v0  ;;  %v5266_v21 = vadd.f32 %v2048_v8, %v2020_v11 }
0x1078   :  { %2055 = vrot.lane.b32.xlu1 %v2050_v57, %s4589_s8  ;;  %2057 = vrot.lane.b32.xlu0 %v5262_v35, %s4589_s8 }
0x107c   :  { %2059 = vrot.lane.b32.xlu1 %v5266_v21, %s4589_s8  ;;  %2078 = vrot.lane.b32.xlu0 %v2049_v24, %s4590_s27 }
0x107f   :  { %v2125_v56 = vpop.permute.xlu1 %2124  ;;  %v2117_v13 = vpop.permute.xlu0 %2116 }
0x1080   :  { %2080 = vrot.lane.b32.xlu1 %v2050_v57, %s4590_s27  ;;  %2082 = vrot.lane.b32.xlu0 %v5262_v35, %s4590_s27  ;;  %v2119_v49 = vmul.f32 %v2117_v13, %v2049_v24  ;;  %v2143_v4 = vmul.f32 %v2130_v51, %v2125_v56  ;;  %v2144_v36 = vmul.f32 %v2134_v3, %v2125_v56 }
0x1081   :  { %v2146_v24 = vmul.f32 %v2142_v43, %v2125_v56 }
0x1084   :  { %2084 = vrot.lane.b32.xlu1 %v5266_v21, %s4590_s27  ;;  %2226 = vperm.xlu0 %4170, %v4922_v40  }
0x1088   :  { %2218 = vperm.xlu1 %4171, %v4952_v19   ;;  %4173 = vset.pattern.permute.xlu0 %v5656_v25 }
0x108c   :  { %4172 = vset.pattern.permute.xlu1 %v5656_v25  ;;  %v2120_v25 = vmul.f32 %v2117_v13, %v2050_v57 }
0x10e6   :  { %v2054_v48 = vpop.permute.xlu1 %2053 }
0x10ea   :  { %v2056_v22 = vpop.permute.xlu1 %2055  ;;  %v2058_v54 = vpop.permute.xlu0 %2057 }
0x10eb   :  { %v2064_v47 = vsel %vm2061_vm1, %v2054_v48, %v2056_v22  ;;  %v2063_v29 = vsel %vm2061_vm1, %v2056_v22, %v2058_v54 }
0x10ec   :  { %v2075_v46 = vmul.f32 %v2064_v47, %v5012_v26  ;;  %v2076_v44 = vmul.f32 %v2069_v30, %v2063_v29  ;;  %v2171_v29 = vrot.slane %v5056_v55, %v4727_v61 }
0x10ee   :  { %v2060_v31 = vpop.permute.xlu1 %2059  ;;  %v2079_v62 = vpop.permute.xlu0 %2078 }
0x10ef   :  { %v2065_v28 = vsel %vm2061_vm1, %v2060_v31, %v2054_v48  ;;  %v2062_v38 = vsel %vm2061_vm1, %v2058_v54, %v2060_v31  ;;  %v2145_v48 = vmul.f32 %v2138_v33, %v2125_v56 }
0x10f0   :  { %v2074_v5 = vmul.f32 %v2065_v28, %v5008_v20  ;;  %v2077_v58 = vmul.f32 %v2073_v9, %v2062_v38  ;;  %v2121_v28 = vmul.f32 %v2117_v13, %v5262_v35  ;;  %v5657_v35 = vmov 7  }
0x10f1   :  { %v2196_v9 = vrot.slane %v5069_v41, %v4727_v61  ;;  %v2200_v38 = vrot.slane %v5066_v12, %v4727_v61 }
0x10f2   :  { %v2081_v34 = vpop.permute.xlu1 %2080  ;;  %v2083_v45 = vpop.permute.xlu0 %2082 }
0x10f3   :  { %v2089_v7 = vsel %vm2086_vm4, %v2079_v62, %v2081_v34  ;;  %v2088_v32 = vsel %vm2086_vm4, %v2081_v34, %v2083_v45 }
0x10f4   :  { %v2107_v15 = vmul.f32 %v2094_v59, %v2089_v7  ;;  %v2108_v37 = vmul.f32 %v2098_v6, %v2088_v32  ;;  %v2122_v6 = vmul.f32 %v2117_v13, %v5266_v21  ;;  %v2232_v7 = vrot.slane %v5074_v17, %v4727_v61 }
0x10f6   :  { %v2111_v14 = vadd.f32 %v2107_v15, %v2074_v5  ;;  %v2085_v50 = vpop.permute.xlu1 %2084  ;;  %v2112_v20 = vadd.f32 %v2108_v37, %v2075_v46  ;;  %v2175_v5 = vrot.slane %v5051_v53, %v4727_v61  ;;  %v2208_v46 = vrot.slane %v5062_v52, %v4727_v61 }
0x10f7   :  { %v2087_v0 = vsel %vm2086_vm4, %v2083_v45, %v2085_v50  ;;  %v2090_v18 = vsel %vm2086_vm4, %v2085_v50, %v2079_v62  ;;  %v2204_v53 = vrot.slane %v5072_v39, %v4727_v61 }
0x10f8   :  { %v2109_v8 = vmul.f32 %v2102_v2, %v2087_v0  ;;  %v2110_v26 = vmul.f32 %v2106_v63, %v2090_v18  ;;  %v2147_v11 = vmul.f32 %v2143_v4, %v2111_v14  ;;  %v2148_v22 = vmul.f32 %v2144_v36, %v2112_v20 }
0x10f9   :  { %v2236_v63 = vrot.slane %v5076_v16, %v4727_v61  ;;  %v2240_v4 = vrot.slane %v5084_v1, %v4727_v61  ;;  %v2244_v36 = vrot.slane %v5078_v10, %v4727_v61 }
0x10fa   :  { %v2113_v54 = vadd.f32 %v2109_v8, %v2076_v44  ;;  %v2114_v31 = vadd.f32 %v2110_v26, %v2077_v58  ;;  %v2151_v59 = vadd.f32 %v2147_v11, %v2119_v49  ;;  %v5315_v51 = vadd.f32 %v2148_v22, %v2120_v25 }
0x10fc   :  { %2155 = vrot.lane.b32.xlu1 %v2151_v59, %s4591_s28  ;;  %v2150_v62 = vmul.f32 %v2146_v24, %v2114_v31  ;;  %v2149_v3 = vmul.f32 %v2145_v48, %v2113_v54  ;;  %2157 = vrot.lane.b32.xlu0 %v5315_v51, %s4591_s28 }
0x10fe   :  { %v5320_v47 = vadd.f32 %v2150_v62, %v2122_v6  ;;  %v5322_v57 = vadd.f32 %v2149_v3, %v2121_v28 }
0x1100   :  { %2159 = vrot.lane.b32.xlu1 %v5322_v57, %s4591_s28  ;;  %2161 = vrot.lane.b32.xlu0 %v5320_v47, %s4591_s28 }
0x1103   :  { %v2227_v56 = vpop.permute.xlu0 %2226 }
0x1104   :  { %2180 = vrot.lane.b32.xlu1 %v2151_v59, %s4592_s29  ;;  %2182 = vrot.lane.b32.xlu0 %v5315_v51, %s4592_s29  ;;  %v2245_v14 = vmul.f32 %v2232_v7, %v2227_v56  ;;  %v2247_v6 = vmul.f32 %v2240_v4, %v2227_v56  ;;  %v4313_v4 = vld [vmem:[#allocation2 + $0x28c] ss:$16 sps:$4 sm:$0xff]  }
0x1107   :  { %v2219_v21 = vpop.permute.xlu1 %2218 }
0x1108   :  { %2184 = vrot.lane.b32.xlu1 %v5322_v57, %s4592_s29  ;;  %2186 = vrot.lane.b32.xlu0 %v5320_v47, %s4592_s29  ;;  %v2221_v20 = vmul.f32 %v2219_v21, %v2151_v59  ;;  %v2246_v59 = vmul.f32 %v2236_v63, %v2227_v56  ;;  %v2224_v63 = vmul.f32 %v2219_v21, %v5320_v47  ;;  %v4284_v47 = vld [vmem:[#allocation2 + $0x200] ss:$16 sps:$4 sm:$0xff]  }
0x110c   :  { %2328 = vperm.xlu1 %4172, %v4922_v40   ;;  %2320 = vperm.xlu0 %4173, %v4952_v19  }
0x1110   :  { %4175 = vset.pattern.permute.xlu1 %v5657_v35  ;;  %4174 = vset.pattern.permute.xlu0 %v5657_v35 }
0x116e   :  { %v2156_v13 = vpop.permute.xlu1 %2155  ;;  %v2158_v33 = vpop.permute.xlu0 %2157 }
0x116f   :  { %v2166_v32 = vsel %vm2163_vm5, %v2156_v13, %v2158_v33 }
0x1172   :  { %v2160_v30 = vpop.permute.xlu1 %2159  ;;  %v2162_v34 = vpop.permute.xlu0 %2161 }
0x1173   :  { %v2167_v45 = vsel %vm2163_vm5, %v2162_v34, %v2156_v13  ;;  %v2165_v55 = vsel %vm2163_vm5, %v2158_v33, %v2160_v30  ;;  %v2164_v50 = vsel %vm2163_vm5, %v2160_v30, %v2162_v34  ;;  %v2222_v13 = vmul.f32 %v2219_v21, %v5315_v51 }
0x1174   :  { %v2176_v37 = vmul.f32 %v2167_v45, %v5020_v23  ;;  %v5658_v23 = vld [vmem:[#allocation9_spill] sm:$0xff]  ;;  %v2178_v26 = vmul.f32 %v2171_v29, %v2165_v55  ;;  %v2179_v22 = vmul.f32 %v2175_v5, %v2164_v50  ;;  %v2248_v30 = vmul.f32 %v2244_v36, %v2227_v56  ;;  %v4289_v56 = vld [vmem:[#allocation2 + $0x20c] ss:$16 sps:$4 sm:$0xff]  }
0x1175   :  { %v2177_v0 = vmul.f32 %v2166_v32, %v5658_v23  ;;  %v2223_v34 = vmul.f32 %v2219_v21, %v5322_v57  ;;  %v4286_v57 = vld [vmem:[#allocation2 + $0x204] ss:$16 sps:$4 sm:$0xff]   ;;  %v4287_v21 = vld [vmem:[#allocation2 + $0x208] ss:$16 sps:$4 sm:$0xff]   ;;  %v4295_v5 = vld [vmem:[#allocation2 + $0x22c] ss:$16 sps:$4 sm:$0xff]   ;;  %3315 = vmatprep.subr.bf16.mxu0 %v4289_v56 }
0x1176   :  { %v2181_v2 = vpop.permute.xlu1 %2180  ;;  %v2183_v15 = vpop.permute.xlu0 %2182  ;;  %v4292_v29 = vld [vmem:[#allocation2 + $0x224] ss:$16 sps:$4 sm:$0xff]   ;;  %3233 = vmatprep.subr.bf16.mxu1 %v4286_v57  ;;  %3316 = vmatpush1.bf16.msra.mxu0 %v4287_v21  ;;  %v4293_v32 = vld [vmem:[#allocation2 + $0x228] ss:$16 sps:$4 sm:$0xff]   ;;  %v4302_v55 = vld [vmem:[#allocation2 + $0x260] ss:$16 sps:$4 sm:$0xff]  }
0x1177   :  { %v2191_v43 = vsel %vm2188_vm6, %v2181_v2, %v2183_v15  ;;  %3234 = vmatpush1.bf16.msra.mxu1 %v4284_v47  ;;  %3317 = vmatprep.subr.bf16.mxu0 %v4295_v5  ;;  %v4308_v36 = vld [vmem:[#allocation2 + $0x280] ss:$16 sps:$4 sm:$0xff]   ;;  %v4316_v50 = vld [vmem:[#allocation2 + $0x2a4] ss:$16 sps:$4 sm:$0xff]   ;;  %v4317_v23 = vld [vmem:[#allocation2 + $0x2a8] ss:$16 sps:$4 sm:$0xff]  }
0x1178   :  { %v2209_v49 = vmul.f32 %v2196_v9, %v2191_v43  ;;  %3235 = vmatprep.subr.bf16.mxu1 %v4292_v29  ;;  %v4298_v43 = vld [vmem:[#allocation2 + $0x244] ss:$16 sps:$4 sm:$0xff]  }
0x117a   :  { %v2185_v44 = vpop.permute.xlu1 %2184  ;;  %v2213_v18 = vadd.f32 %v2209_v49, %v2176_v37  ;;  %v2187_v58 = vpop.permute.xlu0 %2186  ;;  %3318 = vmatpush1.bf16.msra.mxu0 %v4293_v32  ;;  %v4307_v37 = vld [vmem:[#allocation2 + $0x26c] ss:$16 sps:$4 sm:$0xff]   ;;  %v4305_v49 = vld [vmem:[#allocation2 + $0x268] ss:$16 sps:$4 sm:$0xff]  }
0x117b   :  { %v2190_v8 = vsel %vm2188_vm6, %v2183_v15, %v2185_v44  ;;  %v2192_v11 = vsel %vm2188_vm6, %v2187_v58, %v2181_v2  ;;  %v2189_v25 = vsel %vm2188_vm6, %v2185_v44, %v2187_v58  ;;  %v4290_v15 = vld [vmem:[#allocation2 + $0x220] ss:$16 sps:$4 sm:$0xff]   ;;  %v4319_v44 = vld [vmem:[#allocation2 + $0x2ac] ss:$16 sps:$4 sm:$0xff]  }
0x117c   :  { %v2210_v48 = vmul.f32 %v2200_v38, %v2190_v8  ;;  %v2212_v24 = vmul.f32 %v2208_v46, %v2192_v11  ;;  %v2211_v54 = vmul.f32 %v2204_v53, %v2189_v25  ;;  %v2249_v31 = vmul.f32 %v2245_v14, %v2213_v18  ;;  %v4301_v46 = vld [vmem:[#allocation2 + $0x24c] ss:$16 sps:$4 sm:$0xff]   ;;  %3236 = vmatpush1.bf16.msra.mxu1 %v4290_v15  ;;  %v4304_v38 = vld [vmem:[#allocation2 + $0x264] ss:$16 sps:$4 sm:$0xff]   ;;  %v4311_v14 = vld [vmem:[#allocation2 + $0x288] ss:$16 sps:$4 sm:$0xff]  }
0x117d   :  { %3237 = vmatprep.subr.bf16.mxu1 %v4298_v43  ;;  %3319 = vmatprep.subr.bf16.mxu0 %v4301_v46  ;;  %v4310_v53 = vld [vmem:[#allocation2 + $0x284] ss:$16 sps:$4 sm:$0xff]   ;;  %v4325_v18 = vld [vmem:[#allocation2 + $0x2cc] ss:$16 sps:$4 sm:$0xff]   ;;  %v4320_v58 = vld [vmem:[#allocation2 + $0x2c0] ss:$16 sps:$4 sm:$0xff]  }
0x117e   :  { %v2214_v28 = vadd.f32 %v2210_v48, %v2177_v0  ;;  %v2216_v62 = vadd.f32 %v2212_v24, %v2179_v22  ;;  %v2215_v3 = vadd.f32 %v2211_v54, %v2178_v26  ;;  %v5373_v35 = vadd.f32 %v2249_v31, %v2221_v20  ;;  %v4314_v20 = vld [vmem:[#allocation2 + $0x2a0] ss:$16 sps:$4 sm:$0xff]   ;;  %v4322_v0 = vld [vmem:[#allocation2 + $0x2c4] ss:$16 sps:$4 sm:$0xff]   ;;  %v4323_v8 = vld [vmem:[#allocation2 + $0x2c8] ss:$16 sps:$4 sm:$0xff]  }
0x117f   :  { %v4328_v26 = vld [vmem:[#allocation2 + $0x2e4] ss:$16 sps:$4 sm:$0xff]   ;;  %v4331_v11 = vld [vmem:[#allocation2 + $0x2ec] ss:$16 sps:$4 sm:$0xff]   ;;  %v4326_v25 = vld [vmem:[#allocation2 + $0x2e0] ss:$16 sps:$4 sm:$0xff]  }
0x1180   :  { %v2250_v33 = vmul.f32 %v2246_v59, %v2214_v28  ;;  %2257 = vrot.lane.b32.xlu1 %v5373_v35, %s4593_s30  ;;  %v2251_v9 = vmul.f32 %v2247_v6, %v2215_v3  ;;  %v2252_v2 = vmul.f32 %v2248_v30, %v2216_v62  ;;  %v4329_v48 = vld [vmem:[#allocation2 + $0x2e8] ss:$16 sps:$4 sm:$0xff]   ;;  %v4334_v22 = vld [vmem:[#allocation2 + $0x304] ss:$16 sps:$4 sm:$0xff]   ;;  %v4337_v24 = vld [vmem:[#allocation2 + $0x30c] ss:$16 sps:$4 sm:$0xff]  }
0x1181   :  { %v4332_v54 = vld [vmem:[#allocation2 + $0x300] ss:$16 sps:$4 sm:$0xff]   ;;  %v4335_v31 = vld [vmem:[#allocation2 + $0x308] ss:$16 sps:$4 sm:$0xff]   ;;  %v4340_v59 = vld [vmem:[#allocation2 + $0x324] ss:$16 sps:$4 sm:$0xff]  }
0x1182   :  { %v5378_v7 = vadd.f32 %v2250_v33, %v2222_v13  ;;  %v5380_v45 = vadd.f32 %v2251_v9, %v2223_v34  ;;  %v5385_v51 = vadd.f32 %v2252_v2, %v2224_v63  ;;  %v4343_v28 = vld [vmem:[#allocation2 + $0x32c] ss:$16 sps:$4 sm:$0xff]   ;;  %v4338_v6 = vld [vmem:[#allocation2 + $0x320] ss:$16 sps:$4 sm:$0xff]   ;;  %v4341_v62 = vld [vmem:[#allocation2 + $0x328] ss:$16 sps:$4 sm:$0xff]  }
0x1183   :  { %v4346_v3 = vld [vmem:[#allocation2 + $0x344] ss:$16 sps:$4 sm:$0xff]   ;;  %v4349_v13 = vld [vmem:[#allocation2 + $0x34c] ss:$16 sps:$4 sm:$0xff]   ;;  %v4344_v33 = vld [vmem:[#allocation2 + $0x340] ss:$16 sps:$4 sm:$0xff]  }
0x1184   :  { %2259 = vrot.lane.b32.xlu1 %v5378_v7, %s4593_s30  ;;  %2261 = vrot.lane.b32.xlu0 %v5380_v45, %s4593_s30  ;;  %v4347_v30 = vld [vmem:[#allocation2 + $0x348] ss:$16 sps:$4 sm:$0xff]   ;;  %v4352_v34 = vld [vmem:[#allocation2 + $0x364] ss:$16 sps:$4 sm:$0xff]   ;;  %v4355_v9 = vld [vmem:[#allocation2 + $0x36c] ss:$16 sps:$4 sm:$0xff]  }
0x1185   :  { %v4350_v2 = vld [vmem:[#allocation2 + $0x360] ss:$16 sps:$4 sm:$0xff]   ;;  %v4353_v63 = vld [vmem:[#allocation2 + $0x368] ss:$16 sps:$4 sm:$0xff]  }
0x1186   :  { %v5659_v32 = vld [vmem:[#allocation6_spill] sm:$0xff] }
0x1187   :  { %v2298_v43 = vrot.slane %v5069_v41, %v5659_v32  ;;  %v2334_v46 = vrot.slane %v5074_v17, %v5659_v32 }
0x1188   :  { %2263 = vrot.lane.b32.xlu1 %v5385_v51, %s4593_s30  ;;  %2282 = vrot.lane.b32.xlu0 %v5373_v35, %s4594_s7 }
0x118b   :  { %v5394_v47 = vpop.permute.xlu1 %2328  ;;  %v5396_v57 = vpop.permute.xlu0 %2320 }
0x118c   :  { %2284 = vrot.lane.b32.xlu1 %v5378_v7, %s4594_s7  ;;  %2286 = vrot.lane.b32.xlu0 %v5380_v45, %s4594_s7 }
0x1190   :  { %2288 = vrot.lane.b32.xlu1 %v5385_v51, %s4594_s7  ;;  %2430 = vperm.xlu0 %4174, %v4922_v40   ;;  %v4296_v40 = vld [vmem:[#allocation2 + $0x240] ss:$16 sps:$4 sm:$0xff]  }
0x1191   :  { %3238 = vmatpush1.bf16.msra.mxu1 %v4296_v40  ;;  %v2338_v40 = vrot.slane %v5076_v16, %v5659_v32 }
0x1192   :  { %3239 = vmatprep.subr.bf16.mxu1 %v4304_v38  ;;  %v2302_v38 = vrot.slane %v5066_v12, %v5659_v32 }
0x1194   :  { %2422 = vperm.xlu1 %4175, %v4952_v19   ;;  %v4299_v19 = vld [vmem:[#allocation2 + $0x248] ss:$16 sps:$4 sm:$0xff]  }
0x1195   :  { %3320 = vmatpush1.bf16.msra.mxu0 %v4299_v19  ;;  %3240 = vmatpush1.bf16.msra.mxu1 %v4302_v55  ;;  %v4358_v55 = vld [vmem:[#allocation2 + $0x384] ss:$16 sps:$4 sm:$0xff]  }
0x1196   :  { %3321 = vmatprep.subr.bf16.mxu0 %v4307_v37  ;;  %3241 = vmatprep.subr.bf16.mxu1 %v4310_v53  ;;  %v4356_v37 = vld [vmem:[#allocation2 + $0x380] ss:$16 sps:$4 sm:$0xff]   ;;  %v2342_v53 = vrot.slane %v5084_v1, %v5659_v32 }
0x1199   :  { %3322 = vmatpush1.bf16.msra.mxu0 %v4305_v49  ;;  %3242 = vmatpush1.bf16.msra.mxu1 %v4308_v36  ;;  %v4359_v49 = vld [vmem:[#allocation2 + $0x388] ss:$16 sps:$4 sm:$0xff]   ;;  %v5417_v36 = vld [vmem:[%s5613_s3 + $0x10] sm:$0xff] }
0x119a   :  { %3323 = vmatprep.subr.bf16.mxu0 %v4313_v4  ;;  %3243 = vmatprep.subr.bf16.mxu1 %v4316_v50  ;;  %v5424_v50 = vld [vmem:[%s5613_s3 + $0x18] sm:$0xff]  ;;  %s4595_s3 = smov 1  }
0x119d   :  { %3324 = vmatpush1.bf16.msra.mxu0 %v4311_v14  ;;  %3244 = vmatpush1.bf16.msra.mxu1 %v4314_v20  ;;  %v2273_v14 = vrot.slane %v5417_v36, %v5659_v32 }
0x119e   :  { %3325 = vmatprep.subr.bf16.mxu0 %v4319_v44  ;;  %3245 = vmatprep.subr.bf16.mxu1 %v4322_v0  ;;  %v2277_v44 = vrot.slane %v5424_v50, %v5659_v32 }
0x11a1   :  { %3326 = vmatpush1.bf16.msra.mxu0 %v4317_v23  ;;  %3246 = vmatpush1.bf16.msra.mxu1 %v4320_v58  ;;  %v4361_v23 = vld [vmem:[#allocation2 + $0x38c] ss:$16 sps:$4 sm:$0xff]  }
0x11a2   :  { %3327 = vmatprep.subr.bf16.mxu0 %v4325_v18  ;;  %3247 = vmatprep.subr.bf16.mxu1 %v4328_v26  ;;  %v2310_v26 = vrot.slane %v5062_v52, %v5659_v32 }
0x11a5   :  { %3328 = vmatpush1.bf16.msra.mxu0 %v4323_v8  ;;  %3248 = vmatpush1.bf16.msra.mxu1 %v4326_v25  ;;  %v2306_v8 = vrot.slane %v5072_v39, %v5659_v32 }
0x11a6   :  { %3329 = vmatprep.subr.bf16.mxu0 %v4331_v11  ;;  %3249 = vmatprep.subr.bf16.mxu1 %v4334_v22  ;;  %v5660_v11 = vld [vmem:[#allocation10_spill] sm:$0xff] }
0x11a9   :  { %3330 = vmatpush1.bf16.msra.mxu0 %v4329_v48  ;;  %3250 = vmatpush1.bf16.msra.mxu1 %v4332_v54  ;;  %v5661_v54 = vld [vmem:[#allocation11_spill] sm:$0xff] }
0x11aa   :  { %3331 = vmatprep.subr.bf16.mxu0 %v4337_v24  ;;  %3251 = vmatprep.subr.bf16.mxu1 %v4340_v59  ;;  %v2346_v24 = vrot.slane %v5078_v10, %v5659_v32 }
0x11ad   :  { %3332 = vmatpush1.bf16.msra.mxu0 %v4335_v31  ;;  %3252 = vmatpush1.bf16.msra.mxu1 %v4338_v6  ;;  %v2323_v6 = vmul.f32 %v5396_v57, %v5373_v35 }
0x11ae   :  { %3333 = vmatprep.subr.bf16.mxu0 %v4343_v28  ;;  %3253 = vmatprep.subr.bf16.mxu1 %v4346_v3  ;;  %v2348_v3 = vmul.f32 %v2338_v40, %v5394_v47  ;;  %v2324_v40 = vmul.f32 %v5396_v57, %v5378_v7 }
0x11b1   :  { %3334 = vmatpush1.bf16.msra.mxu0 %v4341_v62  ;;  %3254 = vmatpush1.bf16.msra.mxu1 %v4344_v33  ;;  %v2347_v62 = vmul.f32 %v2334_v46, %v5394_v47  ;;  %v4367_v46 = vld [vmem:[#allocation2 + $0x3ac] ss:$16 sps:$4 sm:$0xff]  }
0x11b2   :  { %3335 = vmatprep.subr.bf16.mxu0 %v4349_v13  ;;  %3255 = vmatprep.subr.bf16.mxu1 %v4352_v34 }
0x11b5   :  { %3336 = vmatpush1.bf16.msra.mxu0 %v4347_v30  ;;  %3256 = vmatpush1.bf16.msra.mxu1 %v4350_v2 }
0x11b6   :  { %3337 = vmatprep.subr.bf16.mxu0 %v4355_v9  ;;  %3257 = vmatprep.subr.bf16.mxu1 %v4358_v55 }
0x11b9   :  { %3338 = vmatpush1.bf16.msra.mxu0 %v4353_v63  ;;  %3258 = vmatpush1.bf16.msra.mxu1 %v4356_v37  ;;  %v4362_v63 = vld [vmem:[#allocation2 + $0x3a0] ss:$16 sps:$4 sm:$0xff]  }
0x11ba   :  { %3339 = vmatprep.subr.bf16.mxu0 %v4361_v23 }
0x11bd   :  { %3340 = vmatpush1.bf16.msra.mxu0 %v4359_v49 }
0x11be   :  { %3341 = vmatprep.subr.bf16.mxu0 %v4367_v46 }
0x11f2   :  { %v2258_v21 = vpop.permute.xlu1 %2257 }
0x11f6   :  { %v2260_v56 = vpop.permute.xlu1 %2259  ;;  %v2262_v29 = vpop.permute.xlu0 %2261 }
0x11f7   :  { %v2268_v4 = vsel %vm2265_vm7, %v2258_v21, %v2260_v56  ;;  %v2267_v0 = vsel %vm2265_vm7, %v2260_v56, %v2262_v29  ;;  %v4365_v56 = vld [vmem:[#allocation2 + $0x3a8] ss:$16 sps:$4 sm:$0xff]  }
0x11f8   :  { %v2279_v31 = vmul.f32 %v2268_v4, %v5661_v54  ;;  %v2280_v30 = vmul.f32 %v2273_v14, %v2267_v0  ;;  %3342 = vmatpush1.bf16.msra.mxu0 %v4365_v56  ;;  %v2325_v4 = vmul.f32 %v5396_v57, %v5380_v45  ;;  %v2350_v14 = vmul.f32 %v2346_v24, %v5394_v47  ;;  %v4371_v0 = vld [vmem:[#allocation2 + $0x3c8] ss:$16 sps:$4 sm:$0xff]   ;;  %v5662_v54 = vld [vmem:[#allocation7_spill] sm:$0xff] }
0x11f9   :  { %v2326_v45 = vmul.f32 %v5396_v57, %v5385_v51  ;;  %v2375_v56 = vrot.slane %v5417_v36, %v5662_v54  ;;  %v2444_v36 = vrot.slane %v5084_v1, %v5662_v54 }
0x11fa   :  { %v2264_v5 = vpop.permute.xlu1 %2263  ;;  %v2283_v15 = vpop.permute.xlu0 %2282 }
0x11fb   :  { %v2269_v19 = vsel %vm2265_vm7, %v2264_v5, %v2258_v21  ;;  %v2266_v59 = vsel %vm2265_vm7, %v2262_v29, %v2264_v5  ;;  %v4364_v21 = vld [vmem:[#allocation2 + $0x3a4] ss:$16 sps:$4 sm:$0xff]  }
0x11fc   :  { %v2278_v25 = vmul.f32 %v2269_v19, %v5660_v11  ;;  %v2281_v29 = vmul.f32 %v2277_v44, %v2266_v59  ;;  %v2349_v19 = vmul.f32 %v2342_v53, %v5394_v47  ;;  %3259 = vmatprep.subr.bf16.mxu1 %v4364_v21  ;;  %v4368_v53 = vld [vmem:[#allocation2 + $0x3c0] ss:$16 sps:$4 sm:$0xff]   ;;  %v4370_v44 = vld [vmem:[#allocation2 + $0x3c4] ss:$16 sps:$4 sm:$0xff]   ;;  %v4379_v11 = vld [vmem:[#allocation2 + $0x3ec] ss:$16 sps:$4 sm:$0xff]  }
0x11fd   :  { %3260 = vmatpush1.bf16.msra.mxu1 %v4362_v63  ;;  %v4376_v47 = vld [vmem:[#allocation2 + $0x3e4] ss:$16 sps:$4 sm:$0xff]  }
0x11fe   :  { %v2285_v20 = vpop.permute.xlu1 %2284  ;;  %v2287_v58 = vpop.permute.xlu0 %2286  ;;  %3261 = vmatprep.subr.bf16.mxu1 %v4370_v44 }
0x11ff   :  { %v2293_v18 = vsel %vm2290_vm8, %v2283_v15, %v2285_v20  ;;  %v2292_v22 = vsel %vm2290_vm8, %v2285_v20, %v2287_v58 }
0x1200   :  { %v2311_v48 = vmul.f32 %v2298_v43, %v2293_v18  ;;  %v2312_v28 = vmul.f32 %v2302_v38, %v2292_v22  ;;  %v4373_v18 = vld [vmem:[#allocation2 + $0x3cc] ss:$16 sps:$4 sm:$0xff]  }
0x1201   :  { %3343 = vmatprep.subr.bf16.mxu0 %v4373_v18  ;;  %3262 = vmatpush1.bf16.msra.mxu1 %v4368_v53 }
0x1202   :  { %v2315_v13 = vadd.f32 %v2311_v48, %v2278_v25  ;;  %v2289_v33 = vpop.permute.xlu1 %2288  ;;  %v2316_v34 = vadd.f32 %v2312_v28, %v2279_v31  ;;  %3344 = vmatpush1.bf16.msra.mxu0 %v4371_v0  ;;  %3263 = vmatprep.subr.bf16.mxu1 %v4376_v47  ;;  %v4382_v25 = vld [vmem:[#allocation2 + $0x404] ss:$16 sps:$4 sm:$0xff]   ;;  %v4385_v48 = vld [vmem:[#allocation2 + $0x40c] ss:$16 sps:$4 sm:$0xff]   ;;  %v2404_v31 = vrot.slane %v5066_v12, %v5662_v54 }
0x1203   :  { %v2291_v9 = vsel %vm2290_vm8, %v2287_v58, %v2289_v33  ;;  %v2294_v2 = vsel %vm2290_vm8, %v2289_v33, %v2283_v15  ;;  %3345 = vmatprep.subr.bf16.mxu0 %v4379_v11  ;;  %v2436_v12 = vrot.slane %v5074_v17, %v5662_v54  ;;  %v2408_v17 = vrot.slane %v5072_v39, %v5662_v54 }
0x1204   :  { %v2351_v5 = vmul.f32 %v2347_v62, %v2315_v13  ;;  %v2313_v35 = vmul.f32 %v2306_v8, %v2291_v9  ;;  %v2314_v43 = vmul.f32 %v2310_v26, %v2294_v2  ;;  %v2352_v38 = vmul.f32 %v2348_v3, %v2316_v34  ;;  %v4374_v8 = vld [vmem:[#allocation2 + $0x3e0] ss:$16 sps:$4 sm:$0xff]   ;;  %v4377_v26 = vld [vmem:[#allocation2 + $0x3e8] ss:$16 sps:$4 sm:$0xff]  }
0x1205   :  { %3264 = vmatpush1.bf16.msra.mxu1 %v4374_v8  ;;  %v5663_v13 = vld [vmem:[#allocation13_spill] sm:$0xff]  ;;  %v2400_v34 = vrot.slane %v5069_v41, %v5662_v54  ;;  %v2379_v41 = vrot.slane %v5424_v50, %v5662_v54 }
0x1206   :  { %v2317_v37 = vadd.f32 %v2313_v35, %v2280_v30  ;;  %v2318_v55 = vadd.f32 %v2314_v43, %v2281_v29  ;;  %v5455_v49 = vadd.f32 %v2351_v5, %v2323_v6  ;;  %v5457_v15 = vadd.f32 %v2352_v38, %v2324_v40  ;;  %3346 = vmatpush1.bf16.msra.mxu0 %v4377_v26  ;;  %v5664_v29 = vld [vmem:[#allocation12_spill] sm:$0xff] }
0x1207   :  { %3274 = vmatprep.subr.bf16.mxu1 %v4382_v25  ;;  %3356 = vmatprep.subr.bf16.mxu0 %v4385_v48  ;;  %v2440_v6 = vrot.slane %v5076_v16, %v5662_v54  ;;  %v2412_v40 = vrot.slane %v5062_v52, %v5662_v54  ;;  %v2448_v38 = vrot.slane %v5078_v10, %v5662_v54  ;;  %v4380_v25 = vld [vmem:[#allocation2 + $0x400] ss:$16 sps:$4 sm:$0xff]   ;;  %v4383_v48 = vld [vmem:[#allocation2 + $0x408] ss:$16 sps:$4 sm:$0xff]   ;;  %v4388_v54 = vld [vmem:[#allocation2 + $0x424] ss:$16 sps:$4 sm:$0xff]  }
0x1208   :  { %2359 = vrot.lane.b32.xlu1 %v5455_v49, %s4595_s3  ;;  %v2353_v7 = vmul.f32 %v2349_v19, %v2317_v37  ;;  %2361 = vrot.lane.b32.xlu0 %v5457_v15, %s4595_s3  ;;  %v2354_v20 = vmul.f32 %v2350_v14, %v2318_v55 }
0x120a   :  { %v5466_v23 = vadd.f32 %v2353_v7, %v2325_v4  ;;  %v5472_v58 = vadd.f32 %v2354_v20, %v2326_v45 }
0x120c   :  { %2386 = vrot.lane.b32.xlu1 %v5457_v15, %s4596_s4  ;;  %2388 = vrot.lane.b32.xlu0 %v5466_v23, %s4596_s4 }
0x120f   :  { %v2431_v57 = vpop.permute.xlu0 %2430 }
0x1210   :  { %2365 = vrot.lane.b32.xlu1 %v5472_v58, %s4595_s3  ;;  %2384 = vrot.lane.b32.xlu0 %v5455_v49, %s4596_s4  ;;  %v2450_v2 = vmul.f32 %v2440_v6, %v2431_v57  ;;  %v2449_v37 = vmul.f32 %v2436_v12, %v2431_v57  ;;  %v2451_v18 = vmul.f32 %v2444_v36, %v2431_v57  ;;  %v4386_v6 = vld [vmem:[#allocation2 + $0x420] ss:$16 sps:$4 sm:$0xff]   ;;  %v4401_v12 = vld [vmem:[#allocation2 + $0x468] ss:$16 sps:$4 sm:$0xff]  }
0x1211   :  { %v2452_v45 = vmul.f32 %v2448_v38, %v2431_v57  ;;  %v4425_v36 = vld [vmem:[#allocation2 + $0x4e8] ss:$16 sps:$4 sm:$0xff]   ;;  %v4430_v38 = vld [vmem:[#allocation2 + $0x504] ss:$16 sps:$4 sm:$0xff]  }
0x1213   :  { %v2423_v51 = vpop.permute.xlu1 %2422 }
0x1214   :  { %2363 = vrot.lane.b32.xlu1 %v5466_v23, %s4595_s3  ;;  %2390 = vrot.lane.b32.xlu0 %v5472_v58, %s4596_s4  ;;  %v2426_v43 = vmul.f32 %v2423_v51, %v5457_v15  ;;  %v2425_v55 = vmul.f32 %v2423_v51, %v5455_v49  ;;  %v2427_v11 = vmul.f32 %v2423_v51, %v5466_v23 }
0x127a   :  { %v2360_v22 = vpop.permute.xlu1 %2359  ;;  %v2362_v24 = vpop.permute.xlu0 %2361 }
0x127b   :  { %v2370_v59 = vsel %vm2367_vm9, %v2360_v22, %v2362_v24 }
0x127c   :  { %v2381_v33 = vmul.f32 %v2370_v59, %v5663_v13  ;;  %v4397_v13 = vld [vmem:[#allocation2 + $0x44c] ss:$16 sps:$4 sm:$0xff]  }
0x127e   :  { %v2387_v28 = vpop.permute.xlu1 %2386  ;;  %v2389_v62 = vpop.permute.xlu0 %2388 }
0x127f   :  { %v2394_v3 = vsel %vm2392_vm10, %v2387_v28, %v2389_v62 }
0x1280   :  { %v2414_v30 = vmul.f32 %v2404_v31, %v2394_v3  ;;  %v4391_v31 = vld [vmem:[#allocation2 + $0x42c] ss:$16 sps:$4 sm:$0xff]   ;;  %v4394_v3 = vld [vmem:[#allocation2 + $0x444] ss:$16 sps:$4 sm:$0xff]  }
0x1282   :  { %v2366_v9 = vpop.permute.xlu1 %2365  ;;  %v2418_v63 = vadd.f32 %v2414_v30, %v2381_v33  ;;  %v2385_v16 = vpop.permute.xlu0 %2384  ;;  %v4400_v33 = vld [vmem:[#allocation2 + $0x464] ss:$16 sps:$4 sm:$0xff]   ;;  %v4403_v30 = vld [vmem:[#allocation2 + $0x46c] ss:$16 sps:$4 sm:$0xff]  }
0x1283   :  { %v2371_v21 = vsel %vm2367_vm9, %v2366_v9, %v2360_v22  ;;  %v2395_v35 = vsel %vm2392_vm10, %v2385_v16, %v2387_v28  ;;  %v2428_v22 = vmul.f32 %v2423_v51, %v5472_v58  ;;  %v4392_v58 = vld [vmem:[#allocation2 + $0x440] ss:$16 sps:$4 sm:$0xff]   ;;  %v4395_v51 = vld [vmem:[#allocation2 + $0x448] ss:$16 sps:$4 sm:$0xff]  }
0x1284   :  { %v2380_v5 = vmul.f32 %v2371_v21, %v5664_v29  ;;  %v2413_v46 = vmul.f32 %v2400_v34, %v2395_v35  ;;  %v2454_v19 = vmul.f32 %v2450_v2, %v2418_v63  ;;  %v4398_v34 = vld [vmem:[#allocation2 + $0x460] ss:$16 sps:$4 sm:$0xff]   ;;  %v4409_v2 = vld [vmem:[#allocation2 + $0x48c] ss:$16 sps:$4 sm:$0xff]   ;;  %v4407_v21 = vld [vmem:[#allocation2 + $0x488] ss:$16 sps:$4 sm:$0xff]  }
0x1285   :  { %v4404_v63 = vld [vmem:[#allocation2 + $0x480] ss:$16 sps:$4 sm:$0xff]   ;;  %v4418_v35 = vld [vmem:[#allocation2 + $0x4c4] ss:$16 sps:$4 sm:$0xff]  }
0x1286   :  { %v2364_v50 = vpop.permute.xlu1 %2363  ;;  %v2417_v4 = vadd.f32 %v2413_v46, %v2380_v5  ;;  %v2391_v14 = vpop.permute.xlu0 %2390  ;;  %v2458_v52 = vadd.f32 %v2454_v19, %v2426_v43  ;;  %v4410_v29 = vld [vmem:[#allocation2 + $0x4a0] ss:$16 sps:$4 sm:$0xff]   ;;  %v4413_v5 = vld [vmem:[#allocation2 + $0x4a8] ss:$16 sps:$4 sm:$0xff]   ;;  %v4424_v46 = vld [vmem:[#allocation2 + $0x4e4] ss:$16 sps:$4 sm:$0xff]  }
0x1287   :  { %v2368_v39 = vsel %vm2367_vm9, %v2364_v50, %v2366_v9  ;;  %v2369_v15 = vsel %vm2367_vm9, %v2362_v24, %v2364_v50  ;;  %v2393_v1 = vsel %vm2392_vm10, %v2389_v62, %v2391_v14  ;;  %v2396_v10 = vsel %vm2392_vm10, %v2391_v14, %v2385_v16  ;;  %v4389_v62 = vld [vmem:[#allocation2 + $0x428] ss:$16 sps:$4 sm:$0xff]   ;;  %v4406_v9 = vld [vmem:[#allocation2 + $0x484] ss:$16 sps:$4 sm:$0xff]   ;;  %v4422_v19 = vld [vmem:[#allocation2 + $0x4e0] ss:$16 sps:$4 sm:$0xff]  }
0x1288   :  { %v2382_v7 = vmul.f32 %v2375_v56, %v2369_v15  ;;  %v2383_v53 = vmul.f32 %v2379_v41, %v2368_v39  ;;  %v2453_v44 = vmul.f32 %v2449_v37, %v2417_v4  ;;  %v2415_v49 = vmul.f32 %v2408_v17, %v2393_v1  ;;  %v4412_v16 = vld [vmem:[#allocation2 + $0x4a4] ss:$16 sps:$4 sm:$0xff]   ;;  %v4415_v56 = vld [vmem:[#allocation2 + $0x4ac] ss:$16 sps:$4 sm:$0xff]   ;;  %v4416_v17 = vld [vmem:[#allocation2 + $0x4c0] ss:$16 sps:$4 sm:$0xff]  }
0x1289   :  { %v2416_v20 = vmul.f32 %v2412_v40, %v2396_v10  ;;  %v2462_v0 = vpack.c.bf16 %v2458_v52, %v2458_v52  ;;  %v4421_v41 = vld [vmem:[#allocation2 + $0x4cc] ss:$16 sps:$4 sm:$0xff]   ;;  %v4419_v43 = vld [vmem:[#allocation2 + $0x4c8] ss:$16 sps:$4 sm:$0xff]   ;;  %v4436_v4 = vld [vmem:[#allocation2 + $0x524] ss:$16 sps:$4 sm:$0xff]  }
0x128a   :  { %v2419_v47 = vadd.f32 %v2415_v49, %v2382_v7  ;;  %v2457_v26 = vadd.f32 %v2453_v44, %v2425_v55  ;;  %v4427_v40 = vld [vmem:[#allocation2 + $0x4ec] ss:$16 sps:$4 sm:$0xff]   ;;  %v4428_v55 = vld [vmem:[#allocation2 + $0x500] ss:$16 sps:$4 sm:$0xff]   ;;  %v4431_v50 = vld [vmem:[#allocation2 + $0x508] ss:$16 sps:$4 sm:$0xff]  }
0x128b   :  { %v2420_v8 = vadd.f32 %v2416_v20, %v2383_v53  ;;  %3265 = vmatprep.mubr.bf16.mxu1 %v2462_v0  ;;  %3347 = vmatprep.mubr.bf16.mxu0 %v2462_v0  ;;  %v4433_v37 = vld [vmem:[#allocation2 + $0x50c] ss:$16 sps:$4 sm:$0xff]   ;;  %v4434_v15 = vld [vmem:[#allocation2 + $0x520] ss:$16 sps:$4 sm:$0xff]   ;;  %v4437_v14 = vld [vmem:[#allocation2 + $0x528] ss:$16 sps:$4 sm:$0xff]  }
0x128c   :  { %v2455_v24 = vmul.f32 %v2451_v18, %v2419_v47  ;;  %v2461_v27 = vpack.c.bf16 %v2457_v26, %v2457_v26  ;;  %v4439_v39 = vld [vmem:[#allocation2 + $0x52c] ss:$16 sps:$4 sm:$0xff]   ;;  %v4442_v52 = vld [vmem:[#allocation2 + $0x544] ss:$16 sps:$4 sm:$0xff]   ;;  %v4440_v53 = vld [vmem:[#allocation2 + $0x540] ss:$16 sps:$4 sm:$0xff]  }
0x128d   :  { %v2456_v59 = vmul.f32 %v2452_v45, %v2420_v8  ;;  %v4445_v7 = vld [vmem:[#allocation2 + $0x54c] ss:$16 sps:$4 sm:$0xff]   ;;  %v4443_v1 = vld [vmem:[#allocation2 + $0x548] ss:$16 sps:$4 sm:$0xff]   ;;  %v4448_v10 = vld [vmem:[#allocation2 + $0x564] ss:$16 sps:$4 sm:$0xff]  }
0x128e   :  { %3266 = vmatmul.mubr.bf16.vlgmr.msra.gmra.mrb[16].mxu1 %v2461_v27  ;;  %3348 = vmatmul.mubr.bf16.vlgmr.msra.gmra.mrb[16].mxu0 %v2461_v27  ;;  %v5524_v57 = vadd.f32 %v2455_v24, %v2427_v11  ;;  %v4451_v44 = vld [vmem:[#allocation2 + $0x56c] ss:$16 sps:$4 sm:$0xff]   ;;  %v4446_v49 = vld [vmem:[#allocation2 + $0x560] ss:$16 sps:$4 sm:$0xff]   ;;  %v4449_v20 = vld [vmem:[#allocation2 + $0x568] ss:$16 sps:$4 sm:$0xff]  }
0x128f   :  { %v2460_v28 = vadd.f32 %v2456_v59, %v2428_v22  ;;  %3275 = vmatpush1.bf16.msra.mxu1 %v4380_v25  ;;  %3357 = vmatpush1.bf16.msra.mxu0 %v4383_v48  ;;  %v4454_v0 = vld [vmem:[#allocation2 + $0x584] ss:$16 sps:$4 sm:$0xff]   ;;  %v4457_v18 = vld [vmem:[#allocation2 + $0x58c] ss:$16 sps:$4 sm:$0xff]   ;;  %v4452_v45 = vld [vmem:[#allocation2 + $0x580] ss:$16 sps:$4 sm:$0xff]  }
0x1290   :  { %3276 = vmatprep.subr.bf16.mxu1 %v4388_v54  ;;  %3358 = vmatprep.subr.bf16.mxu0 %v4391_v31  ;;  %v4455_v47 = vld [vmem:[#allocation2 + $0x588] ss:$16 sps:$4 sm:$0xff]   ;;  %v4460_v8 = vld [vmem:[#allocation2 + $0x5a4] ss:$16 sps:$4 sm:$0xff]   ;;  %v4463_v26 = vld [vmem:[#allocation2 + $0x5ac] ss:$16 sps:$4 sm:$0xff]  }
0x1291   :  { %v2464_v23 = vpack.c.bf16 %v2460_v28, %v2460_v28  ;;  %v4458_v11 = vld [vmem:[#allocation2 + $0x5a0] ss:$16 sps:$4 sm:$0xff]   ;;  %v4461_v25 = vld [vmem:[#allocation2 + $0x5a8] ss:$16 sps:$4 sm:$0xff]   ;;  %v4466_v48 = vld [vmem:[#allocation2 + $0x5c4] ss:$16 sps:$4 sm:$0xff]  }
0x1292   :  { %v4469_v22 = vld [vmem:[#allocation2 + $0x5cc] ss:$16 sps:$4 sm:$0xff]   ;;  %v4464_v24 = vld [vmem:[#allocation2 + $0x5c0] ss:$16 sps:$4 sm:$0xff]   ;;  %v4467_v27 = vld [vmem:[#allocation2 + $0x5c8] ss:$16 sps:$4 sm:$0xff]  }
0x1293   :  { %3306 = vmatprep.mubr.bf16.mxu1 %v2464_v23  ;;  %3388 = vmatprep.mubr.bf16.mxu0 %v2464_v23  ;;  %v4472_v54 = vld [vmem:[#allocation2 + $0x5e4] ss:$16 sps:$4 sm:$0xff]   ;;  %v4475_v31 = vld [vmem:[#allocation2 + $0x5ec] ss:$16 sps:$4 sm:$0xff]   ;;  %v4470_v59 = vld [vmem:[#allocation2 + $0x5e0] ss:$16 sps:$4 sm:$0xff]   ;;  %v2463_v23 = vpack.c.bf16 %v5524_v57, %v5524_v57 }
0x1294   :  { %3277 = vmatpush1.bf16.msra.mxu1 %v4386_v6  ;;  %3359 = vmatpush1.bf16.msra.mxu0 %v4389_v62  ;;  %v4473_v28 = vld [vmem:[#allocation2 + $0x5e8] ss:$16 sps:$4 sm:$0xff]   ;;  %v4476_v6 = vld [vmem:[%s5615_s5 + $0x40] sm:$0xff]   ;;  %v4480_v57 = vld [vmem:[%s5615_s5 + $0x50] sm:$0xff]  }
0x1295   :  { %3278 = vmatprep.subr.bf16.mxu1 %v4394_v3  ;;  %3360 = vmatprep.subr.bf16.mxu0 %v4397_v13  ;;  %v4477_v62 = vld [vmem:[%s5615_s5] sm:$0xff]   ;;  %v4478_v3 = vld [vmem:[%s5615_s5 + $0x48] sm:$0xff]   ;;  %v5665_v13 = vmov 0.0  }
0x1298   :  { %3279 = vmatpush1.bf16.msra.mxu1 %v4392_v58  ;;  %3361 = vmatpush1.bf16.msra.mxu0 %v4395_v51  ;;  %v4479_v58 = vld [vmem:[%s5615_s5 + $0x8] sm:$0xff]   ;;  %v4481_v51 = vld [vmem:[%s5615_s5 + $0x10] sm:$0xff]  }
0x1299   :  { %3280 = vmatprep.subr.bf16.mxu1 %v4400_v33  ;;  %3362 = vmatprep.subr.bf16.mxu0 %v4403_v30  ;;  %v4482_v33 = vld [vmem:[%s5615_s5 + $0x58] sm:$0xff]  }
0x129a   :  { %v4483_v30 = vld [vmem:[%s5615_s5 + $0x18] sm:$0xff]  }
0x129c   :  { %3281 = vmatpush1.bf16.msra.mxu1 %v4398_v34  ;;  %3363 = vmatpush1.bf16.msra.mxu0 %v4401_v12  ;;  %v4484_v34 = vld [vmem:[%s5615_s5 + $0x60] sm:$0xff]  }
0x129d   :  { %3282 = vmatprep.subr.bf16.mxu1 %v4406_v9  ;;  %3364 = vmatprep.subr.bf16.mxu0 %v4409_v2  ;;  %v4485_v12 = vld [vmem:[%s5615_s5 + $0x20] sm:$0xff]   ;;  %v4486_v9 = vld [vmem:[%s5615_s5 + $0x68] sm:$0xff]  }
0x129e   :  { %v4487_v2 = vld [vmem:[%s5615_s5 + $0x28] sm:$0xff]  }
0x12a0   :  { %3283 = vmatpush1.bf16.msra.mxu1 %v4404_v63  ;;  %3365 = vmatpush1.bf16.msra.mxu0 %v4407_v21  ;;  %v4488_v63 = vld [vmem:[%s5615_s5 + $0x70] sm:$0xff]  }
0x12a1   :  { %3284 = vmatprep.subr.bf16.mxu1 %v4412_v16  ;;  %3366 = vmatprep.subr.bf16.mxu0 %v4415_v56  ;;  %v4489_v21 = vld [vmem:[%s5615_s5 + $0x30] sm:$0xff]   ;;  %v4490_v16 = vld [vmem:[%s5615_s5 + $0x78] sm:$0xff]  }
0x12a2   :  { %v4491_v56 = vld [vmem:[%s5615_s5 + $0x38] sm:$0xff]  }
0x12a4   :  { %3285 = vmatpush1.bf16.msra.mxu1 %v4410_v29  ;;  %3367 = vmatpush1.bf16.msra.mxu0 %v4413_v5 }
0x12a5   :  { %3286 = vmatprep.subr.bf16.mxu1 %v4418_v35  ;;  %3368 = vmatprep.subr.bf16.mxu0 %v4421_v41 }
0x12a8   :  { %3287 = vmatpush1.bf16.msra.mxu1 %v4416_v17  ;;  %3369 = vmatpush1.bf16.msra.mxu0 %v4419_v43 }
0x12a9   :  { %3288 = vmatprep.subr.bf16.mxu1 %v4424_v46  ;;  %3370 = vmatprep.subr.bf16.mxu0 %v4427_v40 }
0x12ac   :  { %3289 = vmatpush1.bf16.msra.mxu1 %v4422_v19  ;;  %3371 = vmatpush1.bf16.msra.mxu0 %v4425_v36 }
0x12ad   :  { %3290 = vmatprep.subr.bf16.mxu1 %v4430_v38  ;;  %3372 = vmatprep.subr.bf16.mxu0 %v4433_v37 }
0x12b0   :  { %3291 = vmatpush1.bf16.msra.mxu1 %v4428_v55  ;;  %3373 = vmatpush1.bf16.msra.mxu0 %v4431_v50 }
0x12b1   :  { %3292 = vmatprep.subr.bf16.mxu1 %v4436_v4  ;;  %3374 = vmatprep.subr.bf16.mxu0 %v4439_v39 }
0x12b4   :  { %3293 = vmatpush1.bf16.msra.mxu1 %v4434_v15  ;;  %3375 = vmatpush1.bf16.msra.mxu0 %v4437_v14  ;;  %v4492_v15 = vld [vmem:[%s5615_s5 + $0x80] sm:$0xff]  }
0x12b5   :  { %3294 = vmatprep.subr.bf16.mxu1 %v4442_v52  ;;  %3376 = vmatprep.subr.bf16.mxu0 %v4445_v7  ;;  %v4541_v52 = vld [vmem:[%s5612_s2 + $0x10] sm:$0xff] }
0x12b6   :  { %v3440_v7 = vrot.slane %v4541_v52, %v4709_v42  ;;  %v4494_v42 = vld [vmem:[%s5615_s5 + $0x90] sm:$0xff]  }
0x12b8   :  { %3295 = vmatpush1.bf16.msra.mxu1 %v4440_v53  ;;  %3377 = vmatpush1.bf16.msra.mxu0 %v4443_v1 }
0x12b9   :  { %3296 = vmatprep.subr.bf16.mxu1 %v4448_v10  ;;  %3378 = vmatprep.subr.bf16.mxu0 %v4451_v44 }
0x12bc   :  { %3297 = vmatpush1.bf16.msra.mxu1 %v4446_v49  ;;  %3379 = vmatpush1.bf16.msra.mxu0 %v4449_v20 }
0x12bd   :  { %3298 = vmatprep.subr.bf16.mxu1 %v4454_v0  ;;  %3380 = vmatprep.subr.bf16.mxu0 %v4457_v18 }
0x12c0   :  { %3299 = vmatpush1.bf16.msra.mxu1 %v4452_v45  ;;  %3381 = vmatpush1.bf16.msra.mxu0 %v4455_v47 }
0x12c1   :  { %3300 = vmatprep.subr.bf16.mxu1 %v4460_v8  ;;  %3382 = vmatprep.subr.bf16.mxu0 %v4463_v26  ;;  %v4493_v8 = vld [vmem:[%s5615_s5 + $0x88] sm:$0xff]  }
0x12c4   :  { %3301 = vmatpush1.bf16.msra.mxu1 %v4458_v11  ;;  %3383 = vmatpush1.bf16.msra.mxu0 %v4461_v25  ;;  %v3590_v11 = vrot.slane %v4541_v52, %v4724_v60 }
0x12c5   :  { %3302 = vmatprep.subr.bf16.mxu1 %v4466_v48  ;;  %3384 = vmatprep.subr.bf16.mxu0 %v4469_v22 }
0x12c8   :  { %3303 = vmatpush1.bf16.msra.mxu1 %v4464_v24  ;;  %3385 = vmatpush1.bf16.msra.mxu0 %v4467_v27  ;;  %v5666_v27 = vld [vmem:[#allocation8_spill] sm:$0xff] }
0x12c9   :  { %3304 = vmatprep.subr.bf16.mxu1 %v4472_v54  ;;  %3386 = vmatprep.subr.bf16.mxu0 %v4475_v31 }
0x12cc   :  { %3305 = vmatpush1.bf16.msra.mxu1 %v4470_v59  ;;  %3387 = vmatpush1.bf16.msra.mxu0 %v4473_v28  ;;  %v3649_v28 = vrot.slane %v4541_v52, %v4727_v61 }
0x12cd   :  { %4009 = vmatprep.subr.bf16.mxu1 %v4476_v6  ;;  %4084 = vmatprep.subr.bf16.mxu0 %v5665_v13 }
0x12cf   :  { %3307 = vmatmul.mubr.bf16.vlgmr.msra.gmra.mrb[16].mxu1 %v2463_v23  ;;  %3389 = vmatmul.mubr.bf16.vlgmr.msra.gmra.mrb[16].mxu0 %v2463_v23 }
0x12d0   :  { %4010 = vmatpush3.bf16.msra.mxu1 %v4477_v62  ;;  %4086 = vmatprep.mubr.msk.bf16.mxu0 %vm4570_vm0, %v5665_v13 }
0x12d1   :  { %4011 = vmatprep.subr.bf16.mxu1 %v4478_v3  ;;  %4085 = vmatpush3.bf16.msra.mxu0 %v4492_v15 }
0x12d2   :  { %4090 = vmatprep.subr.bf16.mxu0 %v5665_v13 }
0x12d4   :  { %4012 = vmatpush3.bf16.msra.mxu1 %v4479_v58 }
0x12d5   :  { %4013 = vmatprep.subr.bf16.mxu1 %v4480_v57 }
0x12d8   :  { %4014 = vmatpush3.bf16.msra.mxu1 %v4481_v51  ;;  %v3712_v51 = vld [vmem:[%s5615_s5 + $0x98] sm:$0x1] }
0x12d9   :  { %4015 = vmatprep.subr.bf16.mxu1 %v4482_v33  ;;  %v3713_v33 = vunpack.c.l.bf16 %v3712_v51 }
0x12dc   :  { %4016 = vmatpush3.bf16.msra.mxu1 %v4483_v30  ;;  %v5667_v30 = vld [vmem:[#allocation5_spill] sm:$0xff] }
0x12dd   :  { %4017 = vmatprep.subr.bf16.mxu1 %v4484_v34  ;;  %v3717_v34 = vrot.slane %v3713_v33, %v5667_v30 }
0x12e0   :  { %4018 = vmatpush3.bf16.msra.mxu1 %v4485_v12 }
0x12e1   :  { %4019 = vmatprep.subr.bf16.mxu1 %v4486_v9 }
0x12e4   :  { %4020 = vmatpush3.bf16.msra.mxu1 %v4487_v2 }
0x12e5   :  { %4021 = vmatprep.subr.bf16.mxu1 %v4488_v63  ;;  %v3725_v63 = vrot.slane %v4541_v52, %v5659_v32 }
0x12e8   :  { %4022 = vmatpush3.bf16.msra.mxu1 %v4489_v21 }
0x12e9   :  { %4023 = vmatprep.subr.bf16.mxu1 %v4490_v16 }
0x12ec   :  { %4024 = vmatpush3.bf16.msra.mxu1 %v4491_v56 }
0x13a2   :  { %v3308_v29 = vpop.f32.mrb[16].mxu1  ;;  %v3390_v5 = vpop.f32.mrb[16].mxu0 }
0x13a3   :  { %v3397_v35 = vmul.f32 %v3308_v29, %v3308_v29  ;;  %v3399_v41 = vmul.f32 %v3390_v5, %v3390_v5  ;;  %v3310_v17 = vpop.f32.mrb[17].mxu1  ;;  %v3392_v43 = vpop.f32.mrb[17].mxu0 }
0x13a4   :  { %v3398_v46 = vmul.f32 %v3310_v17, %v3310_v17  ;;  %v3400_v40 = vmul.f32 %v3392_v43, %v3392_v43  ;;  %v3312_v19 = vpop.f32.mrb[18].mxu1  ;;  %v3394_v36 = vpop.f32.mrb[18].mxu0 }
0x13a5   :  { %v3401_v38 = vadd.f32 %v3399_v41, %v3397_v35  ;;  %v3313_v37 = vpop.f32.mrb[19].mxu1  ;;  %v3395_v55 = vpop.f32.mrb[19].mxu0 }
0x13a6   :  { %v3402_v50 = vadd.f32 %v3400_v40, %v3398_v46 }
0x13a7   :  { %v3403_v39 = vpack.c.bf16 %v3401_v38, %v3401_v38 }
0x13a8   :  { %v3404_v4 = vpack.c.bf16 %v3402_v50, %v3402_v50 }
0x13aa   :  { %3569 = vmatprep.mubr.bf16.mxu1 %v3404_v4 }
0x13ab   :  { %3570 = vmatmul.mubr.bf16.vlgmr.msra.gmra.mrb[20].mxu1 %v3403_v39 }
0x147e   :  { %v4025_v14 = vpop.f32.mrb[20].mxu1 }
0x147f   :  { %v4026_v53 = vpop.f32.mrb[21].mxu1 }
0x1480   :  { %v4027_v1 = vadd.f32 %v4026_v53, %v4025_v14  ;;  %v4028_v10 = vpop.f32.mrb[22].mxu1 }
0x1481   :  { %v4029_v44 = vpop.f32.mrb[23].mxu1 }
0x1482   :  { %v3572_v49 = vadd.f32 %v4027_v1, %v3440_v7 }
0x1484   :  { %v3984_v20 = vmul.f32 -1.442695, %v3572_v49 }
0x1486   :  { %4531 = vpow2.f32 %v3984_v20 }
0x1490   :  { %v4532_v0 = vpop.eup %4531 }
0x1491   :  { %v3580_v18 = vadd.f32 1.0, %v4532_v0 }
0x1493   :  { %4533 = vrcp.f32 %v3580_v18 }
0x149d   :  { %v4534_v45 = vpop.eup %4533 }
0x149e   :  { %v3583_v47 = vmul.f32 %v4534_v45, %v3572_v49 }
0x14a0   :  { %v3584_v26 = vpack.c.bf16 %v3583_v47, %v3583_v47 }
0x14a2   :  { %4087 = vmatmul.mubr.msk.bf16.vlgmr.msra.gmra.mrb[20].mxu0 %vm310_vm3, %v3584_v26 }
0x14a3   :  { %4091 = vmatpush3.bf16.msra.mxu0 %v4493_v8  ;;  %4094 = vmatprep.mubr.msk.bf16.mxu0 %vm4570_vm0, %v5665_v13  ;;  %vm3727_vm0 = vcmask 7168  }
0x14a4   :  { %4092 = vmatprep.subr.bf16.mxu0 %v5665_v13 }
0x14a7   :  { %4093 = vmatpush3.bf16.msra.mxu0 %v4494_v42 }
0x1575   :  { %v3634_v25 = vpop.f32.mrb[20].mxu0 }
0x1576   :  { %v3635_v48 = vadd.f32 %v3634_v25, %v3590_v11  ;;  %v4088_v22 = vpop.f32.mrb[21].mxu0 }
0x1577   :  { %v3637_v24 = vpop.f32.mrb[22].mxu0 }
0x1578   :  { %v3640_v54 = vadd.f32 %v3635_v48, %v5666_v27  ;;  %v4089_v31 = vpop.f32.mrb[23].mxu0 }
0x157a   :  { %v3641_v59 = vpack.c.bf16 %v3640_v54, %v3640_v54 }
0x157c   :  { %4095 = vmatmul.mubr.msk.bf16.vlgmr.msra.gmra.mrb[24].mxu0 %vm127_vm2, %v3641_v59 }
0x164f   :  { %v3699_v6 = vpop.f32.mrb[24].mxu0 }
0x1650   :  { %v3700_v62 = vadd.f32 %v3699_v6, %v3649_v28  ;;  %v4096_v23 = vpop.f32.mrb[25].mxu0 }
0x1651   :  { %v3702_v3 = vpop.f32.mrb[26].mxu0 }
0x1652   :  { %v3990_v13 = vmul.f32 -1.442695, %v3700_v62  ;;  %v4097_v58 = vpop.f32.mrb[27].mxu0 }
0x1654   :  { %4535 = vpow2.f32 %v3990_v13 }
0x165e   :  { %v4536_v60 = vpop.eup %4535 }
0x165f   :  { %v3708_v57 = vadd.f32 1.0, %v4536_v60 }
0x1661   :  { %4537 = vrcp.f32 %v3708_v57 }
0x166b   :  { %v4538_v12 = vpop.eup %4537 }
0x166c   :  { %v3711_v9 = vmul.f32 %v4538_v12, %v3700_v62 }
0x166e   :  { %v3718_v61 = vmul.f32 %v3717_v34, %v3711_v9 }
0x1670   :  { %v3719_v2 = vsel %vm310_vm3, %v3718_v61, 0.0 }
0x1671   :  { %3720 = vadd.xlane.f32.xlu1 %v3719_v2 }
0x16fe   :  { %v3721_v21 = vpop.xlane.xlu1 %3720 }
0x16ff   :  { %v3726_v16 = vadd.f32 %v3725_v63, %v3721_v21 }
0x1701   :  { %3728 = vst.msk [vmem:[%s5616_s6] sm:$0xff] %vm3727_vm0, %v3726_v16 }
0x1702   :  { %3733 = vsyncpa [#allocation3], 1 }

</bundles_post_ra>
